<compile_context>
chip_gen: v7x
topology: tpu7x:2x2x1
jax: 0.10.0
libtpu: 0.0.40
codegen_flags: <defaults>
</compile_context>

<pallas_src>
import math

import jax
import jax.numpy as jnp
from jax.experimental import pallas as pl
from jax.experimental.pallas import tpu as pltpu

GROUPS = 8          # nn.GroupNorm(num_groups=8, ...)
EPS = 1e-5          # nn.GroupNorm default eps
EMB_IN = 16 * 8     # EmbeddingProjection in_channels
EMB_HID = 16        # EmbeddingProjection hidden_channels


# ----------------------------- in-kernel helpers ------------------------------
def _silu(y):
    # y * sigmoid(y); approx reciprocal runs on the EUP (separate issue slot).
    return y * pl.reciprocal(1.0 + jnp.exp(-y), approx=True)


def _groupnorm_silu(x_bsc, gamma, beta, grp):
    # x_bsc: (Bb, S, C) f32;  gamma/beta: (1, C);  grp: (C, C) same-group one-hot f32.
    # GroupNorm(8) per (sample, group) over S * C//8 elements (biased variance, like
    # PyTorch), followed by SiLU.  Group reductions / broadcast-back go through the
    # constant (C, C) one-hot matmul so the (.., C) lane layout is never sliced into
    # narrow per-group chunks.
    Bb, S, C = x_bsc.shape
    inv_n = 1.0 / float(S * (C // GROUPS))

    csum = jnp.sum(x_bsc, axis=1)                                          # (Bb, C)
    mean = jnp.dot(csum, grp, preferred_element_type=jnp.float32) * inv_n  # (Bb, C)
    xc = x_bsc - mean[:, None, :]
    csq = jnp.sum(xc * xc, axis=1)                                         # (Bb, C)
    var = jnp.dot(csq, grp, preferred_element_type=jnp.float32) * inv_n    # (Bb, C)
    y = xc * jax.lax.rsqrt(var + EPS)[:, None, :]
    y = y * gamma + beta                                                    # (1, C) bcast
    return _silu(y)


def _conv3x3_acc(h_bhwc, w9_ref, pad_ref, acc):
    # 3x3 "SAME" conv as 9 shift-and-accumulate matmuls.
    #   h_bhwc : (Bb, H, W, C) f32 value
    #   w9_ref : (9, C, Cout) bf16 ref, tap k = ky*3 + kx
    #   pad_ref: (Bb, H+2, W+2, C) f32 VMEM scratch
    #   acc    : (Bb*H*W, Cout) f32 initial accumulator (e.g. the fused skip matmul)
    Bb, H, W, C = h_bhwc.shape
    M = Bb * H * W
    # Zero only the 1-pixel border; the interior is fully overwritten below.  Done
    # every step (cheap) because the scratch is per-core and uninitialised on the
    # first step a given TensorCore executes under "parallel" grid sharding.
    pad_ref[:, 0:1, :, :] = jnp.zeros((Bb, 1, W + 2, C), jnp.float32)
    pad_ref[:, H + 1:H + 2, :, :] = jnp.zeros((Bb, 1, W + 2, C), jnp.float32)
    pad_ref[:, 1:H + 1, 0:1, :] = jnp.zeros((Bb, H, 1, C), jnp.float32)
    pad_ref[:, 1:H + 1, W + 1:W + 2, :] = jnp.zeros((Bb, H, 1, C), jnp.float32)
    pad_ref[:, 1:H + 1, 1:W + 1, :] = h_bhwc
    for ky in range(3):
        for kx in range(3):
            win = pad_ref[:, ky:ky + H, kx:kx + W, :].reshape(M, C)
            acc = acc + jnp.dot(win.astype(jnp.bfloat16), w9_ref[ky * 3 + kx],
                                preferred_element_type=jnp.float32)
    return acc


# ------------------------------- fused kernel ---------------------------------
def _resblock_kernel(x_ref, embb1_ref,
                     gn1_g_ref, gn1_b_ref, grp1_ref, w1_ref,
                     gn2_g_ref, gn2_b_ref, grp2_ref, w2_ref,
                     ws_ref, b2s_ref,
                     o_ref,
                     pad1_ref, pad2_ref):
    Bb, H, W, Cin = x_ref.shape
    Cout = o_ref.shape[3]
    S = H * W
    M = Bb * S

    x = x_ref[...]                                     # (Bb, H, W, Cin) f32
    x_bsc = x.reshape(Bb, S, Cin)

    # ---- convblock_1: GroupNorm(8, Cin) -> SiLU -> Conv3x3(Cin -> Cout) ----
    h = _groupnorm_silu(x_bsc, gn1_g_ref[...], gn1_b_ref[...], grp1_ref[...])
    acc1 = _conv3x3_acc(h.reshape(Bb, H, W, Cin), w1_ref, pad1_ref,
                        jnp.zeros((M, Cout), jnp.float32))

    # ---- + (embedding projection + conv1 bias), precomputed per-sample in wrapper ----
    h = acc1.reshape(Bb, S, Cout) + embb1_ref[...]     # (Bb,1,Cout) broadcast add

    # rescale = nn.Identity()  (up=False, down=False)
    # TODO(synk): up/down ResBlock variants (bilinear upsample / stride-2 conv rescale)
    # are not implemented; only the default Identity rescale path is fused here.

    # ---- convblock_2 (GroupNorm -> SiLU -> Conv3x3) with the skip 1x1 conv fused ----
    g = _groupnorm_silu(h, gn2_g_ref[...], gn2_b_ref[...], grp2_ref[...])
    skip = jnp.dot(x_bsc.reshape(M, Cin).astype(jnp.bfloat16), ws_ref[...],
                   preferred_element_type=jnp.float32)          # acc init = skip(x)
    acc2 = _conv3x3_acc(g.reshape(Bb, H, W, Cout), w2_ref, pad2_ref, skip)
    out = acc2 + b2s_ref[...]                          # conv2_b + skip_b, one bcast add

    o_ref[...] = out.reshape(Bb, H, W, Cout).astype(o_ref.dtype)


# --------------------------------- wrapper ------------------------------------
def _pick_bblk(B, H, W):
    # Grow M = Bblk*H*W toward one MXU pass worth of rows while dividing B evenly.
    # (At realistic sizes also bound Bblk by the per-generation VMEM budget: the two
    # padded scratches + double-buffered in/out blocks must fit 32 MiB scoped / 64 MiB
    # physical on v7x, 128 MiB on v5e/v6e.)
    target = max(1, 128 // (H * W))
    bblk = 1
    for cand in range(1, B + 1):
        if B % cand == 0 and cand <= target:
            bblk = cand
    return bblk


@jax.jit
def resblock_forward(x_nchw, e, params):
    B, Cin, H, W = x_nchw.shape
    Cout = params["conv1_b"].shape[0]
    bblk = _pick_bblk(B, H, W)

    x = jnp.transpose(x_nchw, (0, 2, 3, 1)).astype(jnp.float32)      # NCHW -> NHWC

    # Embedding MLP hoisted out of the serial grid loop (one batched matmul pair for
    # the whole batch), folded together with conv1's bias.
    t = e.astype(jnp.float32) @ params["emb_w1"] + params["emb_b1"]
    t = t * jax.nn.sigmoid(t)
    emb = t @ params["emb_w2"] + params["emb_b2"]                     # (B, Cout)
    embb1 = (emb + params["conv1_b"]).reshape(B, 1, Cout)

    # Constant same-group one-hot matrices for the GroupNorm reductions / broadcasts.
    def grp_mat(C):
        g = jnp.arange(C) // (C // GROUPS)
        return (g[:, None] == g[None, :]).astype(jnp.float32)

    # Conv / skip weights pre-cast to bf16; conv weights as (9, C, Cout) taps (HWIO).
    w1 = params["conv1_w"].reshape(9, Cin, Cout).astype(jnp.bfloat16)
    w2 = params["conv2_w"].reshape(9, Cout, Cout).astype(jnp.bfloat16)
    ws = params["skip_w"].astype(jnp.bfloat16)
    b2s = (params["conv2_b"] + params["skip_b"]).reshape(1, Cout)

    def row(v):
        return v.reshape(1, -1)

    args = (x, embb1,
            row(params["gn1_gamma"]), row(params["gn1_beta"]), grp_mat(Cin), w1,
            row(params["gn2_gamma"]), row(params["gn2_beta"]), grp_mat(Cout), w2,
            ws, b2s)

    def rep(a):        # whole small constant array, same block for every grid step
        n = a.ndim
        return pl.BlockSpec(a.shape, lambda b: (0,) * n)

    in_specs = [pl.BlockSpec((bblk, H, W, Cin), lambda b: (b, 0, 0, 0)),
                pl.BlockSpec((bblk, 1, Cout), lambda b: (b, 0, 0))]
    in_specs += [rep(a) for a in args[2:]]

    out = pl.pallas_call(
        _resblock_kernel,
        out_shape=jax.ShapeDtypeStruct((B, H, W, Cout), jnp.float32),
        grid=(B // bblk,),
        in_specs=in_specs,
        out_specs=pl.BlockSpec((bblk, H, W, Cout), lambda b: (b, 0, 0, 0)),
        scratch_shapes=[
            pltpu.VMEM((bblk, H + 2, W + 2, Cin), jnp.float32),    # padded input, conv1
            pltpu.VMEM((bblk, H + 2, W + 2, Cout), jnp.float32),   # padded input, conv2
        ],
        compiler_params=pltpu.CompilerParams(
            dimension_semantics=("parallel",),
            vmem_limit_bytes=32 * 1024 * 1024),
    )(*args)
    return jnp.transpose(out, (0, 3, 1, 2))           # NHWC -> NCHW


# ---------------------------- pure-JAX reference -------------------------------
def reference_forward(x_nchw, e, params):
    x = jnp.transpose(x_nchw, (0, 2, 3, 1)).astype(jnp.float32)

    def gn_silu(t, gamma, beta):
        b, h, w, c = t.shape
        cg = c // GROUPS
        tg = t.reshape(b, h, w, GROUPS, cg)
        mu = jnp.mean(tg, axis=(1, 2, 4), keepdims=True)
        var = jnp.mean((tg - mu) ** 2, axis=(1, 2, 4), keepdims=True)
        tn = ((tg - mu) / jnp.sqrt(var + EPS)).reshape(b, h, w, c)
        tn = tn * gamma + beta
        return tn * jax.nn.sigmoid(tn)

    def conv3x3(t, w, bias):
        return jax.lax.conv_general_dilated(
            t, w, (1, 1), "SAME",
            dimension_numbers=("NHWC", "HWIO", "NHWC"),
            precision=jax.lax.Precision.HIGHEST) + bias

    h = gn_silu(x, params["gn1_gamma"], params["gn1_beta"])
    h = conv3x3(h, params["conv1_w"], params["conv1_b"])
    t = e @ params["emb_w1"] + params["emb_b1"]
    t = t * jax.nn.sigmoid(t)
    emb = t @ params["emb_w2"] + params["emb_b2"]
    h = h + emb[:, None, None, :]
    h = gn_silu(h, params["gn2_gamma"], params["gn2_beta"])
    h = conv3x3(h, params["conv2_w"], params["conv2_b"])
    skip = jnp.einsum("bhwc,cd->bhwd", x, params["skip_w"],
                      precision=jax.lax.Precision.HIGHEST) + params["skip_b"]
    return jnp.transpose(h + skip, (0, 3, 1, 2))


def make_params(key, Cin, Cout):
    ks = jax.random.split(key, 16)
    f32 = jnp.float32

    def nrm(k, shape, scale):
        return jax.random.normal(k, shape, f32) * scale

    return {
        "gn1_gamma": 1.0 + nrm(ks[0], (Cin,), 0.1),
        "gn1_beta": nrm(ks[1], (Cin,), 0.05),
        "conv1_w": nrm(ks[2], (3, 3, Cin, Cout), 1.0 / math.sqrt(9 * Cin)),   # HWIO
        "conv1_b": nrm(ks[3], (Cout,), 0.02),
        "emb_w1": nrm(ks[4], (EMB_IN, EMB_HID), 1.0 / math.sqrt(EMB_IN)),     # y = x @ w + b
        "emb_b1": nrm(ks[5], (EMB_HID,), 0.02),
        "emb_w2": nrm(ks[6], (EMB_HID, Cout), 1.0 / math.sqrt(EMB_HID)),
        "emb_b2": nrm(ks[7], (Cout,), 0.02),
        "gn2_gamma": 1.0 + nrm(ks[8], (Cout,), 0.1),
        "gn2_beta": nrm(ks[9], (Cout,), 0.05),
        "conv2_w": nrm(ks[10], (3, 3, Cout, Cout), 1.0 / math.sqrt(9 * Cout)),
        "conv2_b": nrm(ks[11], (Cout,), 0.02),
        "skip_w": nrm(ks[12], (Cin, Cout), 1.0 / math.sqrt(Cin)),             # 1x1 conv
        "skip_b": nrm(ks[13], (Cout,), 0.02),
    }


if __name__ == "__main__":
    B, Cin, Cout, H, W = 2, 16, 32, 8, 8       # channels divisible by 8 (GroupNorm groups)
    key = jax.random.PRNGKey(0)
    kx, ke, kp = jax.random.split(key, 3)
    x = jax.random.normal(kx, (B, Cin, H, W), jnp.float32)   # NCHW, PyTorch convention
    e = jax.random.normal(ke, (B, EMB_IN), jnp.float32)      # timestep embedding (b, 128)
    params = make_params(kp, Cin, Cout)

    out = jax.block_until_ready(resblock_forward(x, e, params))
    ref = jax.block_until_ready(reference_forward(x, e, params))

    assert out.shape == (B, Cout, H, W) and out.dtype == jnp.float32
    err = jnp.max(jnp.abs(out - ref))
    assert jnp.allclose(out, ref, rtol=2e-2, atol=2e-2), f"max abs err {err}"
    print("KERNEL_OK")
</pallas_src>

<mosaic_0001>
module attributes {stable_mosaic.version = 11 : i64} {
  func.func @_resblock_kernel(%arg0: i32, %arg1: memref<2x8x8x16xf32, #tpu.memory_space<vmem>>, %arg2: memref<2x1x32xf32, #tpu.memory_space<vmem>>, %arg3: memref<1x16xf32, #tpu.memory_space<vmem>>, %arg4: memref<1x16xf32, #tpu.memory_space<vmem>>, %arg5: memref<16x16xf32, #tpu.memory_space<vmem>>, %arg6: memref<9x16x32xbf16, #tpu.memory_space<vmem>>, %arg7: memref<1x32xf32, #tpu.memory_space<vmem>>, %arg8: memref<1x32xf32, #tpu.memory_space<vmem>>, %arg9: memref<32x32xf32, #tpu.memory_space<vmem>>, %arg10: memref<9x32x32xbf16, #tpu.memory_space<vmem>>, %arg11: memref<16x32xbf16, #tpu.memory_space<vmem>>, %arg12: memref<1x32xf32, #tpu.memory_space<vmem>>, %arg13: memref<2x8x8x32xf32, #tpu.memory_space<vmem>>, %arg14: memref<2x10x10x16xf32, #tpu.memory_space<vmem>>, %arg15: memref<2x10x10x32xf32, #tpu.memory_space<vmem>>) attributes {dimension_semantics = [#tpu.dimension_semantics<parallel>], iteration_bounds = array<i64: 1>, scalar_prefetch = 0 : i64, scratch_operands = 2 : i64, tpu.core_type = #tpu.core_type<tc>, window_params = [{transform_indices = @transform_0, window_bounds = array<i64: 2, 8, 8, 16>}, {transform_indices = @transform_1, window_bounds = array<i64: 2, 1, 32>}, {pipeline_mode = #tpu.pipeline_mode<synchronous>, transform_indices = @transform_2, window_bounds = array<i64: 1, 16>}, {pipeline_mode = #tpu.pipeline_mode<synchronous>, transform_indices = @transform_3, window_bounds = array<i64: 1, 16>}, {pipeline_mode = #tpu.pipeline_mode<synchronous>, transform_indices = @transform_4, window_bounds = array<i64: 16, 16>}, {pipeline_mode = #tpu.pipeline_mode<synchronous>, transform_indices = @transform_5, window_bounds = array<i64: 9, 16, 32>}, {pipeline_mode = #tpu.pipeline_mode<synchronous>, transform_indices = @transform_6, window_bounds = array<i64: 1, 32>}, {pipeline_mode = #tpu.pipeline_mode<synchronous>, transform_indices = @transform_7, window_bounds = array<i64: 1, 32>}, {pipeline_mode = #tpu.pipeline_mode<synchronous>, transform_indices = @transform_8, window_bounds = array<i64: 32, 32>}, {pipeline_mode = #tpu.pipeline_mode<synchronous>, transform_indices = @transform_9, window_bounds = array<i64: 9, 32, 32>}, {pipeline_mode = #tpu.pipeline_mode<synchronous>, transform_indices = @transform_10, window_bounds = array<i64: 16, 32>}, {pipeline_mode = #tpu.pipeline_mode<synchronous>, transform_indices = @transform_11, window_bounds = array<i64: 1, 32>}, {transform_indices = @transform_12, window_bounds = array<i64: 2, 8, 8, 32>}]} {
    %c0 = arith.constant 0 : index
    %c0_0 = arith.constant 0 : index
    %c0_1 = arith.constant 0 : index
    %c0_2 = arith.constant 0 : index
    %0 = vector.load %arg1[%c0, %c0_0, %c0_1, %c0_2] : memref<2x8x8x16xf32, #tpu.memory_space<vmem>>, vector<2x8x8x16xf32>
    %1 = vector.shape_cast %0 : vector<2x8x8x16xf32> to vector<2x64x16xf32>
    %c0_3 = arith.constant 0 : index
    %c0_4 = arith.constant 0 : index
    %2 = vector.load %arg3[%c0_3, %c0_4] : memref<1x16xf32, #tpu.memory_space<vmem>>, vector<1x16xf32>
    %c0_5 = arith.constant 0 : index
    %c0_6 = arith.constant 0 : index
    %3 = vector.load %arg4[%c0_5, %c0_6] : memref<1x16xf32, #tpu.memory_space<vmem>>, vector<1x16xf32>
    %c0_7 = arith.constant 0 : index
    %c0_8 = arith.constant 0 : index
    %4 = vector.load %arg5[%c0_7, %c0_8] : memref<16x16xf32, #tpu.memory_space<vmem>>, vector<16x16xf32>
    %cst = arith.constant dense<0.000000e+00> : vector<2x16xf32>
    %5 = vector.multi_reduction <add>, %1, %cst [1] : vector<2x64x16xf32> to vector<2x16xf32>
    %cst_9 = arith.constant dense<0.000000e+00> : vector<2x16xf32>
    %6 = tpu.matmul %5, %4, %cst_9 {dimension_numbers = #tpu.dot_dimension_numbers<[1], [0], [0], [1], [0, 0, 1, 1], [], []>} : vector<2x16xf32>, vector<16x16xf32>, vector<2x16xf32> -> vector<2x16xf32>
    %cst_10 = arith.constant 7.812500e-03 : f32
    %7 = vector.broadcast %cst_10 : f32 to vector<2x16xf32>
    %8 = arith.mulf %6, %7 : vector<2x16xf32>
    %9 = vector.shape_cast %8 : vector<2x16xf32> to vector<2x1x16xf32>
    %10 = vector.broadcast %9 : vector<2x1x16xf32> to vector<2x64x16xf32>
    %11 = arith.subf %1, %10 : vector<2x64x16xf32>
    %12 = arith.mulf %11, %11 : vector<2x64x16xf32>
    %cst_11 = arith.constant dense<0.000000e+00> : vector<2x16xf32>
    %13 = vector.multi_reduction <add>, %12, %cst_11 [1] : vector<2x64x16xf32> to vector<2x16xf32>
    %cst_12 = arith.constant dense<0.000000e+00> : vector<2x16xf32>
    %14 = tpu.matmul %13, %4, %cst_12 {dimension_numbers = #tpu.dot_dimension_numbers<[1], [0], [0], [1], [0, 0, 1, 1], [], []>} : vector<2x16xf32>, vector<16x16xf32>, vector<2x16xf32> -> vector<2x16xf32>
    %cst_13 = arith.constant 7.812500e-03 : f32
    %15 = vector.broadcast %cst_13 : f32 to vector<2x16xf32>
    %16 = arith.mulf %14, %15 : vector<2x16xf32>
    %cst_14 = arith.constant 9.99999974E-6 : f32
    %17 = vector.broadcast %cst_14 : f32 to vector<2x16xf32>
    %18 = arith.addf %16, %17 : vector<2x16xf32>
    %19 = math.rsqrt %18 : vector<2x16xf32>
    %20 = vector.shape_cast %19 : vector<2x16xf32> to vector<2x1x16xf32>
    %21 = vector.broadcast %20 : vector<2x1x16xf32> to vector<2x64x16xf32>
    %22 = arith.mulf %11, %21 : vector<2x64x16xf32>
    %23 = vector.shape_cast %2 : vector<1x16xf32> to vector<1x1x16xf32>
    %24 = vector.broadcast %23 : vector<1x1x16xf32> to vector<2x64x16xf32>
    %25 = arith.mulf %22, %24 : vector<2x64x16xf32>
    %26 = vector.shape_cast %3 : vector<1x16xf32> to vector<1x1x16xf32>
    %27 = vector.broadcast %26 : vector<1x1x16xf32> to vector<2x64x16xf32>
    %28 = arith.addf %25, %27 : vector<2x64x16xf32>
    %cst_15 = arith.constant 0.000000e+00 : f32
    %29 = vector.broadcast %cst_15 : f32 to vector<2x64x16xf32>
    %30 = arith.subf %29, %28 : vector<2x64x16xf32>
    %31 = math.exp %30 : vector<2x64x16xf32>
    %cst_16 = arith.constant 1.000000e+00 : f32
    %32 = vector.broadcast %cst_16 : f32 to vector<2x64x16xf32>
    %33 = arith.addf %32, %31 : vector<2x64x16xf32>
    %34 = tpu.reciprocal %33 {approx = true} : vector<2x64x16xf32> -> vector<2x64x16xf32>
    %35 = arith.mulf %28, %34 : vector<2x64x16xf32>
    %36 = vector.shape_cast %35 : vector<2x64x16xf32> to vector<2x8x8x16xf32>
    %cst_17 = arith.constant 0.000000e+00 : f32
    %37 = vector.broadcast %cst_17 : f32 to vector<128x32xf32>
    %cst_18 = arith.constant 0.000000e+00 : f32
    %38 = vector.broadcast %cst_18 : f32 to vector<2x1x10x16xf32>
    %c0_19 = arith.constant 0 : index
    %c0_20 = arith.constant 0 : index
    %c0_21 = arith.constant 0 : index
    %c0_22 = arith.constant 0 : index
    %39 = vector.load %arg14[%c0_19, %c0_20, %c0_21, %c0_22] : memref<2x10x10x16xf32, #tpu.memory_space<vmem>>, vector<2x1x10x16xf32>
    tpu.vector_store %arg14[%c0_19, %c0_20, %c0_21, %c0_22], %38 {strides = array<i32>} : memref<2x10x10x16xf32, #tpu.memory_space<vmem>>, vector<2x1x10x16xf32>,
    %cst_23 = arith.constant 0.000000e+00 : f32
    %40 = vector.broadcast %cst_23 : f32 to vector<2x1x10x16xf32>
    %c0_24 = arith.constant 0 : index
    %c9 = arith.constant 9 : index
    %c0_25 = arith.constant 0 : index
    %c0_26 = arith.constant 0 : index
    %41 = vector.load %arg14[%c0_24, %c9, %c0_25, %c0_26] : memref<2x10x10x16xf32, #tpu.memory_space<vmem>>, vector<2x1x10x16xf32>
    tpu.vector_store %arg14[%c0_24, %c9, %c0_25, %c0_26], %40 {strides = array<i32>} : memref<2x10x10x16xf32, #tpu.memory_space<vmem>>, vector<2x1x10x16xf32>,
    %cst_27 = arith.constant 0.000000e+00 : f32
    %42 = vector.broadcast %cst_27 : f32 to vector<2x8x1x16xf32>
    %c0_28 = arith.constant 0 : index
    %c1 = arith.constant 1 : index
    %c0_29 = arith.constant 0 : index
    %c0_30 = arith.constant 0 : index
    %43 = vector.load %arg14[%c0_28, %c1, %c0_29, %c0_30] : memref<2x10x10x16xf32, #tpu.memory_space<vmem>>, vector<2x8x1x16xf32>
    tpu.vector_store %arg14[%c0_28, %c1, %c0_29, %c0_30], %42 {strides = array<i32>} : memref<2x10x10x16xf32, #tpu.memory_space<vmem>>, vector<2x8x1x16xf32>,
    %cst_31 = arith.constant 0.000000e+00 : f32
    %44 = vector.broadcast %cst_31 : f32 to vector<2x8x1x16xf32>
    %c0_32 = arith.constant 0 : index
    %c1_33 = arith.constant 1 : index
    %c9_34 = arith.constant 9 : index
    %c0_35 = arith.constant 0 : index
    %45 = vector.load %arg14[%c0_32, %c1_33, %c9_34, %c0_35] : memref<2x10x10x16xf32, #tpu.memory_space<vmem>>, vector<2x8x1x16xf32>
    tpu.vector_store %arg14[%c0_32, %c1_33, %c9_34, %c0_35], %44 {strides = array<i32>} : memref<2x10x10x16xf32, #tpu.memory_space<vmem>>, vector<2x8x1x16xf32>,
    %c0_36 = arith.constant 0 : index
    %c1_37 = arith.constant 1 : index
    %c1_38 = arith.constant 1 : index
    %c0_39 = arith.constant 0 : index
    %46 = vector.load %arg14[%c0_36, %c1_37, %c1_38, %c0_39] : memref<2x10x10x16xf32, #tpu.memory_space<vmem>>, vector<2x8x8x16xf32>
    tpu.vector_store %arg14[%c0_36, %c1_37, %c1_38, %c0_39], %36 {strides = array<i32>} : memref<2x10x10x16xf32, #tpu.memory_space<vmem>>, vector<2x8x8x16xf32>,
    %c0_40 = arith.constant 0 : index
    %c0_41 = arith.constant 0 : index
    %c0_42 = arith.constant 0 : index
    %c0_43 = arith.constant 0 : index
    %47 = vector.load %arg14[%c0_40, %c0_41, %c0_42, %c0_43] : memref<2x10x10x16xf32, #tpu.memory_space<vmem>>, vector<2x8x8x16xf32>
    %48 = vector.shape_cast %47 : vector<2x8x8x16xf32> to vector<128x16xf32>
    %49 = arith.truncf %48 : vector<128x16xf32> to vector<128x16xbf16>
    %c0_44 = arith.constant 0 : index
    %c0_45 = arith.constant 0 : index
    %c0_46 = arith.constant 0 : index
    %50 = vector.load %arg6[%c0_44, %c0_45, %c0_46] : memref<9x16x32xbf16, #tpu.memory_space<vmem>>, vector<1x16x32xbf16>
    %51 = vector.shape_cast %50 : vector<1x16x32xbf16> to vector<16x32xbf16>
    %cst_47 = arith.constant dense<0.000000e+00> : vector<128x32xf32>
    %52 = tpu.matmul %49, %51, %cst_47 {dimension_numbers = #tpu.dot_dimension_numbers<[1], [0], [0], [1], [0, 0, 1, 1], [], []>} : vector<128x16xbf16>, vector<16x32xbf16>, vector<128x32xf32> -> vector<128x32xf32>
    %53 = arith.addf %37, %52 : vector<128x32xf32>
    %c0_48 = arith.constant 0 : index
    %c0_49 = arith.constant 0 : index
    %c1_50 = arith.constant 1 : index
    %c0_51 = arith.constant 0 : index
    %54 = vector.load %arg14[%c0_48, %c0_49, %c1_50, %c0_51] : memref<2x10x10x16xf32, #tpu.memory_space<vmem>>, vector<2x8x8x16xf32>
    %55 = vector.shape_cast %54 : vector<2x8x8x16xf32> to vector<128x16xf32>
    %56 = arith.truncf %55 : vector<128x16xf32> to vector<128x16xbf16>
    %c1_52 = arith.constant 1 : index
    %c0_53 = arith.constant 0 : index
    %c0_54 = arith.constant 0 : index
    %57 = vector.load %arg6[%c1_52, %c0_53, %c0_54] : memref<9x16x32xbf16, #tpu.memory_space<vmem>>, vector<1x16x32xbf16>
    %58 = vector.shape_cast %57 : vector<1x16x32xbf16> to vector<16x32xbf16>
    %cst_55 = arith.constant dense<0.000000e+00> : vector<128x32xf32>
    %59 = tpu.matmul %56, %58, %cst_55 {dimension_numbers = #tpu.dot_dimension_numbers<[1], [0], [0], [1], [0, 0, 1, 1], [], []>} : vector<128x16xbf16>, vector<16x32xbf16>, vector<128x32xf32> -> vector<128x32xf32>
    %60 = arith.addf %53, %59 : vector<128x32xf32>
    %c0_56 = arith.constant 0 : index
    %c0_57 = arith.constant 0 : index
    %c2 = arith.constant 2 : index
    %c0_58 = arith.constant 0 : index
    %61 = vector.load %arg14[%c0_56, %c0_57, %c2, %c0_58] : memref<2x10x10x16xf32, #tpu.memory_space<vmem>>, vector<2x8x8x16xf32>
    %62 = vector.shape_cast %61 : vector<2x8x8x16xf32> to vector<128x16xf32>
    %63 = arith.truncf %62 : vector<128x16xf32> to vector<128x16xbf16>
    %c2_59 = arith.constant 2 : index
    %c0_60 = arith.constant 0 : index
    %c0_61 = arith.constant 0 : index
    %64 = vector.load %arg6[%c2_59, %c0_60, %c0_61] : memref<9x16x32xbf16, #tpu.memory_space<vmem>>, vector<1x16x32xbf16>
    %65 = vector.shape_cast %64 : vector<1x16x32xbf16> to vector<16x32xbf16>
    %cst_62 = arith.constant dense<0.000000e+00> : vector<128x32xf32>
    %66 = tpu.matmul %63, %65, %cst_62 {dimension_numbers = #tpu.dot_dimension_numbers<[1], [0], [0], [1], [0, 0, 1, 1], [], []>} : vector<128x16xbf16>, vector<16x32xbf16>, vector<128x32xf32> -> vector<128x32xf32>
    %67 = arith.addf %60, %66 : vector<128x32xf32>
    %c0_63 = arith.constant 0 : index
    %c1_64 = arith.constant 1 : index
    %c0_65 = arith.constant 0 : index
    %c0_66 = arith.constant 0 : index
    %68 = vector.load %arg14[%c0_63, %c1_64, %c0_65, %c0_66] : memref<2x10x10x16xf32, #tpu.memory_space<vmem>>, vector<2x8x8x16xf32>
    %69 = vector.shape_cast %68 : vector<2x8x8x16xf32> to vector<128x16xf32>
    %70 = arith.truncf %69 : vector<128x16xf32> to vector<128x16xbf16>
    %c3 = arith.constant 3 : index
    %c0_67 = arith.constant 0 : index
    %c0_68 = arith.constant 0 : index
    %71 = vector.load %arg6[%c3, %c0_67, %c0_68] : memref<9x16x32xbf16, #tpu.memory_space<vmem>>, vector<1x16x32xbf16>
    %72 = vector.shape_cast %71 : vector<1x16x32xbf16> to vector<16x32xbf16>
    %cst_69 = arith.constant dense<0.000000e+00> : vector<128x32xf32>
    %73 = tpu.matmul %70, %72, %cst_69 {dimension_numbers = #tpu.dot_dimension_numbers<[1], [0], [0], [1], [0, 0, 1, 1], [], []>} : vector<128x16xbf16>, vector<16x32xbf16>, vector<128x32xf32> -> vector<128x32xf32>
    %74 = arith.addf %67, %73 : vector<128x32xf32>
    %c0_70 = arith.constant 0 : index
    %c1_71 = arith.constant 1 : index
    %c1_72 = arith.constant 1 : index
    %c0_73 = arith.constant 0 : index
    %75 = vector.load %arg14[%c0_70, %c1_71, %c1_72, %c0_73] : memref<2x10x10x16xf32, #tpu.memory_space<vmem>>, vector<2x8x8x16xf32>
    %76 = vector.shape_cast %75 : vector<2x8x8x16xf32> to vector<128x16xf32>
    %77 = arith.truncf %76 : vector<128x16xf32> to vector<128x16xbf16>
    %c4 = arith.constant 4 : index
    %c0_74 = arith.constant 0 : index
    %c0_75 = arith.constant 0 : index
    %78 = vector.load %arg6[%c4, %c0_74, %c0_75] : memref<9x16x32xbf16, #tpu.memory_space<vmem>>, vector<1x16x32xbf16>
    %79 = vector.shape_cast %78 : vector<1x16x32xbf16> to vector<16x32xbf16>
    %cst_76 = arith.constant dense<0.000000e+00> : vector<128x32xf32>
    %80 = tpu.matmul %77, %79, %cst_76 {dimension_numbers = #tpu.dot_dimension_numbers<[1], [0], [0], [1], [0, 0, 1, 1], [], []>} : vector<128x16xbf16>, vector<16x32xbf16>, vector<128x32xf32> -> vector<128x32xf32>
    %81 = arith.addf %74, %80 : vector<128x32xf32>
    %c0_77 = arith.constant 0 : index
    %c1_78 = arith.constant 1 : index
    %c2_79 = arith.constant 2 : index
    %c0_80 = arith.constant 0 : index
    %82 = vector.load %arg14[%c0_77, %c1_78, %c2_79, %c0_80] : memref<2x10x10x16xf32, #tpu.memory_space<vmem>>, vector<2x8x8x16xf32>
    %83 = vector.shape_cast %82 : vector<2x8x8x16xf32> to vector<128x16xf32>
    %84 = arith.truncf %83 : vector<128x16xf32> to vector<128x16xbf16>
    %c5 = arith.constant 5 : index
    %c0_81 = arith.constant 0 : index
    %c0_82 = arith.constant 0 : index
    %85 = vector.load %arg6[%c5, %c0_81, %c0_82] : memref<9x16x32xbf16, #tpu.memory_space<vmem>>, vector<1x16x32xbf16>
    %86 = vector.shape_cast %85 : vector<1x16x32xbf16> to vector<16x32xbf16>
    %cst_83 = arith.constant dense<0.000000e+00> : vector<128x32xf32>
    %87 = tpu.matmul %84, %86, %cst_83 {dimension_numbers = #tpu.dot_dimension_numbers<[1], [0], [0], [1], [0, 0, 1, 1], [], []>} : vector<128x16xbf16>, vector<16x32xbf16>, vector<128x32xf32> -> vector<128x32xf32>
    %88 = arith.addf %81, %87 : vector<128x32xf32>
    %c0_84 = arith.constant 0 : index
    %c2_85 = arith.constant 2 : index
    %c0_86 = arith.constant 0 : index
    %c0_87 = arith.constant 0 : index
    %89 = vector.load %arg14[%c0_84, %c2_85, %c0_86, %c0_87] : memref<2x10x10x16xf32, #tpu.memory_space<vmem>>, vector<2x8x8x16xf32>
    %90 = vector.shape_cast %89 : vector<2x8x8x16xf32> to vector<128x16xf32>
    %91 = arith.truncf %90 : vector<128x16xf32> to vector<128x16xbf16>
    %c6 = arith.constant 6 : index
    %c0_88 = arith.constant 0 : index
    %c0_89 = arith.constant 0 : index
    %92 = vector.load %arg6[%c6, %c0_88, %c0_89] : memref<9x16x32xbf16, #tpu.memory_space<vmem>>, vector<1x16x32xbf16>
    %93 = vector.shape_cast %92 : vector<1x16x32xbf16> to vector<16x32xbf16>
    %cst_90 = arith.constant dense<0.000000e+00> : vector<128x32xf32>
    %94 = tpu.matmul %91, %93, %cst_90 {dimension_numbers = #tpu.dot_dimension_numbers<[1], [0], [0], [1], [0, 0, 1, 1], [], []>} : vector<128x16xbf16>, vector<16x32xbf16>, vector<128x32xf32> -> vector<128x32xf32>
    %95 = arith.addf %88, %94 : vector<128x32xf32>
    %c0_91 = arith.constant 0 : index
    %c2_92 = arith.constant 2 : index
    %c1_93 = arith.constant 1 : index
    %c0_94 = arith.constant 0 : index
    %96 = vector.load %arg14[%c0_91, %c2_92, %c1_93, %c0_94] : memref<2x10x10x16xf32, #tpu.memory_space<vmem>>, vector<2x8x8x16xf32>
    %97 = vector.shape_cast %96 : vector<2x8x8x16xf32> to vector<128x16xf32>
    %98 = arith.truncf %97 : vector<128x16xf32> to vector<128x16xbf16>
    %c7 = arith.constant 7 : index
    %c0_95 = arith.constant 0 : index
    %c0_96 = arith.constant 0 : index
    %99 = vector.load %arg6[%c7, %c0_95, %c0_96] : memref<9x16x32xbf16, #tpu.memory_space<vmem>>, vector<1x16x32xbf16>
    %100 = vector.shape_cast %99 : vector<1x16x32xbf16> to vector<16x32xbf16>
    %cst_97 = arith.constant dense<0.000000e+00> : vector<128x32xf32>
    %101 = tpu.matmul %98, %100, %cst_97 {dimension_numbers = #tpu.dot_dimension_numbers<[1], [0], [0], [1], [0, 0, 1, 1], [], []>} : vector<128x16xbf16>, vector<16x32xbf16>, vector<128x32xf32> -> vector<128x32xf32>
    %102 = arith.addf %95, %101 : vector<128x32xf32>
    %c0_98 = arith.constant 0 : index
    %c2_99 = arith.constant 2 : index
    %c2_100 = arith.constant 2 : index
    %c0_101 = arith.constant 0 : index
    %103 = vector.load %arg14[%c0_98, %c2_99, %c2_100, %c0_101] : memref<2x10x10x16xf32, #tpu.memory_space<vmem>>, vector<2x8x8x16xf32>
    %104 = vector.shape_cast %103 : vector<2x8x8x16xf32> to vector<128x16xf32>
    %105 = arith.truncf %104 : vector<128x16xf32> to vector<128x16xbf16>
    %c8 = arith.constant 8 : index
    %c0_102 = arith.constant 0 : index
    %c0_103 = arith.constant 0 : index
    %106 = vector.load %arg6[%c8, %c0_102, %c0_103] : memref<9x16x32xbf16, #tpu.memory_space<vmem>>, vector<1x16x32xbf16>
    %107 = vector.shape_cast %106 : vector<1x16x32xbf16> to vector<16x32xbf16>
    %cst_104 = arith.constant dense<0.000000e+00> : vector<128x32xf32>
    %108 = tpu.matmul %105, %107, %cst_104 {dimension_numbers = #tpu.dot_dimension_numbers<[1], [0], [0], [1], [0, 0, 1, 1], [], []>} : vector<128x16xbf16>, vector<16x32xbf16>, vector<128x32xf32> -> vector<128x32xf32>
    %109 = arith.addf %102, %108 : vector<128x32xf32>
    %110 = vector.shape_cast %109 : vector<128x32xf32> to vector<2x64x32xf32>
    %c0_105 = arith.constant 0 : index
    %c0_106 = arith.constant 0 : index
    %c0_107 = arith.constant 0 : index
    %111 = vector.load %arg2[%c0_105, %c0_106, %c0_107] : memref<2x1x32xf32, #tpu.memory_space<vmem>>, vector<2x1x32xf32>
    %112 = vector.broadcast %111 : vector<2x1x32xf32> to vector<2x64x32xf32>
    %113 = arith.addf %110, %112 : vector<2x64x32xf32>
    %c0_108 = arith.constant 0 : index
    %c0_109 = arith.constant 0 : index
    %114 = vector.load %arg7[%c0_108, %c0_109] : memref<1x32xf32, #tpu.memory_space<vmem>>, vector<1x32xf32>
    %c0_110 = arith.constant 0 : index
    %c0_111 = arith.constant 0 : index
    %115 = vector.load %arg8[%c0_110, %c0_111] : memref<1x32xf32, #tpu.memory_space<vmem>>, vector<1x32xf32>
    %c0_112 = arith.constant 0 : index
    %c0_113 = arith.constant 0 : index
    %116 = vector.load %arg9[%c0_112, %c0_113] : memref<32x32xf32, #tpu.memory_space<vmem>>, vector<32x32xf32>
    %cst_114 = arith.constant dense<0.000000e+00> : vector<2x32xf32>
    %117 = vector.multi_reduction <add>, %113, %cst_114 [1] : vector<2x64x32xf32> to vector<2x32xf32>
    %cst_115 = arith.constant dense<0.000000e+00> : vector<2x32xf32>
    %118 = tpu.matmul %117, %116, %cst_115 {dimension_numbers = #tpu.dot_dimension_numbers<[1], [0], [0], [1], [0, 0, 1, 1], [], []>} : vector<2x32xf32>, vector<32x32xf32>, vector<2x32xf32> -> vector<2x32xf32>
    %cst_116 = arith.constant 3.906250e-03 : f32
    %119 = vector.broadcast %cst_116 : f32 to vector<2x32xf32>
    %120 = arith.mulf %118, %119 : vector<2x32xf32>
    %121 = vector.shape_cast %120 : vector<2x32xf32> to vector<2x1x32xf32>
    %122 = vector.broadcast %121 : vector<2x1x32xf32> to vector<2x64x32xf32>
    %123 = arith.subf %113, %122 : vector<2x64x32xf32>
    %124 = arith.mulf %123, %123 : vector<2x64x32xf32>
    %cst_117 = arith.constant dense<0.000000e+00> : vector<2x32xf32>
    %125 = vector.multi_reduction <add>, %124, %cst_117 [1] : vector<2x64x32xf32> to vector<2x32xf32>
    %cst_118 = arith.constant dense<0.000000e+00> : vector<2x32xf32>
    %126 = tpu.matmul %125, %116, %cst_118 {dimension_numbers = #tpu.dot_dimension_numbers<[1], [0], [0], [1], [0, 0, 1, 1], [], []>} : vector<2x32xf32>, vector<32x32xf32>, vector<2x32xf32> -> vector<2x32xf32>
    %cst_119 = arith.constant 3.906250e-03 : f32
    %127 = vector.broadcast %cst_119 : f32 to vector<2x32xf32>
    %128 = arith.mulf %126, %127 : vector<2x32xf32>
    %cst_120 = arith.constant 9.99999974E-6 : f32
    %129 = vector.broadcast %cst_120 : f32 to vector<2x32xf32>
    %130 = arith.addf %128, %129 : vector<2x32xf32>
    %131 = math.rsqrt %130 : vector<2x32xf32>
    %132 = vector.shape_cast %131 : vector<2x32xf32> to vector<2x1x32xf32>
    %133 = vector.broadcast %132 : vector<2x1x32xf32> to vector<2x64x32xf32>
    %134 = arith.mulf %123, %133 : vector<2x64x32xf32>
    %135 = vector.shape_cast %114 : vector<1x32xf32> to vector<1x1x32xf32>
    %136 = vector.broadcast %135 : vector<1x1x32xf32> to vector<2x64x32xf32>
    %137 = arith.mulf %134, %136 : vector<2x64x32xf32>
    %138 = vector.shape_cast %115 : vector<1x32xf32> to vector<1x1x32xf32>
    %139 = vector.broadcast %138 : vector<1x1x32xf32> to vector<2x64x32xf32>
    %140 = arith.addf %137, %139 : vector<2x64x32xf32>
    %cst_121 = arith.constant 0.000000e+00 : f32
    %141 = vector.broadcast %cst_121 : f32 to vector<2x64x32xf32>
    %142 = arith.subf %141, %140 : vector<2x64x32xf32>
    %143 = math.exp %142 : vector<2x64x32xf32>
    %cst_122 = arith.constant 1.000000e+00 : f32
    %144 = vector.broadcast %cst_122 : f32 to vector<2x64x32xf32>
    %145 = arith.addf %144, %143 : vector<2x64x32xf32>
    %146 = tpu.reciprocal %145 {approx = true} : vector<2x64x32xf32> -> vector<2x64x32xf32>
    %147 = arith.mulf %140, %146 : vector<2x64x32xf32>
    %148 = vector.shape_cast %1 : vector<2x64x16xf32> to vector<128x16xf32>
    %149 = arith.truncf %148 : vector<128x16xf32> to vector<128x16xbf16>
    %c0_123 = arith.constant 0 : index
    %c0_124 = arith.constant 0 : index
    %150 = vector.load %arg11[%c0_123, %c0_124] : memref<16x32xbf16, #tpu.memory_space<vmem>>, vector<16x32xbf16>
    %cst_125 = arith.constant dense<0.000000e+00> : vector<128x32xf32>
    %151 = tpu.matmul %149, %150, %cst_125 {dimension_numbers = #tpu.dot_dimension_numbers<[1], [0], [0], [1], [0, 0, 1, 1], [], []>} : vector<128x16xbf16>, vector<16x32xbf16>, vector<128x32xf32> -> vector<128x32xf32>
    %152 = vector.shape_cast %147 : vector<2x64x32xf32> to vector<2x8x8x32xf32>
    %cst_126 = arith.constant 0.000000e+00 : f32
    %153 = vector.broadcast %cst_126 : f32 to vector<2x1x10x32xf32>
    %c0_127 = arith.constant 0 : index
    %c0_128 = arith.constant 0 : index
    %c0_129 = arith.constant 0 : index
    %c0_130 = arith.constant 0 : index
    %154 = vector.load %arg15[%c0_127, %c0_128, %c0_129, %c0_130] : memref<2x10x10x32xf32, #tpu.memory_space<vmem>>, vector<2x1x10x32xf32>
    tpu.vector_store %arg15[%c0_127, %c0_128, %c0_129, %c0_130], %153 {strides = array<i32>} : memref<2x10x10x32xf32, #tpu.memory_space<vmem>>, vector<2x1x10x32xf32>,
    %cst_131 = arith.constant 0.000000e+00 : f32
    %155 = vector.broadcast %cst_131 : f32 to vector<2x1x10x32xf32>
    %c0_132 = arith.constant 0 : index
    %c9_133 = arith.constant 9 : index
    %c0_134 = arith.constant 0 : index
    %c0_135 = arith.constant 0 : index
    %156 = vector.load %arg15[%c0_132, %c9_133, %c0_134, %c0_135] : memref<2x10x10x32xf32, #tpu.memory_space<vmem>>, vector<2x1x10x32xf32>
    tpu.vector_store %arg15[%c0_132, %c9_133, %c0_134, %c0_135], %155 {strides = array<i32>} : memref<2x10x10x32xf32, #tpu.memory_space<vmem>>, vector<2x1x10x32xf32>,
    %cst_136 = arith.constant 0.000000e+00 : f32
    %157 = vector.broadcast %cst_136 : f32 to vector<2x8x1x32xf32>
    %c0_137 = arith.constant 0 : index
    %c1_138 = arith.constant 1 : index
    %c0_139 = arith.constant 0 : index
    %c0_140 = arith.constant 0 : index
    %158 = vector.load %arg15[%c0_137, %c1_138, %c0_139, %c0_140] : memref<2x10x10x32xf32, #tpu.memory_space<vmem>>, vector<2x8x1x32xf32>
    tpu.vector_store %arg15[%c0_137, %c1_138, %c0_139, %c0_140], %157 {strides = array<i32>} : memref<2x10x10x32xf32, #tpu.memory_space<vmem>>, vector<2x8x1x32xf32>,
    %cst_141 = arith.constant 0.000000e+00 : f32
    %159 = vector.broadcast %cst_141 : f32 to vector<2x8x1x32xf32>
    %c0_142 = arith.constant 0 : index
    %c1_143 = arith.constant 1 : index
    %c9_144 = arith.constant 9 : index
    %c0_145 = arith.constant 0 : index
    %160 = vector.load %arg15[%c0_142, %c1_143, %c9_144, %c0_145] : memref<2x10x10x32xf32, #tpu.memory_space<vmem>>, vector<2x8x1x32xf32>
    tpu.vector_store %arg15[%c0_142, %c1_143, %c9_144, %c0_145], %159 {strides = array<i32>} : memref<2x10x10x32xf32, #tpu.memory_space<vmem>>, vector<2x8x1x32xf32>,
    %c0_146 = arith.constant 0 : index
    %c1_147 = arith.constant 1 : index
    %c1_148 = arith.constant 1 : index
    %c0_149 = arith.constant 0 : index
    %161 = vector.load %arg15[%c0_146, %c1_147, %c1_148, %c0_149] : memref<2x10x10x32xf32, #tpu.memory_space<vmem>>, vector<2x8x8x32xf32>
    tpu.vector_store %arg15[%c0_146, %c1_147, %c1_148, %c0_149], %152 {strides = array<i32>} : memref<2x10x10x32xf32, #tpu.memory_space<vmem>>, vector<2x8x8x32xf32>,
    %c0_150 = arith.constant 0 : index
    %c0_151 = arith.constant 0 : index
    %c0_152 = arith.constant 0 : index
    %c0_153 = arith.constant 0 : index
    %162 = vector.load %arg15[%c0_150, %c0_151, %c0_152, %c0_153] : memref<2x10x10x32xf32, #tpu.memory_space<vmem>>, vector<2x8x8x32xf32>
    %163 = vector.shape_cast %162 : vector<2x8x8x32xf32> to vector<128x32xf32>
    %164 = arith.truncf %163 : vector<128x32xf32> to vector<128x32xbf16>
    %c0_154 = arith.constant 0 : index
    %c0_155 = arith.constant 0 : index
    %c0_156 = arith.constant 0 : index
    %165 = vector.load %arg10[%c0_154, %c0_155, %c0_156] : memref<9x32x32xbf16, #tpu.memory_space<vmem>>, vector<1x32x32xbf16>
    %166 = vector.shape_cast %165 : vector<1x32x32xbf16> to vector<32x32xbf16>
    %cst_157 = arith.constant dense<0.000000e+00> : vector<128x32xf32>
    %167 = tpu.matmul %164, %166, %cst_157 {dimension_numbers = #tpu.dot_dimension_numbers<[1], [0], [0], [1], [0, 0, 1, 1], [], []>} : vector<128x32xbf16>, vector<32x32xbf16>, vector<128x32xf32> -> vector<128x32xf32>
    %168 = arith.addf %151, %167 : vector<128x32xf32>
    %c0_158 = arith.constant 0 : index
    %c0_159 = arith.constant 0 : index
    %c1_160 = arith.constant 1 : index
    %c0_161 = arith.constant 0 : index
    %169 = vector.load %arg15[%c0_158, %c0_159, %c1_160, %c0_161] : memref<2x10x10x32xf32, #tpu.memory_space<vmem>>, vector<2x8x8x32xf32>
    %170 = vector.shape_cast %169 : vector<2x8x8x32xf32> to vector<128x32xf32>
    %171 = arith.truncf %170 : vector<128x32xf32> to vector<128x32xbf16>
    %c1_162 = arith.constant 1 : index
    %c0_163 = arith.constant 0 : index
    %c0_164 = arith.constant 0 : index
    %172 = vector.load %arg10[%c1_162, %c0_163, %c0_164] : memref<9x32x32xbf16, #tpu.memory_space<vmem>>, vector<1x32x32xbf16>
    %173 = vector.shape_cast %172 : vector<1x32x32xbf16> to vector<32x32xbf16>
    %cst_165 = arith.constant dense<0.000000e+00> : vector<128x32xf32>
    %174 = tpu.matmul %171, %173, %cst_165 {dimension_numbers = #tpu.dot_dimension_numbers<[1], [0], [0], [1], [0, 0, 1, 1], [], []>} : vector<128x32xbf16>, vector<32x32xbf16>, vector<128x32xf32> -> vector<128x32xf32>
    %175 = arith.addf %168, %174 : vector<128x32xf32>
    %c0_166 = arith.constant 0 : index
    %c0_167 = arith.constant 0 : index
    %c2_168 = arith.constant 2 : index
    %c0_169 = arith.constant 0 : index
    %176 = vector.load %arg15[%c0_166, %c0_167, %c2_168, %c0_169] : memref<2x10x10x32xf32, #tpu.memory_space<vmem>>, vector<2x8x8x32xf32>
    %177 = vector.shape_cast %176 : vector<2x8x8x32xf32> to vector<128x32xf32>
    %178 = arith.truncf %177 : vector<128x32xf32> to vector<128x32xbf16>
    %c2_170 = arith.constant 2 : index
    %c0_171 = arith.constant 0 : index
    %c0_172 = arith.constant 0 : index
    %179 = vector.load %arg10[%c2_170, %c0_171, %c0_172] : memref<9x32x32xbf16, #tpu.memory_space<vmem>>, vector<1x32x32xbf16>
    %180 = vector.shape_cast %179 : vector<1x32x32xbf16> to vector<32x32xbf16>
    %cst_173 = arith.constant dense<0.000000e+00> : vector<128x32xf32>
    %181 = tpu.matmul %178, %180, %cst_173 {dimension_numbers = #tpu.dot_dimension_numbers<[1], [0], [0], [1], [0, 0, 1, 1], [], []>} : vector<128x32xbf16>, vector<32x32xbf16>, vector<128x32xf32> -> vector<128x32xf32>
    %182 = arith.addf %175, %181 : vector<128x32xf32>
    %c0_174 = arith.constant 0 : index
    %c1_175 = arith.constant 1 : index
    %c0_176 = arith.constant 0 : index
    %c0_177 = arith.constant 0 : index
    %183 = vector.load %arg15[%c0_174, %c1_175, %c0_176, %c0_177] : memref<2x10x10x32xf32, #tpu.memory_space<vmem>>, vector<2x8x8x32xf32>
    %184 = vector.shape_cast %183 : vector<2x8x8x32xf32> to vector<128x32xf32>
    %185 = arith.truncf %184 : vector<128x32xf32> to vector<128x32xbf16>
    %c3_178 = arith.constant 3 : index
    %c0_179 = arith.constant 0 : index
    %c0_180 = arith.constant 0 : index
    %186 = vector.load %arg10[%c3_178, %c0_179, %c0_180] : memref<9x32x32xbf16, #tpu.memory_space<vmem>>, vector<1x32x32xbf16>
    %187 = vector.shape_cast %186 : vector<1x32x32xbf16> to vector<32x32xbf16>
    %cst_181 = arith.constant dense<0.000000e+00> : vector<128x32xf32>
    %188 = tpu.matmul %185, %187, %cst_181 {dimension_numbers = #tpu.dot_dimension_numbers<[1], [0], [0], [1], [0, 0, 1, 1], [], []>} : vector<128x32xbf16>, vector<32x32xbf16>, vector<128x32xf32> -> vector<128x32xf32>
    %189 = arith.addf %182, %188 : vector<128x32xf32>
    %c0_182 = arith.constant 0 : index
    %c1_183 = arith.constant 1 : index
    %c1_184 = arith.constant 1 : index
    %c0_185 = arith.constant 0 : index
    %190 = vector.load %arg15[%c0_182, %c1_183, %c1_184, %c0_185] : memref<2x10x10x32xf32, #tpu.memory_space<vmem>>, vector<2x8x8x32xf32>
    %191 = vector.shape_cast %190 : vector<2x8x8x32xf32> to vector<128x32xf32>
    %192 = arith.truncf %191 : vector<128x32xf32> to vector<128x32xbf16>
    %c4_186 = arith.constant 4 : index
    %c0_187 = arith.constant 0 : index
    %c0_188 = arith.constant 0 : index
    %193 = vector.load %arg10[%c4_186, %c0_187, %c0_188] : memref<9x32x32xbf16, #tpu.memory_space<vmem>>, vector<1x32x32xbf16>
    %194 = vector.shape_cast %193 : vector<1x32x32xbf16> to vector<32x32xbf16>
    %cst_189 = arith.constant dense<0.000000e+00> : vector<128x32xf32>
    %195 = tpu.matmul %192, %194, %cst_189 {dimension_numbers = #tpu.dot_dimension_numbers<[1], [0], [0], [1], [0, 0, 1, 1], [], []>} : vector<128x32xbf16>, vector<32x32xbf16>, vector<128x32xf32> -> vector<128x32xf32>
    %196 = arith.addf %189, %195 : vector<128x32xf32>
    %c0_190 = arith.constant 0 : index
    %c1_191 = arith.constant 1 : index
    %c2_192 = arith.constant 2 : index
    %c0_193 = arith.constant 0 : index
    %197 = vector.load %arg15[%c0_190, %c1_191, %c2_192, %c0_193] : memref<2x10x10x32xf32, #tpu.memory_space<vmem>>, vector<2x8x8x32xf32>
    %198 = vector.shape_cast %197 : vector<2x8x8x32xf32> to vector<128x32xf32>
    %199 = arith.truncf %198 : vector<128x32xf32> to vector<128x32xbf16>
    %c5_194 = arith.constant 5 : index
    %c0_195 = arith.constant 0 : index
    %c0_196 = arith.constant 0 : index
    %200 = vector.load %arg10[%c5_194, %c0_195, %c0_196] : memref<9x32x32xbf16, #tpu.memory_space<vmem>>, vector<1x32x32xbf16>
    %201 = vector.shape_cast %200 : vector<1x32x32xbf16> to vector<32x32xbf16>
    %cst_197 = arith.constant dense<0.000000e+00> : vector<128x32xf32>
    %202 = tpu.matmul %199, %201, %cst_197 {dimension_numbers = #tpu.dot_dimension_numbers<[1], [0], [0], [1], [0, 0, 1, 1], [], []>} : vector<128x32xbf16>, vector<32x32xbf16>, vector<128x32xf32> -> vector<128x32xf32>
    %203 = arith.addf %196, %202 : vector<128x32xf32>
    %c0_198 = arith.constant 0 : index
    %c2_199 = arith.constant 2 : index
    %c0_200 = arith.constant 0 : index
    %c0_201 = arith.constant 0 : index
    %204 = vector.load %arg15[%c0_198, %c2_199, %c0_200, %c0_201] : memref<2x10x10x32xf32, #tpu.memory_space<vmem>>, vector<2x8x8x32xf32>
    %205 = vector.shape_cast %204 : vector<2x8x8x32xf32> to vector<128x32xf32>
    %206 = arith.truncf %205 : vector<128x32xf32> to vector<128x32xbf16>
    %c6_202 = arith.constant 6 : index
    %c0_203 = arith.constant 0 : index
    %c0_204 = arith.constant 0 : index
    %207 = vector.load %arg10[%c6_202, %c0_203, %c0_204] : memref<9x32x32xbf16, #tpu.memory_space<vmem>>, vector<1x32x32xbf16>
    %208 = vector.shape_cast %207 : vector<1x32x32xbf16> to vector<32x32xbf16>
    %cst_205 = arith.constant dense<0.000000e+00> : vector<128x32xf32>
    %209 = tpu.matmul %206, %208, %cst_205 {dimension_numbers = #tpu.dot_dimension_numbers<[1], [0], [0], [1], [0, 0, 1, 1], [], []>} : vector<128x32xbf16>, vector<32x32xbf16>, vector<128x32xf32> -> vector<128x32xf32>
    %210 = arith.addf %203, %209 : vector<128x32xf32>
    %c0_206 = arith.constant 0 : index
    %c2_207 = arith.constant 2 : index
    %c1_208 = arith.constant 1 : index
    %c0_209 = arith.constant 0 : index
    %211 = vector.load %arg15[%c0_206, %c2_207, %c1_208, %c0_209] : memref<2x10x10x32xf32, #tpu.memory_space<vmem>>, vector<2x8x8x32xf32>
    %212 = vector.shape_cast %211 : vector<2x8x8x32xf32> to vector<128x32xf32>
    %213 = arith.truncf %212 : vector<128x32xf32> to vector<128x32xbf16>
    %c7_210 = arith.constant 7 : index
    %c0_211 = arith.constant 0 : index
    %c0_212 = arith.constant 0 : index
    %214 = vector.load %arg10[%c7_210, %c0_211, %c0_212] : memref<9x32x32xbf16, #tpu.memory_space<vmem>>, vector<1x32x32xbf16>
    %215 = vector.shape_cast %214 : vector<1x32x32xbf16> to vector<32x32xbf16>
    %cst_213 = arith.constant dense<0.000000e+00> : vector<128x32xf32>
    %216 = tpu.matmul %213, %215, %cst_213 {dimension_numbers = #tpu.dot_dimension_numbers<[1], [0], [0], [1], [0, 0, 1, 1], [], []>} : vector<128x32xbf16>, vector<32x32xbf16>, vector<128x32xf32> -> vector<128x32xf32>
    %217 = arith.addf %210, %216 : vector<128x32xf32>
    %c0_214 = arith.constant 0 : index
    %c2_215 = arith.constant 2 : index
    %c2_216 = arith.constant 2 : index
    %c0_217 = arith.constant 0 : index
    %218 = vector.load %arg15[%c0_214, %c2_215, %c2_216, %c0_217] : memref<2x10x10x32xf32, #tpu.memory_space<vmem>>, vector<2x8x8x32xf32>
    %219 = vector.shape_cast %218 : vector<2x8x8x32xf32> to vector<128x32xf32>
    %220 = arith.truncf %219 : vector<128x32xf32> to vector<128x32xbf16>
    %c8_218 = arith.constant 8 : index
    %c0_219 = arith.constant 0 : index
    %c0_220 = arith.constant 0 : index
    %221 = vector.load %arg10[%c8_218, %c0_219, %c0_220] : memref<9x32x32xbf16, #tpu.memory_space<vmem>>, vector<1x32x32xbf16>
    %222 = vector.shape_cast %221 : vector<1x32x32xbf16> to vector<32x32xbf16>
    %cst_221 = arith.constant dense<0.000000e+00> : vector<128x32xf32>
    %223 = tpu.matmul %220, %222, %cst_221 {dimension_numbers = #tpu.dot_dimension_numbers<[1], [0], [0], [1], [0, 0, 1, 1], [], []>} : vector<128x32xbf16>, vector<32x32xbf16>, vector<128x32xf32> -> vector<128x32xf32>
    %224 = arith.addf %217, %223 : vector<128x32xf32>
    %c0_222 = arith.constant 0 : index
    %c0_223 = arith.constant 0 : index
    %225 = vector.load %arg12[%c0_222, %c0_223] : memref<1x32xf32, #tpu.memory_space<vmem>>, vector<1x32xf32>
    %226 = vector.broadcast %225 : vector<1x32xf32> to vector<128x32xf32>
    %227 = arith.addf %224, %226 : vector<128x32xf32>
    %228 = vector.shape_cast %227 : vector<128x32xf32> to vector<2x8x8x32xf32>
    %c0_224 = arith.constant 0 : index
    %c0_225 = arith.constant 0 : index
    %c0_226 = arith.constant 0 : index
    %c0_227 = arith.constant 0 : index
    %229 = vector.load %arg13[%c0_224, %c0_225, %c0_226, %c0_227] : memref<2x8x8x32xf32, #tpu.memory_space<vmem>>, vector<2x8x8x32xf32>
    tpu.vector_store %arg13[%c0_224, %c0_225, %c0_226, %c0_227], %228 {strides = array<i32>} : memref<2x8x8x32xf32, #tpu.memory_space<vmem>>, vector<2x8x8x32xf32>,
    return
  }
  func.func @transform_0(%arg0: i32) -> (i32, i32, i32, i32) {
    %c0_i32 = arith.constant 0 : i32
    %c0_i32_0 = arith.constant 0 : i32
    %c0_i32_1 = arith.constant 0 : i32
    %c0_i32_2 = arith.constant 0 : i32
    return %arg0, %c0_i32, %c0_i32_0, %c0_i32_1 : i32, i32, i32, i32
  }
  func.func @transform_1(%arg0: i32) -> (i32, i32, i32) {
    %c0_i32 = arith.constant 0 : i32
    %c0_i32_0 = arith.constant 0 : i32
    %c0_i32_1 = arith.constant 0 : i32
    return %arg0, %c0_i32, %c0_i32_0 : i32, i32, i32
  }
  func.func @transform_2(%arg0: i32) -> (i32, i32) {
    %c0_i32 = arith.constant 0 : i32
    %c0_i32_0 = arith.constant 0 : i32
    %c0_i32_1 = arith.constant 0 : i32
    return %c0_i32, %c0_i32_0 : i32, i32
  }
  func.func @transform_3(%arg0: i32) -> (i32, i32) {
    %c0_i32 = arith.constant 0 : i32
    %c0_i32_0 = arith.constant 0 : i32
    %c0_i32_1 = arith.constant 0 : i32
    return %c0_i32, %c0_i32_0 : i32, i32
  }
  func.func @transform_4(%arg0: i32) -> (i32, i32) {
    %c0_i32 = arith.constant 0 : i32
    %c0_i32_0 = arith.constant 0 : i32
    %c0_i32_1 = arith.constant 0 : i32
    return %c0_i32, %c0_i32_0 : i32, i32
  }
  func.func @transform_5(%arg0: i32) -> (i32, i32, i32) {
    %c0_i32 = arith.constant 0 : i32
    %c0_i32_0 = arith.constant 0 : i32
    %c0_i32_1 = arith.constant 0 : i32
    %c0_i32_2 = arith.constant 0 : i32
    return %c0_i32, %c0_i32_0, %c0_i32_1 : i32, i32, i32
  }
  func.func @transform_6(%arg0: i32) -> (i32, i32) {
    %c0_i32 = arith.constant 0 : i32
    %c0_i32_0 = arith.constant 0 : i32
    %c0_i32_1 = arith.constant 0 : i32
    return %c0_i32, %c0_i32_0 : i32, i32
  }
  func.func @transform_7(%arg0: i32) -> (i32, i32) {
    %c0_i32 = arith.constant 0 : i32
    %c0_i32_0 = arith.constant 0 : i32
    %c0_i32_1 = arith.constant 0 : i32
    return %c0_i32, %c0_i32_0 : i32, i32
  }
  func.func @transform_8(%arg0: i32) -> (i32, i32) {
    %c0_i32 = arith.constant 0 : i32
    %c0_i32_0 = arith.constant 0 : i32
    %c0_i32_1 = arith.constant 0 : i32
    return %c0_i32, %c0_i32_0 : i32, i32
  }
  func.func @transform_9(%arg0: i32) -> (i32, i32, i32) {
    %c0_i32 = arith.constant 0 : i32
    %c0_i32_0 = arith.constant 0 : i32
    %c0_i32_1 = arith.constant 0 : i32
    %c0_i32_2 = arith.constant 0 : i32
    return %c0_i32, %c0_i32_0, %c0_i32_1 : i32, i32, i32
  }
  func.func @transform_10(%arg0: i32) -> (i32, i32) {
    %c0_i32 = arith.constant 0 : i32
    %c0_i32_0 = arith.constant 0 : i32
    %c0_i32_1 = arith.constant 0 : i32
    return %c0_i32, %c0_i32_0 : i32, i32
  }
  func.func @transform_11(%arg0: i32) -> (i32, i32) {
    %c0_i32 = arith.constant 0 : i32
    %c0_i32_0 = arith.constant 0 : i32
    %c0_i32_1 = arith.constant 0 : i32
    return %c0_i32, %c0_i32_0 : i32, i32
  }
  func.func @transform_12(%arg0: i32) -> (i32, i32, i32, i32) {
    %c0_i32 = arith.constant 0 : i32
    %c0_i32_0 = arith.constant 0 : i32
    %c0_i32_1 = arith.constant 0 : i32
    %c0_i32_2 = arith.constant 0 : i32
    return %arg0, %c0_i32, %c0_i32_0, %c0_i32_1 : i32, i32, i32, i32
  }
}

</mosaic_0001>

<bundles_post_ra>
// kernel: resblock_forward.1
= control target key start
LH: loop header
LB: loop body
LE: loop exit
PB: predicated region body
PF: predicated region fallthrough
CT: control target
= control target key end

     0   :  { %v7646_v3 = vmov 0.0|0.0   ;;  %vm5815_vm0 = vmmov 0   ;;  %v7648_v5 = vmov 0.0   ;;  %vm63_vm1 = vcmask 130048   ;;  %s7633_s0 = inlined_call_operand.vmem [shape: f32[2,8,8,16], index: 0, kind: input, shape index: {}]   ;;  %s7634_s1 = inlined_call_operand.vmem [shape: f32[2,1,32], index: 1, kind: input, shape index: {}]   ;;  %s7635_s2 = inlined_call_operand.vmem [shape: f32[1,16], index: 2, kind: input, shape index: {}]   ;;  %s7636_s3 = inlined_call_operand.vmem [shape: f32[1,16], index: 3, kind: input, shape index: {}]   ;;  %s7637_s4 = inlined_call_operand.vmem [shape: f32[16,16], index: 4, kind: input, shape index: {}]   ;;  %s7638_s5 = inlined_call_operand.vmem [shape: bf16[9,16,32], index: 5, kind: input, shape index: {}]   ;;  %s7639_s6 = inlined_call_operand.vmem [shape: f32[1,32], index: 6, kind: input, shape index: {}]   ;;  %s7640_s7 = inlined_call_operand.vmem [shape: f32[1,32], index: 7, kind: input, shape index: {}]   ;;  %s7641_s8 = inlined_call_operand.vmem [shape: f32[32,32], index: 8, kind: input, shape index: {}]   ;;  %s7642_s9 = inlined_call_operand.vmem [shape: bf16[9,32,32], index: 9, kind: input, shape index: {}]   ;;  %s7643_s10 = inlined_call_operand.vmem [shape: bf16[16,32], index: 10, kind: input, shape index: {}]   ;;  %s7644_s11 = inlined_call_operand.vmem [shape: f32[1,32], index: 11, kind: input, shape index: {}]   ;;  %s7645_s12 = inlined_call_operand.hbm [shape: f32[2,8,8,32], index: 12, kind: output, shape index: {}]  }
   0x1   :  { %v61_v0 = vld [vmem:[%s7637_s4] sm:$0xff]  ;;  %v62_v1 = vld [vmem:[%s7637_s4 + $0x8] sm:$0xff]  ;;  %5313 = vmatprep.subr.bf16.mxu0 %v7646_v3  ;;  %4921 = vmatprep.mubr.msk.f32.mxu0 %vm5815_vm0, %v7648_v5  ;;  %v5908_v7 = vld [vmem:[%s7633_s0 + $0x10] sm:$0xff]  ;;  %557 = vst.msk [vmem:[#allocation2] sm:$0xff] %vm63_vm1, %v7648_v5 }
   0x2   :  { %v5895_v2 = vld [vmem:[%s7633_s0] sm:$0xff]  ;;  %v5314_v4 = vpack.c.bf16 %v62_v1, %v61_v0  ;;  %v5903_v6 = vld [vmem:[%s7633_s0 + $0x8] sm:$0xff]  ;;  %v5913_v8 = vld [vmem:[%s7633_s0 + $0x18] sm:$0xff]  ;;  %v67_v14 = vsel %vm63_vm1, %v5908_v7, 0.0  ;;  %560 = vst.msk [vmem:[#allocation2 + $0xa0] sm:$0xff] %vm63_vm1, %v7648_v5  ;;  %5316 = vmatprep.subr.bf16.mxu1 %v7646_v3  ;;  %4928 = vmatprep.mubr.msk.f32.mxu1 %vm5815_vm0, %v7648_v5 }
   0x3   :  { %v5918_v9 = vld [vmem:[%s7633_s0 + $0x20] sm:$0xff]  ;;  %v5923_v10 = vld [vmem:[%s7633_s0 + $0x28] sm:$0xff]  ;;  %v5928_v11 = vld [vmem:[%s7633_s0 + $0x30] sm:$0xff]  ;;  %v64_v12 = vsel %vm63_vm1, %v5895_v2, 0.0  ;;  %v65_v13 = vsel %vm63_vm1, %v5903_v6, 0.0  ;;  %563 = vst.msk [vmem:[#allocation2 + $0x90] sm:$0xff] %vm63_vm1, %v7648_v5 }
   0x4   :  { %565 = vst.msk [vmem:[#allocation2 + $0x130] sm:$0xff] %vm63_vm1, %v7648_v5  ;;  %5315 = vmatpush3.bf16.msra.mxu0 %v5314_v4  ;;  %v5950_v15 = vld [vmem:[%s7633_s0 + $0x38] sm:$0xff]  ;;  %v5955_v16 = vld [vmem:[%s7633_s0 + $0x40] sm:$0xff]  ;;  %v5960_v17 = vld [vmem:[%s7633_s0 + $0x48] sm:$0xff]  ;;  %v66_v18 = vadd.f32 %v65_v13, %v64_v12  ;;  %v69_v19 = vsel %vm63_vm1, %v5913_v8, 0.0  ;;  %v71_v20 = vsel %vm63_vm1, %v5918_v9, 0.0  ;;  %5318 = vmatpush3.bf16.msra.mxu1 %v5314_v4 }
   0x5   :  { %v5969_v21 = vld [vmem:[%s7633_s0 + $0x50] sm:$0xff]  ;;  %v5974_v22 = vld [vmem:[%s7633_s0 + $0x58] sm:$0xff]  ;;  %v5979_v23 = vld [vmem:[%s7633_s0 + $0x60] sm:$0xff]  ;;  %v73_v24 = vsel %vm63_vm1, %v5923_v10, 0.0  ;;  %v75_v25 = vsel %vm63_vm1, %v5928_v11, 0.0  ;;  %v85_v26 = vsel %vm63_vm1, %v5955_v16, 0.0  ;;  %5319 = vmatprep.subr.bf16.mxu1 %v7646_v3 }
   0x6   :  { %v5991_v27 = vld [vmem:[%s7633_s0 + $0x68] sm:$0xff]  ;;  %v5996_v28 = vld [vmem:[%s7633_s0 + $0x70] sm:$0xff]  ;;  %v6001_v29 = vld [vmem:[%s7633_s0 + $0x78] sm:$0xff]  ;;  %v68_v30 = vadd.f32 %v67_v14, %v66_v18  ;;  %v77_v31 = vsel %vm63_vm1, %v5950_v15, 0.0  ;;  %v86_v32 = vsel %vm63_vm1, %v5960_v17, 0.0  ;;  %v88_v33 = vsel %vm63_vm1, %v5969_v21, 0.0 }
   0x7   :  { %v87_v34 = vadd.f32 %v86_v32, %v85_v26  ;;  %v90_v35 = vsel %vm63_vm1, %v5974_v22, 0.0  ;;  %v92_v36 = vsel %vm63_vm1, %v5979_v23, 0.0  ;;  %v94_v37 = vsel %vm63_vm1, %v5991_v27, 0.0 }
   0x8   :  { %v70_v38 = vadd.f32 %v69_v19, %v68_v30  ;;  %v96_v39 = vsel %vm63_vm1, %v5996_v28, 0.0  ;;  %v98_v40 = vsel %vm63_vm1, %v6001_v29, 0.0 }
   0x9   :  { %v89_v41 = vadd.f32 %v88_v33, %v87_v34 }
   0xa   :  { %v72_v42 = vadd.f32 %v71_v20, %v70_v38 }
   0xb   :  { %v91_v43 = vadd.f32 %v90_v35, %v89_v41 }
   0xc   :  { %v74_v44 = vadd.f32 %v73_v24, %v72_v42 }
   0xd   :  { %v93_v45 = vadd.f32 %v92_v36, %v91_v43 }
   0xe   :  { %v76_v46 = vadd.f32 %v75_v25, %v74_v44 }
   0xf   :  { %v95_v47 = vadd.f32 %v94_v37, %v93_v45 }
  0x10   :  { %v78_v48 = vadd.f32 %v77_v31, %v76_v46 }
  0x11   :  { %v97_v49 = vadd.f32 %v96_v39, %v95_v47 }
  0x12   :  { %v79_v50 = vrot.slane %v78_v48, 4 }
  0x13   :  { %v99_v51 = vadd.f32 %v98_v40, %v97_v49 }
  0x14   :  { %v80_v52 = vadd.f32 %v79_v50, %v78_v48 }
  0x15   :  { %v100_v53 = vrot.slane %v99_v51, 4 }
  0x16   :  { %v81_v54 = vrot.slane %v80_v52, 2 }
  0x17   :  { %v101_v55 = vadd.f32 %v100_v53, %v99_v51 }
  0x18   :  { %v82_v56 = vadd.f32 %v81_v54, %v80_v52 }
  0x19   :  { %v102_v57 = vrot.slane %v101_v55, 2 }
  0x1a   :  { %v83_v58 = vrot.slane %v82_v56, 1 }
  0x1b   :  { %v103_v59 = vadd.f32 %v102_v57, %v101_v55 }
  0x1c   :  { %17 = vsyncpa [#allocation5], 0  ;;  %v84_v60 = vadd.f32 %v83_v58, %v82_v56  ;;  %vm108_vm2 = vcmask 1041409   ;;  %v5817_v0 = vmov 1966171168   ;;  %v187_v4 = vlaneseq }
  0x1d   :  { %v104_v61 = vrot.slane %v103_v59, 1  ;;  %v185_v1 = vunpack.c.l.s4 %v5817_v0  ;;  %vm558_vm3 = vcmask 123904   ;;  %vm568_vm4 = vcmask 122880  }
  0x1e   :  { %v188_v13 = vshrl.u32 %v187_v4, 7  ;;  %559 = vst.msk [vmem:[#allocation2 + $0x8] sm:$0x3] %vm558_vm3, %v7648_v5  ;;  %561 = vst.msk [vmem:[#allocation2 + $0xa8] sm:$0x3] %vm558_vm3, %v7648_v5  ;;  %vm2151_vm5 = vcmask 261120  }
  0x1f   :  { %v105_v62 = vadd.f32 %v104_v61, %v103_v59  ;;  %v186_v12 = vunpack.c.0.s8 %v185_v1  ;;  %564 = vst.msk [vmem:[#allocation2 + $0x98] sm:$0x3] %vm558_vm3, %v7648_v5  ;;  %566 = vst.msk [vmem:[#allocation2 + $0x138] sm:$0x3] %vm558_vm3, %v7648_v5  ;;  %vm2665_vm6 = vcmask 253952   ;;  %vm2655_vm7 = vcmask 254976  }
  0x20   :  { %v6024_v25 = vsub.s32 0, %v188_v13  ;;  %569 = vst.msk [vmem:[#allocation2 + $0x10] sm:$0x1] %vm568_vm4, %v7648_v5  ;;  %570 = vst.msk [vmem:[#allocation2 + $0x20] sm:$0x1] %vm568_vm4, %v7648_v5 }
  0x21   :  { %v109_v63 = vsel %vm108_vm2, %v105_v62, %v84_v60  ;;  %v6021_v14 = vsub.s32 %v186_v12, %v188_v13  ;;  %571 = vst.msk [vmem:[#allocation2 + $0x30] sm:$0x1] %vm568_vm4, %v7648_v5  ;;  %572 = vst.msk [vmem:[#allocation2 + $0x40] sm:$0x1] %vm568_vm4, %v7648_v5 }
  0x22   :  { %4922 = vmatmul.mubr.msk.f32.vlgmr.msra.gmra.mrb[0].mxu0 %vm63_vm1, %v109_v63  ;;  %7659 = vst [vmem:[#allocation8_spill] sm:$0xff] %v6024_v25  ;;  %573 = vst.msk [vmem:[#allocation2 + $0x50] sm:$0x1] %vm568_vm4, %v7648_v5 }
  0x23   :  { %7658 = vst [vmem:[#allocation7_spill] sm:$0xff] %v6021_v14  ;;  %574 = vst.msk [vmem:[#allocation2 + $0x60] sm:$0x1] %vm568_vm4, %v7648_v5 }
  0x24   :  { %575 = vst.msk [vmem:[#allocation2 + $0x70] sm:$0x1] %vm568_vm4, %v7648_v5  ;;  %576 = vst.msk [vmem:[#allocation2 + $0x80] sm:$0x1] %vm568_vm4, %v7648_v5 }
  0x25   :  { %577 = vst.msk [vmem:[#allocation2 + $0xb0] sm:$0x1] %vm568_vm4, %v7648_v5  ;;  %578 = vst.msk [vmem:[#allocation2 + $0xc0] sm:$0x1] %vm568_vm4, %v7648_v5 }
  0x26   :  { %579 = vst.msk [vmem:[#allocation2 + $0xd0] sm:$0x1] %vm568_vm4, %v7648_v5  ;;  %580 = vst.msk [vmem:[#allocation2 + $0xe0] sm:$0x1] %vm568_vm4, %v7648_v5 }
  0x27   :  { %581 = vst.msk [vmem:[#allocation2 + $0xf0] sm:$0x1] %vm568_vm4, %v7648_v5  ;;  %582 = vst.msk [vmem:[#allocation2 + $0x100] sm:$0x1] %vm568_vm4, %v7648_v5 }
  0x28   :  { %583 = vst.msk [vmem:[#allocation2 + $0x110] sm:$0x1] %vm568_vm4, %v7648_v5  ;;  %584 = vst.msk [vmem:[#allocation2 + $0x120] sm:$0x1] %vm568_vm4, %v7648_v5 }
  0x29   :  { %585 = vst.msk [vmem:[#allocation2 + $0x19] sm:$0x1] %vm568_vm4, %v7648_v5  ;;  %586 = vst.msk [vmem:[#allocation2 + $0x29] sm:$0x1] %vm568_vm4, %v7648_v5 }
  0x2a   :  { %587 = vst.msk [vmem:[#allocation2 + $0x39] sm:$0x1] %vm568_vm4, %v7648_v5  ;;  %588 = vst.msk [vmem:[#allocation2 + $0x49] sm:$0x1] %vm568_vm4, %v7648_v5 }
  0x2b   :  { %589 = vst.msk [vmem:[#allocation2 + $0x59] sm:$0x1] %vm568_vm4, %v7648_v5  ;;  %590 = vst.msk [vmem:[#allocation2 + $0x69] sm:$0x1] %vm568_vm4, %v7648_v5 }
  0x2c   :  { %591 = vst.msk [vmem:[#allocation2 + $0x79] sm:$0x1] %vm568_vm4, %v7648_v5  ;;  %592 = vst.msk [vmem:[#allocation2 + $0x89] sm:$0x1] %vm568_vm4, %v7648_v5 }
  0x2d   :  { %593 = vst.msk [vmem:[#allocation2 + $0xb9] sm:$0x1] %vm568_vm4, %v7648_v5  ;;  %594 = vst.msk [vmem:[#allocation2 + $0xc9] sm:$0x1] %vm568_vm4, %v7648_v5 }
  0x2e   :  { %595 = vst.msk [vmem:[#allocation2 + $0xd9] sm:$0x1] %vm568_vm4, %v7648_v5  ;;  %596 = vst.msk [vmem:[#allocation2 + $0xe9] sm:$0x1] %vm568_vm4, %v7648_v5 }
  0x2f   :  { %597 = vst.msk [vmem:[#allocation2 + $0xf9] sm:$0x1] %vm568_vm4, %v7648_v5  ;;  %598 = vst.msk [vmem:[#allocation2 + $0x109] sm:$0x1] %vm568_vm4, %v7648_v5 }
  0x30   :  { %599 = vst.msk [vmem:[#allocation2 + $0x119] sm:$0x1] %vm568_vm4, %v7648_v5  ;;  %600 = vst.msk [vmem:[#allocation2 + $0x129] sm:$0x1] %vm568_vm4, %v7648_v5 }
  0xf5   :  { %v178_v18 = vpop.f32.mrb[0].mxu0 }
  0xf6   :  { %v182_v19 = vmul.f32 0.0078125, %v178_v18  ;;  %v4923_v20 = vpop.f32.mrb[1].mxu0 }
  0xf8   :  { %v190_v24 = vrot.slane %v182_v19, %v6021_v14 }
  0xfa   :  { %v191_v26 = vcombine.high %v190_v24, %v190_v24  ;;  %v198_v30 = vrot.slane %v190_v24, %v6021_v14 }
  0xfc   :  { %v205_v31 = vrot.slane %v191_v26, %v6021_v14  ;;  %v209_v32 = vrot.slane %v198_v30, %v6024_v25 }
  0xfe   :  { %v213_v33 = vrot.slane %v205_v31, %v6024_v25  ;;  %v6031_v34 = vsub.f32 %v5895_v2, %v209_v32  ;;  %v6034_v35 = vsub.f32 %v5903_v6, %v209_v32  ;;  %v6037_v36 = vsub.f32 %v5908_v7, %v209_v32 }
  0xff   :  { %v6046_v39 = vsub.f32 %v5913_v8, %v209_v32  ;;  %v6056_v7 = vsub.f32 %v5918_v9, %v209_v32  ;;  %v6068_v41 = vsub.f32 %v5923_v10, %v209_v32  ;;  %v6080_v45 = vsub.f32 %v5928_v11, %v209_v32 }
 0x100   :  { %v6040_v37 = vsub.f32 %v5955_v16, %v213_v33  ;;  %v6043_v38 = vsub.f32 %v5960_v17, %v213_v33  ;;  %v6049_v40 = vsub.f32 %v5969_v21, %v213_v33  ;;  %v232_v2 = vmul.f32 %v6031_v34, %v6031_v34 }
 0x101   :  { %v233_v6 = vmul.f32 %v6034_v35, %v6034_v35  ;;  %v6059_v16 = vsub.f32 %v5974_v22, %v213_v33  ;;  %v234_v17 = vmul.f32 %v6037_v36, %v6037_v36  ;;  %v6071_v42 = vsub.f32 %v5979_v23, %v213_v33 }
 0x102   :  { %v240_v8 = vmul.f32 %v6040_v37, %v6040_v37  ;;  %v241_v21 = vmul.f32 %v6043_v38, %v6043_v38  ;;  %v235_v9 = vmul.f32 %v6046_v39, %v6046_v39  ;;  %v242_v22 = vmul.f32 %v6049_v40, %v6049_v40 }
 0x103   :  { %v248_v43 = vsel %vm63_vm1, %v232_v2, 0.0  ;;  %v249_v44 = vsel %vm63_vm1, %v233_v6, 0.0  ;;  %v6083_v46 = vsub.f32 %v5991_v27, %v213_v33  ;;  %v236_v10 = vmul.f32 %v6056_v7, %v6056_v7 }
 0x104   :  { %v250_v23 = vadd.f32 %v249_v44, %v248_v43  ;;  %v243_v47 = vmul.f32 %v6059_v16, %v6059_v16  ;;  %v251_v48 = vsel %vm63_vm1, %v234_v17, 0.0  ;;  %v269_v49 = vsel %vm63_vm1, %v240_v8, 0.0 }
 0x105   :  { %v270_v50 = vsel %vm63_vm1, %v241_v21, 0.0  ;;  %v6093_v51 = vsub.f32 %v5950_v15, %v209_v32  ;;  %v6096_v11 = vsub.f32 %v5996_v28, %v213_v33  ;;  %v237_v53 = vmul.f32 %v6068_v41, %v6068_v41 }
 0x106   :  { %v252_v27 = vadd.f32 %v251_v48, %v250_v23  ;;  %v271_v52 = vadd.f32 %v270_v50, %v269_v49  ;;  %v244_v54 = vmul.f32 %v6071_v42, %v6071_v42  ;;  %v253_v55 = vsel %vm63_vm1, %v235_v9, 0.0 }
 0x107   :  { %v272_v56 = vsel %vm63_vm1, %v242_v22, 0.0  ;;  %v6105_v57 = vsub.f32 %v6001_v29, %v213_v33  ;;  %v238_v28 = vmul.f32 %v6080_v45, %v6080_v45  ;;  %v245_v59 = vmul.f32 %v6083_v46, %v6083_v46 }
 0x108   :  { %v254_v15 = vadd.f32 %v253_v55, %v252_v27  ;;  %v273_v58 = vadd.f32 %v272_v56, %v271_v52  ;;  %v255_v60 = vsel %vm63_vm1, %v236_v10, 0.0  ;;  %v274_v61 = vsel %vm63_vm1, %v243_v47, 0.0  ;;  %v5614_v27 = vld [vmem:[%s7638_s5 + $0x8] sm:$0xff]   ;;  %v6140_v52 = vld [vmem:[%s7638_s5] sm:$0xff]  }
 0x109   :  { %v239_v0 = vmul.f32 %v6093_v51, %v6093_v51  ;;  %v246_v29 = vmul.f32 %v6096_v11, %v6096_v11  ;;  %v257_v1 = vsel %vm63_vm1, %v237_v53, 0.0  ;;  %v276_v4 = vsel %vm63_vm1, %v244_v54, 0.0  ;;  %4931 = vmatprep.subr.bf16.mxu0 %v5614_v27 }
 0x10a   :  { %v256_v62 = vadd.f32 %v255_v60, %v254_v15  ;;  %v275_v63 = vadd.f32 %v274_v61, %v273_v58  ;;  %v247_v18 = vmul.f32 %v6105_v57, %v6105_v57  ;;  %v259_v19 = vsel %vm63_vm1, %v238_v28, 0.0  ;;  %4932 = vmatpush3.bf16.msra.mxu0 %v5614_v27 }
 0x10b   :  { %v278_v20 = vsel %vm63_vm1, %v245_v59, 0.0  ;;  %v261_v30 = vsel %vm63_vm1, %v239_v0, 0.0  ;;  %v280_v31 = vsel %vm63_vm1, %v246_v29, 0.0  ;;  %4949 = vmatprep.subr.bf16.mxu0 %v6140_v52 }
 0x10c   :  { %v258_v12 = vadd.f32 %v257_v1, %v256_v62  ;;  %v277_v13 = vadd.f32 %v276_v4, %v275_v63  ;;  %v282_v2 = vsel %vm63_vm1, %v247_v18, 0.0  ;;  %v6216_v62 = vld [vmem:[%s7635_s2] ss:$0 sm:$0xff] }
 0x10d   :  { %v6230_v4 = vld [vmem:[%s7636_s3] ss:$0 sm:$0xff] }
 0x10e   :  { %v260_v24 = vadd.f32 %v259_v19, %v258_v12  ;;  %v279_v26 = vadd.f32 %v278_v20, %v277_v13 }
 0x110   :  { %v262_v32 = vadd.f32 %v261_v30, %v260_v24  ;;  %v281_v33 = vadd.f32 %v280_v31, %v279_v26 }
 0x112   :  { %v263_v6 = vrot.slane %v262_v32, 4  ;;  %v283_v17 = vadd.f32 %v282_v2, %v281_v33 }
 0x114   :  { %v264_v8 = vadd.f32 %v263_v6, %v262_v32  ;;  %v284_v21 = vrot.slane %v283_v17, 4 }
 0x116   :  { %v265_v9 = vrot.slane %v264_v8, 2  ;;  %v285_v22 = vadd.f32 %v284_v21, %v283_v17 }
 0x118   :  { %v266_v43 = vadd.f32 %v265_v9, %v264_v8  ;;  %v286_v44 = vrot.slane %v285_v22, 2 }
 0x11a   :  { %v267_v10 = vrot.slane %v266_v43, 1  ;;  %v287_v23 = vadd.f32 %v286_v44, %v285_v22 }
 0x11c   :  { %v288_v47 = vrot.slane %v287_v23, 1  ;;  %v268_v48 = vadd.f32 %v267_v10, %v266_v43 }
 0x11e   :  { %v289_v49 = vadd.f32 %v288_v47, %v287_v23 }
 0x120   :  { %v292_v50 = vsel %vm108_vm2, %v289_v49, %v268_v48 }
 0x121   :  { %4929 = vmatmul.mubr.msk.f32.vlgmr.msra.gmra.mrb[0].mxu1 %vm63_vm1, %v292_v50 }
 0x122   :  { %5101 = vmatprep.mubr.msk.f32.mxu1 %vm5815_vm0, %v7648_v5 }
 0x1f4   :  { %v361_v53 = vpop.f32.mrb[0].mxu1 }
 0x1f5   :  { %v365_v54 = vmul.f32 0.0078125, %v361_v53  ;;  %v4930_v55 = vpop.f32.mrb[1].mxu1 }
 0x1f7   :  { %v366_v56 = vadd.f32 1e-05, %v365_v54 }
 0x1f9   :  { %5642 = vrsqrt.f32 %v366_v56 }
 0x203   :  { %v5643_v15 = vpop.eup %5642 }
 0x204   :  { %v375_v58 = vrot.slane %v5643_v15, %v6021_v14 }
 0x206   :  { %v376_v28 = vcombine.high %v375_v58, %v375_v58  ;;  %v383_v59 = vrot.slane %v375_v58, %v6021_v14 }
 0x208   :  { %v390_v60 = vrot.slane %v376_v28, %v6021_v14  ;;  %v6211_v61 = vrot.slane %v383_v59, %v6024_v25  ;;  %v5619_v14 = vld [vmem:[%s7638_s5 + $0x28] sm:$0xff]  }
 0x20a   :  { %v6219_v63 = vrot.slane %v390_v60, %v6024_v25  ;;  %v402_v0 = vmul.f32 %v6211_v61, %v6034_v35  ;;  %v403_v29 = vmul.f32 %v6211_v61, %v6037_v36  ;;  %v401_v1 = vmul.f32 %v6211_v61, %v6031_v34 }
 0x20b   :  { %v404_v12 = vmul.f32 %v6211_v61, %v6046_v39  ;;  %v405_v13 = vmul.f32 %v6211_v61, %v6056_v7  ;;  %v406_v35 = vmul.f32 %v6211_v61, %v6068_v41  ;;  %v407_v36 = vmul.f32 %v6211_v61, %v6080_v45 }
 0x20c   :  { %v424_v18 = vmul.f32 %v6216_v62, %v402_v0  ;;  %v425_v34 = vmul.f32 %v6216_v62, %v403_v29  ;;  %v423_v19 = vmul.f32 %v6216_v62, %v401_v1  ;;  %v409_v20 = vmul.f32 %v6219_v63, %v6040_v37 }
 0x20d   :  { %v426_v39 = vmul.f32 %v6216_v62, %v404_v12  ;;  %v427_v24 = vmul.f32 %v6216_v62, %v405_v13  ;;  %v428_v7 = vmul.f32 %v6216_v62, %v406_v35  ;;  %v429_v41 = vmul.f32 %v6216_v62, %v407_v36 }
 0x20e   :  { %v6250_v26 = vadd.f32 %v6230_v4, %v423_v19  ;;  %v6253_v45 = vadd.f32 %v6230_v4, %v424_v18  ;;  %v6256_v30 = vadd.f32 %v6230_v4, %v425_v34  ;;  %v431_v31 = vmul.f32 %v6216_v62, %v409_v20 }
 0x20f   :  { %v6260_v37 = vadd.f32 %v6230_v4, %v426_v39  ;;  %v6263_v32 = vadd.f32 %v6230_v4, %v427_v24  ;;  %v6266_v33 = vadd.f32 %v6230_v4, %v428_v7  ;;  %v6269_v2 = vadd.f32 %v6230_v4, %v429_v41 }
 0x210   :  { %v461_v6 = vsub.f32 0.0, %v6250_v26  ;;  %v462_v17 = vsub.f32 0.0, %v6253_v45  ;;  %v463_v8 = vsub.f32 0.0, %v6256_v30  ;;  %v6275_v21 = vadd.f32 %v6230_v4, %v431_v31 }
 0x211   :  { %v464_v9 = vsub.f32 0.0, %v6260_v37  ;;  %v465_v22 = vsub.f32 0.0, %v6263_v32  ;;  %v466_v43 = vsub.f32 0.0, %v6266_v33  ;;  %v467_v44 = vsub.f32 0.0, %v6269_v2 }
 0x212   :  { %v477_v10 = vmul.f32 1.442695, %v461_v6  ;;  %v479_v23 = vmul.f32 1.442695, %v462_v17  ;;  %v481_v47 = vmul.f32 1.442695, %v463_v8  ;;  %v410_v48 = vmul.f32 %v6219_v63, %v6043_v38 }
 0x213   :  { %v483_v49 = vmul.f32 1.442695, %v464_v9  ;;  %v485_v50 = vmul.f32 1.442695, %v465_v22  ;;  %v487_v27 = vmul.f32 1.442695, %v466_v43  ;;  %v411_v53 = vmul.f32 %v6219_v63, %v6049_v40 }
 0x214   :  { %5644 = vpow2.f32 %v477_v10  ;;  %v489_v54 = vmul.f32 1.442695, %v467_v44  ;;  %v469_v55 = vsub.f32 0.0, %v6275_v21  ;;  %v432_v56 = vmul.f32 %v6216_v62, %v410_v48 }
 0x215   :  { %5646 = vpow2.f32 %v479_v23  ;;  %v433_v15 = vmul.f32 %v6216_v62, %v411_v53  ;;  %v412_v58 = vmul.f32 %v6219_v63, %v6059_v16  ;;  %v413_v38 = vmul.f32 %v6219_v63, %v6071_v42 }
 0x216   :  { %5648 = vpow2.f32 %v481_v47  ;;  %v493_v28 = vmul.f32 1.442695, %v469_v55  ;;  %v6293_v59 = vadd.f32 %v6230_v4, %v432_v56  ;;  %v414_v40 = vmul.f32 %v6219_v63, %v6083_v46 }
 0x217   :  { %5650 = vpow2.f32 %v483_v49  ;;  %v6298_v60 = vadd.f32 %v6230_v4, %v433_v15  ;;  %v434_v0 = vmul.f32 %v6216_v62, %v412_v58  ;;  %v435_v29 = vmul.f32 %v6216_v62, %v413_v38 }
 0x218   :  { %5652 = vpow2.f32 %v485_v50  ;;  %v470_v16 = vsub.f32 0.0, %v6293_v59  ;;  %v415_v13 = vmul.f32 %v6219_v63, %v6096_v11  ;;  %v436_v35 = vmul.f32 %v6216_v62, %v414_v40 }
 0x219   :  { %5654 = vpow2.f32 %v487_v27  ;;  %v471_v42 = vsub.f32 0.0, %v6298_v60  ;;  %v6305_v1 = vadd.f32 %v6230_v4, %v434_v0  ;;  %v6308_v12 = vadd.f32 %v6230_v4, %v435_v29 }
 0x21a   :  { %5656 = vpow2.f32 %v489_v54  ;;  %v495_v46 = vmul.f32 1.442695, %v470_v16  ;;  %v408_v19 = vmul.f32 %v6211_v61, %v6093_v51  ;;  %v416_v24 = vmul.f32 %v6219_v63, %v6105_v57 }
 0x21b   :  { %5658 = vpow2.f32 %v493_v28  ;;  %v497_v36 = vmul.f32 1.442695, %v471_v42  ;;  %v472_v18 = vsub.f32 0.0, %v6305_v1  ;;  %v473_v34 = vsub.f32 0.0, %v6308_v12 }
 0x21c   :  { %5660 = vpow2.f32 %v495_v46  ;;  %v437_v11 = vmul.f32 %v6216_v62, %v415_v13  ;;  %v6321_v6 = vadd.f32 %v6230_v4, %v436_v35  ;;  %v430_v17 = vmul.f32 %v6216_v62, %v408_v19 }
 0x21d   :  { %5662 = vpow2.f32 %v497_v36  ;;  %v499_v20 = vmul.f32 1.442695, %v472_v18  ;;  %v501_v39 = vmul.f32 1.442695, %v473_v34  ;;  %v438_v51 = vmul.f32 %v6216_v62, %v416_v24 }
 0x21e   :  { %v5645_v7 = vpop.eup %5644  ;;  %v6326_v43 = vadd.f32 %v6230_v4, %v437_v11  ;;  %v474_v23 = vsub.f32 0.0, %v6321_v6  ;;  %v6330_v47 = vadd.f32 %v6230_v4, %v430_v17 }
 0x21f   :  { %v5647_v41 = vpop.eup %5646  ;;  %v509_v31 = vadd.f32 1.0, %v5645_v7  ;;  %5664 = vpow2.f32 %v499_v20  ;;  %v6333_v49 = vadd.f32 %v6230_v4, %v438_v51 }
 0x220   :  { %v5649_v8 = vpop.eup %5648  ;;  %v510_v9 = vadd.f32 1.0, %v5647_v41  ;;  %5666 = vpow2.f32 %v501_v39  ;;  %v475_v55 = vsub.f32 0.0, %v6326_v43  ;;  %v503_v58 = vmul.f32 1.442695, %v474_v23 }
 0x221   :  { %v5651_v61 = vpop.eup %5650  ;;  %5668 = vrcp.f32 %v509_v31  ;;  %v511_v22 = vadd.f32 1.0, %v5649_v8  ;;  %v468_v38 = vsub.f32 0.0, %v6330_v47  ;;  %v476_v40 = vsub.f32 0.0, %v6333_v49  ;;  %v643_v8 = vld [vmem:[#allocation2 + $0x1] sm:$0xff] }
 0x222   :  { %v5653_v57 = vpop.eup %5652  ;;  %5670 = vrcp.f32 %v510_v9  ;;  %v512_v63 = vadd.f32 1.0, %v5651_v61  ;;  %v505_v16 = vmul.f32 1.442695, %v475_v55 }
 0x223   :  { %v5655_v44 = vpop.eup %5654  ;;  %5672 = vrcp.f32 %v511_v22  ;;  %v513_v10 = vadd.f32 1.0, %v5653_v57  ;;  %v491_v13 = vmul.f32 1.442695, %v468_v38  ;;  %v507_v18 = vmul.f32 1.442695, %v476_v40 }
 0x224   :  { %v5657_v48 = vpop.eup %5656  ;;  %5674 = vrcp.f32 %v512_v63  ;;  %v514_v62 = vadd.f32 1.0, %v5655_v44 }
 0x225   :  { %v5659_v50 = vpop.eup %5658  ;;  %5676 = vrcp.f32 %v513_v10  ;;  %v515_v27 = vadd.f32 1.0, %v5657_v48 }
 0x226   :  { %v5661_v53 = vpop.eup %5660  ;;  %5678 = vrcp.f32 %v514_v62  ;;  %v517_v54 = vadd.f32 1.0, %v5659_v50 }
 0x227   :  { %v5663_v56 = vpop.eup %5662  ;;  %5680 = vrcp.f32 %v515_v27  ;;  %v518_v15 = vadd.f32 1.0, %v5661_v53 }
 0x228   :  { %5682 = vrcp.f32 %v517_v54  ;;  %v519_v28 = vadd.f32 1.0, %v5663_v56 }
 0x229   :  { %v5665_v4 = vpop.eup %5664  ;;  %5684 = vrcp.f32 %v518_v15 }
 0x22a   :  { %v5667_v0 = vpop.eup %5666  ;;  %5686 = vrcp.f32 %v519_v28  ;;  %v520_v29 = vadd.f32 1.0, %v5665_v4 }
 0x22b   :  { %v5669_v42 = vpop.eup %5668  ;;  %v521_v46 = vadd.f32 1.0, %v5667_v0  ;;  %5688 = vpow2.f32 %v503_v58 }
 0x22c   :  { %v5671_v35 = vpop.eup %5670  ;;  %v541_v36 = vmul.f32 %v5669_v42, %v6250_v26  ;;  %5690 = vrcp.f32 %v520_v29 }
 0x22d   :  { %v5673_v34 = vpop.eup %5672  ;;  %v542_v19 = vmul.f32 %v5671_v35, %v6253_v45  ;;  %5692 = vrcp.f32 %v521_v46 }
 0x22e   :  { %v5675_v20 = vpop.eup %5674  ;;  %601 = vst.msk [vmem:[#allocation2 + $0x11] sm:$0xff] %vm63_vm1, %v541_v36  ;;  %v543_v39 = vmul.f32 %v5673_v34, %v6256_v30  ;;  %5694 = vpow2.f32 %v505_v16 }
 0x22f   :  { %v5677_v24 = vpop.eup %5676  ;;  %602 = vst.msk [vmem:[#allocation2 + $0x21] sm:$0xff] %vm63_vm1, %v542_v19  ;;  %v544_v7 = vmul.f32 %v5675_v20, %v6260_v37  ;;  %5696 = vpow2.f32 %v491_v13 }
 0x230   :  { %v5679_v11 = vpop.eup %5678  ;;  %603 = vst.msk [vmem:[#allocation2 + $0x31] sm:$0xff] %vm63_vm1, %v543_v39  ;;  %v545_v26 = vmul.f32 %v5677_v24, %v6263_v32  ;;  %5698 = vpow2.f32 %v507_v18  ;;  %v651_v18 = vld [vmem:[#allocation2 + $0xa1] sm:$0xff] }
 0x231   :  { %v5681_v45 = vpop.eup %5680  ;;  %604 = vst.msk [vmem:[#allocation2 + $0x41] sm:$0xff] %vm63_vm1, %v544_v7  ;;  %v546_v41 = vmul.f32 %v5679_v11, %v6266_v33  ;;  %v924_v24 = vld [vmem:[#allocation2 + $0x2] sm:$0xff] }
 0x232   :  { %v5683_v31 = vpop.eup %5682  ;;  %605 = vst.msk [vmem:[#allocation2 + $0x51] sm:$0xff] %vm63_vm1, %v545_v26  ;;  %v547_v30 = vmul.f32 %v5681_v45, %v6269_v2 }
 0x233   :  { %v5685_v17 = vpop.eup %5684  ;;  %606 = vst.msk [vmem:[#allocation2 + $0x61] sm:$0xff] %vm63_vm1, %v546_v41  ;;  %v549_v37 = vmul.f32 %v5683_v31, %v6275_v21 }
 0x234   :  { %v5687_v9 = vpop.eup %5686  ;;  %607 = vst.msk [vmem:[#allocation2 + $0x71] sm:$0xff] %vm63_vm1, %v547_v30  ;;  %v550_v32 = vmul.f32 %v5685_v17, %v6293_v59 }
 0x235   :  { %v5689_v51 = vpop.eup %5688  ;;  %v6354_v61 = vld [vmem:[#allocation2 + $0x11] sm:$0xff]  ;;  %609 = vst.msk [vmem:[#allocation2 + $0xb1] sm:$0xff] %vm63_vm1, %v549_v37  ;;  %v551_v33 = vmul.f32 %v5687_v9, %v6298_v60 }
 0x236   :  { %v6358_v22 = vld [vmem:[#allocation2 + $0x12] sm:$0xff]  ;;  %v5691_v2 = vpop.eup %5690  ;;  %v659_v57 = vpack.c.bf16 %v6354_v61, %v643_v8  ;;  %v6361_v63 = vld [vmem:[#allocation2 + $0x21] sm:$0xff]  ;;  %610 = vst.msk [vmem:[#allocation2 + $0xc1] sm:$0xff] %vm63_vm1, %v550_v32  ;;  %v522_v21 = vadd.f32 1.0, %v5689_v51 }
 0x237   :  { %v6364_v44 = vld [vmem:[#allocation2 + $0x22] sm:$0xff]  ;;  %v5693_v59 = vpop.eup %5692  ;;  %v6366_v10 = vld [vmem:[#allocation2 + $0x31] sm:$0xff]  ;;  %611 = vst.msk [vmem:[#allocation2 + $0xd1] sm:$0xff] %vm63_vm1, %v551_v33  ;;  %v552_v23 = vmul.f32 %v5691_v2, %v6305_v1 }
 0x238   :  { %v5695_v62 = vpop.eup %5694  ;;  %4933 = vmatprep.mubr.msk.bf16.mxu0 %vm63_vm1, %v659_v57  ;;  %v6377_v50 = vpack.c.bf16 %v6366_v10, %v6361_v63  ;;  %v6379_v27 = vld [vmem:[#allocation2 + $0x41] sm:$0xff]  ;;  %v553_v53 = vmul.f32 %v5693_v59, %v6308_v12  ;;  %5700 = vrcp.f32 %v522_v21  ;;  %v6385_v1 = vld [vmem:[%s7638_s5 + $0x10] sm:$0xff]  }
 0x239   :  { %v5697_v54 = vpop.eup %5696  ;;  %v6387_v55 = vld [vmem:[#allocation2 + $0x51] sm:$0xff]  ;;  %612 = vst.msk [vmem:[#allocation2 + $0xe1] sm:$0xff] %vm63_vm1, %v552_v23  ;;  %v523_v56 = vadd.f32 1.0, %v5695_v62  ;;  %v6404_v4 = vld [vmem:[#allocation2 + $0x42] sm:$0xff] }
 0x23a   :  { %v5699_v58 = vpop.eup %5698  ;;  %4934 = vmatmul.mubr.msk.bf16.vlgmr.msra.gmra.mrb[4].mxu0 %vm63_vm1, %v6377_v50  ;;  %v6396_v12 = vpack.c.bf16 %v6387_v55, %v6379_v27  ;;  %v6398_v38 = vld [vmem:[#allocation2 + $0x61] sm:$0xff]  ;;  %613 = vst.msk [vmem:[#allocation2 + $0xf1] sm:$0xff] %vm63_vm1, %v553_v53  ;;  %v6401_v28 = vld [vmem:[#allocation2 + $0x32] sm:$0xff]  ;;  %v516_v40 = vadd.f32 1.0, %v5697_v54 }
 0x23b   :  { %4950 = vmatpush3.bf16.msra.mxu0 %v6140_v52  ;;  %5702 = vrcp.f32 %v523_v56  ;;  %v6406_v0 = vld [vmem:[#allocation2 + $0x52] sm:$0xff]  ;;  %v6408_v29 = vld [vmem:[#allocation2 + $0x62] sm:$0xff]  ;;  %v524_v16 = vadd.f32 1.0, %v5699_v58  ;;  %v6527_v48 = vpack.c.bf16 %v6401_v28, %v6364_v44 }
 0x23c   :  { %4937 = vmatprep.mubr.msk.bf16.mxu0 %vm63_vm1, %v6396_v12  ;;  %v6414_v46 = vld [vmem:[#allocation2 + $0xb1] sm:$0xff]  ;;  %4967 = vmatprep.subr.bf16.mxu0 %v6385_v1  ;;  %5704 = vrcp.f32 %v516_v40  ;;  %v617_v62 = vld [vmem:[#allocation2] sm:$0xff]  ;;  %v6534_v31 = vpack.c.bf16 %v6406_v0, %v6404_v4 }
 0x23d   :  { %v6417_v13 = vld [vmem:[#allocation2 + $0xb2] sm:$0xff]  ;;  %v6421_v35 = vld [vmem:[#allocation2 + $0xc1] sm:$0xff]  ;;  %5706 = vrcp.f32 %v524_v16  ;;  %v663_v41 = vpack.c.bf16 %v6414_v46, %v651_v18 }
 0x23e   :  { %v6419_v52 = vld [vmem:[#allocation2 + $0x71] sm:$0xff]  ;;  %v6423_v36 = vld [vmem:[#allocation2 + $0xc2] sm:$0xff] }
 0x23f   :  { %v6425_v34 = vld [vmem:[#allocation2 + $0xd1] sm:$0xff]  ;;  %v6439_v11 = vpack.c.bf16 %v6419_v52, %v6398_v38  ;;  %v619_v40 = vld [vmem:[#allocation2 + $0x20] sm:$0xff] }
 0x240   :  { %v6427_v19 = vld [vmem:[#allocation2 + $0xd2] sm:$0xff]  ;;  %v6441_v26 = vld [vmem:[#allocation2 + $0xe1] sm:$0xff]  ;;  %v6461_v57 = vpack.c.bf16 %v6425_v34, %v6421_v35 }
 0x241   :  { %v6443_v45 = vld [vmem:[#allocation2 + $0xe2] sm:$0xff]  ;;  %v6455_v32 = vld [vmem:[#allocation2 + $0xf1] sm:$0xff]  ;;  %v6549_v15 = vpack.c.bf16 %v6427_v19, %v6423_v36 }
 0x242   :  { %v5701_v17 = vpop.eup %5700  ;;  %4938 = vmatmul.mubr.msk.bf16.gmra.mrb[8].mxu0 %vm63_vm1, %v6439_v11  ;;  %v618_v53 = vld [vmem:[#allocation2 + $0x10] sm:$0xff]  ;;  %v621_v18 = vld [vmem:[#allocation2 + $0x40] sm:$0xff] }
 0x243   :  { %4941 = vmatprep.mubr.msk.bf16.mxu0 %vm63_vm1, %v663_v41  ;;  %v554_v8 = vmul.f32 %v5701_v17, %v6321_v6  ;;  %v6467_v6 = vpack.c.bf16 %v6455_v32, %v6441_v26  ;;  %v633_v58 = vpack.c.bf16 %v618_v53, %v617_v62  ;;  %v620_v16 = vld [vmem:[#allocation2 + $0x30] sm:$0xff]  ;;  %v629_v5 = vld [vmem:[#allocation2 + $0xe0] sm:$0xff]  ;;  %7661 = vst [vmem:[#allocation10_spill] sm:$0xff] %v6549_v15 }
 0x244   :  { %v622_v41 = vld [vmem:[#allocation2 + $0x50] sm:$0xff]  ;;  %v6494_v17 = vpack.c.bf16 %v620_v16, %v619_v40  ;;  %v1110_v25 = vpack.c.bf16 %v619_v40, %v618_v53 }
 0x245   :  { %v5703_v37 = vpop.eup %5702  ;;  %614 = vst.msk [vmem:[#allocation2 + $0x101] sm:$0xff] %vm63_vm1, %v554_v8  ;;  %v5617_v8 = vld [vmem:[%s7638_s5 + $0x18] sm:$0xff]   ;;  %v628_v3 = vld [vmem:[#allocation2 + $0xd0] sm:$0xff] }
 0x246   :  { %v5705_v9 = vpop.eup %5704  ;;  %v555_v51 = vmul.f32 %v5703_v37, %v6326_v43  ;;  %v6472_v43 = vld [vmem:[#allocation2 + $0xf2] sm:$0xff]  ;;  %v6499_v37 = vpack.c.bf16 %v622_v41, %v621_v18 }
 0x247   :  { %v5707_v33 = vpop.eup %5706  ;;  %v548_v2 = vmul.f32 %v5705_v9, %v6330_v47  ;;  %v623_v9 = vld [vmem:[#allocation2 + $0x60] sm:$0xff] }
 0x248   :  { %615 = vst.msk [vmem:[#allocation2 + $0x111] sm:$0xff] %vm63_vm1, %v555_v51  ;;  %v556_v21 = vmul.f32 %v5707_v33, %v6333_v49  ;;  %v624_v51 = vld [vmem:[#allocation2 + $0x70] sm:$0xff]  ;;  %v625_v33 = vld [vmem:[#allocation2 + $0xa0] sm:$0xff] }
 0x249   :  { %608 = vst.msk [vmem:[#allocation2 + $0x81] sm:$0xff] %vm63_vm1, %v548_v2  ;;  %v626_v2 = vld [vmem:[#allocation2 + $0xb0] sm:$0xff]  ;;  %v5618_v49 = vld [vmem:[%s7638_s5 + $0x20] sm:$0xff]  }
 0x24a   :  { %4942 = vmatmul.mubr.msk.bf16.gmra.mrb[12].mxu0 %vm63_vm1, %v6461_v57  ;;  %616 = vst.msk [vmem:[#allocation2 + $0x121] sm:$0xff] %vm63_vm1, %v556_v21  ;;  %v6506_v21 = vpack.c.bf16 %v624_v51, %v623_v9  ;;  %v637_v62 = vpack.c.bf16 %v626_v2, %v625_v33 }
 0x24b   :  { %4945 = vmatprep.mubr.msk.bf16.mxu0 %vm63_vm1, %v6467_v6 }
 0x24c   :  { %v6477_v47 = vld [vmem:[#allocation2 + $0x101] sm:$0xff] }
 0x24d   :  { %v6479_v59 = vld [vmem:[#allocation2 + $0x102] sm:$0xff] }
 0x24e   :  { %v631_v33 = vld [vmem:[#allocation2 + $0x100] sm:$0xff] }
 0x24f   :  { %v6485_v54 = vld [vmem:[#allocation2 + $0x111] sm:$0xff] }
 0x250   :  { %v6489_v56 = vpack.c.bf16 %v6485_v54, %v6477_v47  ;;  %v632_v7 = vld [vmem:[#allocation2 + $0x110] sm:$0xff] }
 0x251   :  { %v6519_v39 = vpack.c.bf16 %v632_v7, %v631_v33 }
 0x252   :  { %4946 = vmatmul.mubr.msk.bf16.gmra.mrb[16].mxu0 %vm63_vm1, %v6489_v56 }
 0x253   :  { %4951 = vmatprep.mubr.msk.bf16.mxu0 %vm63_vm1, %v633_v58  ;;  %v627_v58 = vld [vmem:[#allocation2 + $0xc0] sm:$0xff] }
 0x254   :  { %v6511_v23 = vpack.c.bf16 %v628_v3, %v627_v58  ;;  %v1114_v53 = vpack.c.bf16 %v627_v58, %v626_v2 }
 0x25a   :  { %4952 = vmatmul.mubr.msk.bf16.vlgmr.msra.gmra.mrb[4].mxu0 %vm63_vm1, %v6494_v17 }
 0x25b   :  { %4968 = vmatpush3.bf16.msra.mxu0 %v6385_v1  ;;  %4955 = vmatprep.mubr.msk.bf16.mxu0 %vm63_vm1, %v6499_v37  ;;  %v630_v1 = vld [vmem:[#allocation2 + $0xf0] sm:$0xff] }
 0x25c   :  { %4985 = vmatprep.subr.bf16.mxu0 %v5617_v8  ;;  %v6513_v30 = vpack.c.bf16 %v630_v1, %v629_v5  ;;  %v1116_v40 = vpack.c.bf16 %v631_v33, %v630_v1 }
 0x262   :  { %4956 = vmatmul.mubr.msk.bf16.gmra.mrb[8].mxu0 %vm63_vm1, %v6506_v21 }
 0x263   :  { %4959 = vmatprep.mubr.msk.bf16.mxu0 %vm63_vm1, %v637_v62  ;;  %v940_v62 = vpack.c.bf16 %v6358_v22, %v924_v24  ;;  %v931_v24 = vld [vmem:[#allocation2 + $0x72] sm:$0xff] }
 0x264   :  { %v6541_v20 = vpack.c.bf16 %v931_v24, %v6408_v29 }
 0x266   :  { %7660 = vst [vmem:[#allocation9_spill] sm:$0xff] %v6541_v20 }
 0x26a   :  { %4960 = vmatmul.mubr.msk.bf16.gmra.mrb[12].mxu0 %vm63_vm1, %v6511_v23 }
 0x26b   :  { %4963 = vmatprep.mubr.msk.bf16.mxu0 %vm63_vm1, %v6513_v30 }
 0x272   :  { %4964 = vmatmul.mubr.msk.bf16.gmra.mrb[16].mxu0 %vm63_vm1, %v6519_v39 }
 0x273   :  { %4969 = vmatprep.mubr.msk.bf16.mxu0 %vm63_vm1, %v940_v62  ;;  %v932_v62 = vld [vmem:[#allocation2 + $0xa2] sm:$0xff] }
 0x274   :  { %v944_v42 = vpack.c.bf16 %v6417_v13, %v932_v62  ;;  %v939_v62 = vld [vmem:[#allocation2 + $0x112] sm:$0xff] }
 0x275   :  { %v6560_v60 = vpack.c.bf16 %v939_v62, %v6479_v59 }
 0x27a   :  { %4970 = vmatmul.mubr.msk.bf16.vlgmr.msra.gmra.mrb[4].mxu0 %vm63_vm1, %v6527_v48 }
 0x27b   :  { %4986 = vmatpush3.bf16.msra.mxu0 %v5617_v8  ;;  %4973 = vmatprep.mubr.msk.bf16.mxu0 %vm63_vm1, %v6534_v31  ;;  %v6553_v8 = vpack.c.bf16 %v6472_v43, %v6443_v45 }
 0x27c   :  { %5003 = vmatprep.subr.bf16.mxu0 %v5618_v49 }
 0x27d   :  { %7662 = vst [vmem:[#allocation11_spill] sm:$0xff] %v6553_v8 }
 0x282   :  { %4974 = vmatmul.mubr.msk.bf16.gmra.mrb[8].mxu0 %vm63_vm1, %v6541_v20  ;;  %v1112_v20 = vpack.c.bf16 %v623_v9, %v622_v41  ;;  %v7679_v41 = vmov 0.0|0.0  }
 0x283   :  { %4977 = vmatprep.mubr.msk.bf16.mxu0 %vm63_vm1, %v944_v42  ;;  %v1111_v42 = vpack.c.bf16 %v621_v18, %v620_v16  ;;  %v1109_v16 = vld [vmem:[#allocation2 + $0x120] sm:$0xff] }
 0x284   :  { %v1117_v18 = vpack.c.bf16 %v1109_v16, %v632_v7  ;;  %v1271_v7 = vld [vmem:[#allocation2 + $0x81] sm:$0xff] }
 0x28a   :  { %4978 = vmatmul.mubr.msk.bf16.gmra.mrb[12].mxu0 %vm63_vm1, %v6549_v15 }
 0x28b   :  { %4981 = vmatprep.mubr.msk.bf16.mxu0 %vm63_vm1, %v6553_v8  ;;  %v1101_v8 = vld [vmem:[#allocation2 + $0x80] sm:$0xff] }
 0x28c   :  { %v1113_v15 = vpack.c.bf16 %v1101_v8, %v624_v51 }
 0x292   :  { %4982 = vmatmul.mubr.msk.bf16.gmra.mrb[16].mxu0 %vm63_vm1, %v6560_v60 }
 0x293   :  { %4987 = vmatprep.mubr.msk.bf16.mxu0 %vm63_vm1, %v1110_v25  ;;  %v1115_v25 = vpack.c.bf16 %v629_v5, %v628_v3  ;;  %v7664_v3 = vpack.c.bf16 %v6379_v27, %v6366_v10  ;;  %v7665_v5 = vpack.c.bf16 %v6398_v38, %v6387_v55  ;;  %v7667_v10 = vpack.c.bf16 %v6441_v26, %v6425_v34  ;;  %v1279_v27 = vld [vmem:[#allocation2 + $0x121] sm:$0xff]  ;;  %v1620_v26 = vld [vmem:[#allocation2 + $0x130] sm:$0xff] }
 0x294   :  { %v1287_v55 = vpack.c.bf16 %v1279_v27, %v6485_v54  ;;  %v7669_v38 = vpack.c.bf16 %v6364_v44, %v6358_v22  ;;  %v1441_v34 = vld [vmem:[#allocation2 + $0x82] sm:$0xff]  ;;  %v7672_v44 = vpack.c.bf16 %v6423_v36, %v6417_v13  ;;  %v1612_v36 = vld [vmem:[#allocation2 + $0x90] sm:$0xff]  ;;  %v2150_v54 = vld [vmem:[%s7641_s8 + $0x18] sm:$0xff] }
 0x295   :  { %v1453_v22 = vpack.c.bf16 %v1441_v34, %v931_v24  ;;  %v5622_v13 = vld [vmem:[%s7638_s5 + $0x40] sm:$0xff]  }
 0x29a   :  { %4988 = vmatmul.mubr.msk.bf16.vlgmr.msra.gmra.mrb[4].mxu0 %vm63_vm1, %v1111_v42 }
 0x29b   :  { %5004 = vmatpush3.bf16.msra.mxu0 %v5618_v49  ;;  %4991 = vmatprep.mubr.msk.bf16.mxu0 %vm63_vm1, %v1112_v20  ;;  %v7663_v20 = vpack.c.bf16 %v6361_v63, %v6354_v61  ;;  %v1283_v61 = vpack.c.bf16 %v1271_v7, %v6419_v52  ;;  %v7666_v63 = vpack.c.bf16 %v6421_v35, %v6414_v46  ;;  %v5621_v46 = vld [vmem:[%s7638_s5 + $0x38] sm:$0xff]   ;;  %v2149_v49 = vld [vmem:[%s7641_s8 + $0x10] sm:$0xff] }
 0x29c   :  { %5021 = vmatprep.subr.bf16.mxu0 %v5619_v14  ;;  %v7670_v52 = vpack.c.bf16 %v6404_v4, %v6401_v28  ;;  %v7671_v35 = vpack.c.bf16 %v6408_v29, %v6406_v0  ;;  %v7673_v28 = vpack.c.bf16 %v6443_v45, %v6427_v19  ;;  %v7674_v4 = vpack.c.bf16 %v6479_v59, %v6472_v43  ;;  %v1449_v0 = vld [vmem:[#allocation2 + $0x122] sm:$0xff] }
 0x29d   :  { %v1457_v29 = vpack.c.bf16 %v1449_v0, %v939_v62  ;;  %v1624_v19 = vpack.c.bf16 %v1612_v36, %v1101_v8  ;;  %v1628_v45 = vpack.c.bf16 %v1620_v26, %v1109_v16  ;;  %v2148_v59 = vld [vmem:[%s7641_s8 + $0x8] sm:$0xff] }
 0x2a2   :  { %4992 = vmatmul.mubr.msk.bf16.gmra.mrb[8].mxu0 %vm63_vm1, %v1113_v15  ;;  %v5620_v15 = vld [vmem:[%s7638_s5 + $0x30] sm:$0xff]  }
 0x2a3   :  { %4995 = vmatprep.mubr.msk.bf16.mxu0 %vm63_vm1, %v1114_v53 }
 0x2aa   :  { %4996 = vmatmul.mubr.msk.bf16.gmra.mrb[12].mxu0 %vm63_vm1, %v1115_v25 }
 0x2ab   :  { %4999 = vmatprep.mubr.msk.bf16.mxu0 %vm63_vm1, %v1116_v40 }
 0x2b2   :  { %5000 = vmatmul.mubr.msk.bf16.gmra.mrb[16].mxu0 %vm63_vm1, %v1117_v18 }
 0x2b3   :  { %5005 = vmatprep.mubr.msk.bf16.mxu0 %vm63_vm1, %v7663_v20 }
 0x2ba   :  { %5006 = vmatmul.mubr.msk.bf16.vlgmr.msra.gmra.mrb[4].mxu0 %vm63_vm1, %v7664_v3 }
 0x2bb   :  { %5022 = vmatpush3.bf16.msra.mxu0 %v5619_v14  ;;  %5009 = vmatprep.mubr.msk.bf16.mxu0 %vm63_vm1, %v7665_v5  ;;  %v7668_v14 = vpack.c.bf16 %v6477_v47, %v6455_v32  ;;  %v1782_v32 = vld [vmem:[#allocation2 + $0x91] sm:$0xff] }
 0x2bc   :  { %5039 = vmatprep.subr.bf16.mxu0 %v5620_v15  ;;  %v1794_v43 = vpack.c.bf16 %v1782_v32, %v1271_v7 }
 0x2c2   :  { %5010 = vmatmul.mubr.msk.bf16.gmra.mrb[8].mxu0 %vm63_vm1, %v1283_v61 }
 0x2c3   :  { %5013 = vmatprep.mubr.msk.bf16.mxu0 %vm63_vm1, %v7666_v63 }
 0x2ca   :  { %5014 = vmatmul.mubr.msk.bf16.gmra.mrb[12].mxu0 %vm63_vm1, %v7667_v10 }
 0x2cb   :  { %5017 = vmatprep.mubr.msk.bf16.mxu0 %vm63_vm1, %v7668_v14 }
 0x2d2   :  { %5018 = vmatmul.mubr.msk.bf16.gmra.mrb[16].mxu0 %vm63_vm1, %v1287_v55 }
 0x2d3   :  { %5023 = vmatprep.mubr.msk.bf16.mxu0 %vm63_vm1, %v7669_v38 }
 0x2da   :  { %5024 = vmatmul.mubr.msk.bf16.vlgmr.msra.gmra.mrb[4].mxu0 %vm63_vm1, %v7670_v52 }
 0x2db   :  { %5040 = vmatpush3.bf16.msra.mxu0 %v5620_v15  ;;  %5027 = vmatprep.mubr.msk.bf16.mxu0 %vm63_vm1, %v7671_v35 }
 0x2dc   :  { %5057 = vmatprep.subr.bf16.mxu0 %v5621_v46 }
 0x2e2   :  { %5028 = vmatmul.mubr.msk.bf16.gmra.mrb[8].mxu0 %vm63_vm1, %v1453_v22 }
 0x2e3   :  { %5031 = vmatprep.mubr.msk.bf16.mxu0 %vm63_vm1, %v7672_v44 }
 0x2ea   :  { %5032 = vmatmul.mubr.msk.bf16.gmra.mrb[12].mxu0 %vm63_vm1, %v7673_v28 }
 0x2eb   :  { %5035 = vmatprep.mubr.msk.bf16.mxu0 %vm63_vm1, %v7674_v4 }
 0x2f2   :  { %5036 = vmatmul.mubr.msk.bf16.gmra.mrb[16].mxu0 %vm63_vm1, %v1457_v29 }
 0x2f3   :  { %5041 = vmatprep.mubr.msk.bf16.mxu0 %vm63_vm1, %v6494_v17  ;;  %v4583_v17 = vld [vmem:[%s7634_s1] ss:$0 sm:$0xff] }
 0x2fa   :  { %5042 = vmatmul.mubr.msk.bf16.vlgmr.msra.gmra.mrb[4].mxu0 %vm63_vm1, %v6499_v37 }
 0x2fb   :  { %5058 = vmatpush3.bf16.msra.mxu0 %v5621_v46  ;;  %5045 = vmatprep.mubr.msk.bf16.mxu0 %vm63_vm1, %v6506_v21 }
 0x2fc   :  { %5075 = vmatprep.subr.bf16.mxu0 %v5622_v13 }
 0x302   :  { %5046 = vmatmul.mubr.msk.bf16.gmra.mrb[8].mxu0 %vm63_vm1, %v1624_v19 }
 0x303   :  { %5049 = vmatprep.mubr.msk.bf16.mxu0 %vm63_vm1, %v6511_v23 }
 0x30a   :  { %5050 = vmatmul.mubr.msk.bf16.gmra.mrb[12].mxu0 %vm63_vm1, %v6513_v30 }
 0x30b   :  { %5053 = vmatprep.mubr.msk.bf16.mxu0 %vm63_vm1, %v6519_v39 }
 0x312   :  { %5054 = vmatmul.mubr.msk.bf16.gmra.mrb[16].mxu0 %vm63_vm1, %v1628_v45 }
 0x313   :  { %5059 = vmatprep.mubr.msk.bf16.mxu0 %vm63_vm1, %v6377_v50  ;;  %v1790_v50 = vld [vmem:[#allocation2 + $0x131] sm:$0xff] }
 0x314   :  { %v1798_v39 = vpack.c.bf16 %v1790_v50, %v1279_v27  ;;  %v4584_v27 = vld [vmem:[%s7634_s1 + $0x1] ss:$0 sm:$0xff] }
 0x31a   :  { %5060 = vmatmul.mubr.msk.bf16.vlgmr.msra.gmra.mrb[4].mxu0 %vm63_vm1, %v6396_v12  ;;  %v7675_v12 = vld [vmem:[#allocation9_spill] sm:$0xff] }
 0x31b   :  { %5076 = vmatpush3.bf16.msra.mxu0 %v5622_v13  ;;  %5063 = vmatprep.mubr.msk.bf16.mxu0 %vm63_vm1, %v6439_v11  ;;  %v1952_v11 = vld [vmem:[#allocation2 + $0x92] sm:$0xff] }
 0x31c   :  { %v1964_v30 = vpack.c.bf16 %v1952_v11, %v1441_v34 }
 0x322   :  { %5064 = vmatmul.mubr.msk.bf16.gmra.mrb[8].mxu0 %vm63_vm1, %v1794_v43 }
 0x323   :  { %5067 = vmatprep.mubr.msk.bf16.mxu0 %vm63_vm1, %v6461_v57  ;;  %v7676_v57 = vld [vmem:[#allocation10_spill] sm:$0xff] }
 0x32a   :  { %5068 = vmatmul.mubr.msk.bf16.gmra.mrb[12].mxu0 %vm63_vm1, %v6467_v6  ;;  %v7677_v6 = vld [vmem:[#allocation11_spill] sm:$0xff] }
 0x32b   :  { %5071 = vmatprep.mubr.msk.bf16.mxu0 %vm63_vm1, %v6489_v56  ;;  %v6703_v56 = vpack.c.bf16 %v2150_v54, %v2149_v49 }
 0x332   :  { %5072 = vmatmul.mubr.msk.bf16.gmra.mrb[16].mxu0 %vm63_vm1, %v1798_v39 }
 0x333   :  { %5077 = vmatprep.mubr.msk.bf16.mxu0 %vm63_vm1, %v6527_v48  ;;  %v1960_v48 = vld [vmem:[#allocation2 + $0x132] sm:$0xff] }
 0x334   :  { %v1968_v47 = vpack.c.bf16 %v1960_v48, %v1449_v0 }
 0x33a   :  { %5078 = vmatmul.mubr.msk.bf16.vlgmr.msra.gmra.mrb[4].mxu0 %vm63_vm1, %v6534_v31  ;;  %v7678_v31 = vmov 0.0  }
 0x33b   :  { %5081 = vmatprep.mubr.msk.bf16.mxu0 %vm63_vm1, %v7675_v12  ;;  %2654 = vst.msk [vmem:[#allocation3] sm:$0xff] %vm2151_vm5, %v7678_v31  ;;  %2657 = vst.msk [vmem:[#allocation3 + $0xa0] sm:$0xff] %vm2151_vm5, %v7678_v31 }
 0x33c   :  { %2660 = vst.msk [vmem:[#allocation3 + $0x90] sm:$0xff] %vm2151_vm5, %v7678_v31  ;;  %2662 = vst.msk [vmem:[#allocation3 + $0x130] sm:$0xff] %vm2151_vm5, %v7678_v31 }
 0x33d   :  { %2666 = vst.msk [vmem:[#allocation3 + $0x10] sm:$0x1] %vm2665_vm6, %v7678_v31  ;;  %2667 = vst.msk [vmem:[#allocation3 + $0x20] sm:$0x1] %vm2665_vm6, %v7678_v31 }
 0x33e   :  { %2668 = vst.msk [vmem:[#allocation3 + $0x30] sm:$0x1] %vm2665_vm6, %v7678_v31  ;;  %2669 = vst.msk [vmem:[#allocation3 + $0x40] sm:$0x1] %vm2665_vm6, %v7678_v31 }
 0x33f   :  { %2670 = vst.msk [vmem:[#allocation3 + $0x50] sm:$0x1] %vm2665_vm6, %v7678_v31  ;;  %2671 = vst.msk [vmem:[#allocation3 + $0x60] sm:$0x1] %vm2665_vm6, %v7678_v31 }
 0x340   :  { %2672 = vst.msk [vmem:[#allocation3 + $0x70] sm:$0x1] %vm2665_vm6, %v7678_v31  ;;  %2673 = vst.msk [vmem:[#allocation3 + $0x80] sm:$0x1] %vm2665_vm6, %v7678_v31 }
 0x341   :  { %2674 = vst.msk [vmem:[#allocation3 + $0xb0] sm:$0x1] %vm2665_vm6, %v7678_v31  ;;  %2675 = vst.msk [vmem:[#allocation3 + $0xc0] sm:$0x1] %vm2665_vm6, %v7678_v31 }
 0x342   :  { %5082 = vmatmul.mubr.msk.bf16.gmra.mrb[8].mxu0 %vm63_vm1, %v1964_v30  ;;  %2676 = vst.msk [vmem:[#allocation3 + $0xd0] sm:$0x1] %vm2665_vm6, %v7678_v31  ;;  %2677 = vst.msk [vmem:[#allocation3 + $0xe0] sm:$0x1] %vm2665_vm6, %v7678_v31 }
 0x343   :  { %5085 = vmatprep.mubr.msk.bf16.mxu0 %vm63_vm1, %v7676_v57  ;;  %2678 = vst.msk [vmem:[#allocation3 + $0xf0] sm:$0x1] %vm2665_vm6, %v7678_v31  ;;  %2679 = vst.msk [vmem:[#allocation3 + $0x100] sm:$0x1] %vm2665_vm6, %v7678_v31 }
 0x344   :  { %2680 = vst.msk [vmem:[#allocation3 + $0x110] sm:$0x1] %vm2665_vm6, %v7678_v31  ;;  %2681 = vst.msk [vmem:[#allocation3 + $0x120] sm:$0x1] %vm2665_vm6, %v7678_v31 }
 0x345   :  { %2682 = vst.msk [vmem:[#allocation3 + $0x19] sm:$0x1] %vm2665_vm6, %v7678_v31  ;;  %2683 = vst.msk [vmem:[#allocation3 + $0x29] sm:$0x1] %vm2665_vm6, %v7678_v31 }
 0x346   :  { %2684 = vst.msk [vmem:[#allocation3 + $0x39] sm:$0x1] %vm2665_vm6, %v7678_v31  ;;  %2685 = vst.msk [vmem:[#allocation3 + $0x49] sm:$0x1] %vm2665_vm6, %v7678_v31 }
 0x347   :  { %2686 = vst.msk [vmem:[#allocation3 + $0x59] sm:$0x1] %vm2665_vm6, %v7678_v31  ;;  %2687 = vst.msk [vmem:[#allocation3 + $0x69] sm:$0x1] %vm2665_vm6, %v7678_v31 }
 0x348   :  { %2688 = vst.msk [vmem:[#allocation3 + $0x79] sm:$0x1] %vm2665_vm6, %v7678_v31  ;;  %2689 = vst.msk [vmem:[#allocation3 + $0x89] sm:$0x1] %vm2665_vm6, %v7678_v31 }
 0x349   :  { %2690 = vst.msk [vmem:[#allocation3 + $0xb9] sm:$0x1] %vm2665_vm6, %v7678_v31  ;;  %2691 = vst.msk [vmem:[#allocation3 + $0xc9] sm:$0x1] %vm2665_vm6, %v7678_v31 }
 0x34a   :  { %5086 = vmatmul.mubr.msk.bf16.gmra.mrb[12].mxu0 %vm63_vm1, %v7677_v6  ;;  %2692 = vst.msk [vmem:[#allocation3 + $0xd9] sm:$0x1] %vm2665_vm6, %v7678_v31  ;;  %2693 = vst.msk [vmem:[#allocation3 + $0xe9] sm:$0x1] %vm2665_vm6, %v7678_v31 }
 0x34b   :  { %5089 = vmatprep.mubr.msk.bf16.mxu0 %vm63_vm1, %v6560_v60  ;;  %v2147_v60 = vld [vmem:[%s7641_s8] sm:$0xff]  ;;  %2694 = vst.msk [vmem:[#allocation3 + $0xf9] sm:$0x1] %vm2665_vm6, %v7678_v31  ;;  %2695 = vst.msk [vmem:[#allocation3 + $0x109] sm:$0x1] %vm2665_vm6, %v7678_v31 }
 0x34c   :  { %v6697_v23 = vpack.c.bf16 %v2148_v59, %v2147_v60  ;;  %2696 = vst.msk [vmem:[#allocation3 + $0x119] sm:$0x1] %vm2665_vm6, %v7678_v31  ;;  %2697 = vst.msk [vmem:[#allocation3 + $0x129] sm:$0x1] %vm2665_vm6, %v7678_v31 }
 0x34d   :  { %2656 = vst.msk [vmem:[#allocation3 + $0x8] sm:$0x3] %vm2655_vm7, %v7678_v31  ;;  %2658 = vst.msk [vmem:[#allocation3 + $0xa8] sm:$0x3] %vm2655_vm7, %v7678_v31 }
 0x34e   :  { %5321 = vmatpush3.bf16.msra.mxu1 %v6697_v23  ;;  %2661 = vst.msk [vmem:[#allocation3 + $0x98] sm:$0x3] %vm2655_vm7, %v7678_v31  ;;  %2663 = vst.msk [vmem:[#allocation3 + $0x138] sm:$0x3] %vm2655_vm7, %v7678_v31 }
 0x34f   :  { %5322 = vmatprep.subr.bf16.mxu1 %v7679_v41 }
 0x352   :  { %5090 = vmatmul.mubr.msk.bf16.gmra.mrb[16].mxu0 %vm63_vm1, %v1968_v47  ;;  %5324 = vmatpush3.bf16.msra.mxu1 %v6703_v56 }
 0x353   :  { %5325 = vmatprep.subr.bf16.mxu1 %v7679_v41 }
 0x40d   :  { %v5079_v37 = vpop.f32.mrb[4].mxu0 }
 0x40e   :  { %v2036_v9 = vpop.f32.mrb[5].mxu0  ;;  %v6713_v58 = vadd.f32 %v5079_v37, %v4583_v17 }
 0x40f   :  { %v6711_v51 = vadd.f32 %v4583_v17, %v2036_v9  ;;  %v5080_v2 = vpop.f32.mrb[6].mxu0 }
 0x410   :  { %v2039_v21 = vpop.f32.mrb[7].mxu0  ;;  %v6719_v24 = vadd.f32 %v5080_v2, %v4583_v17  ;;  %v2155_v42 = vsel %vm2151_vm5, %v6713_v58, 0.0 }
 0x411   :  { %v6715_v1 = vadd.f32 %v4583_v17, %v2039_v21  ;;  %v2152_v33 = vsel %vm2151_vm5, %v6711_v51, 0.0 }
 0x412   :  { %v2157_v16 = vsel %vm2151_vm5, %v6719_v24, 0.0 }
 0x413   :  { %v2153_v8 = vsel %vm2151_vm5, %v6715_v1, 0.0 }
 0x414   :  { %v2154_v62 = vadd.f32 %v2153_v8, %v2152_v33 }
 0x415   :  { %v5083_v53 = vpop.f32.mrb[8].mxu0 }
 0x416   :  { %v2156_v25 = vadd.f32 %v2155_v42, %v2154_v62  ;;  %v2052_v40 = vpop.f32.mrb[9].mxu0  ;;  %v6733_v63 = vadd.f32 %v5083_v53, %v4583_v17 }
 0x417   :  { %v6727_v18 = vadd.f32 %v4583_v17, %v2052_v40  ;;  %v5084_v20 = vpop.f32.mrb[10].mxu0 }
 0x418   :  { %v2158_v15 = vadd.f32 %v2157_v16, %v2156_v25  ;;  %v2055_v3 = vpop.f32.mrb[11].mxu0  ;;  %v2163_v46 = vsel %vm2151_vm5, %v6733_v63, 0.0  ;;  %v6742_v52 = vadd.f32 %v5084_v20, %v4583_v17 }
 0x419   :  { %v2159_v5 = vsel %vm2151_vm5, %v6727_v18, 0.0  ;;  %v6731_v7 = vadd.f32 %v4583_v17, %v2055_v3 }
 0x41a   :  { %v2160_v61 = vadd.f32 %v2159_v5, %v2158_v15  ;;  %v2165_v0 = vsel %vm2151_vm5, %v6742_v52, 0.0 }
 0x41b   :  { %v2161_v10 = vsel %vm2151_vm5, %v6731_v7, 0.0 }
 0x41c   :  { %v2162_v14 = vadd.f32 %v2161_v10, %v2160_v61 }
 0x41d   :  { %v5087_v55 = vpop.f32.mrb[12].mxu0 }
 0x41e   :  { %v2068_v38 = vpop.f32.mrb[13].mxu0  ;;  %v2164_v22 = vadd.f32 %v2163_v46, %v2162_v14  ;;  %v2139_v28 = vadd.f32 %v5087_v55, %v4584_v27 }
 0x41f   :  { %v2137_v35 = vadd.f32 %v4584_v27, %v2068_v38  ;;  %v5088_v34 = vpop.f32.mrb[14].mxu0 }
 0x420   :  { %v2071_v44 = vpop.f32.mrb[15].mxu0  ;;  %v2140_v13 = vadd.f32 %v5088_v34, %v4584_v27  ;;  %v2166_v19 = vadd.f32 %v2165_v0, %v2164_v22  ;;  %v2176_v45 = vsel %vm2151_vm5, %v2139_v28, 0.0  ;;  %v7681_v22 = vld [vmem:[#allocation8_spill] sm:$0xff] }
 0x421   :  { %v2138_v4 = vadd.f32 %v4584_v27, %v2071_v44  ;;  %v2173_v29 = vsel %vm2151_vm5, %v2137_v35, 0.0 }
 0x422   :  { %v2178_v39 = vsel %vm2151_vm5, %v2140_v13, 0.0  ;;  %v2167_v30 = vrot.slane %v2166_v19, 4 }
 0x423   :  { %v2174_v36 = vsel %vm2151_vm5, %v2138_v4, 0.0 }
 0x424   :  { %v2175_v26 = vadd.f32 %v2174_v36, %v2173_v29  ;;  %v2168_v17 = vadd.f32 %v2167_v30, %v2166_v19 }
 0x425   :  { %v5091_v32 = vpop.f32.mrb[16].mxu0 }
 0x426   :  { %v2177_v43 = vadd.f32 %v2176_v45, %v2175_v26  ;;  %v2084_v50 = vpop.f32.mrb[17].mxu0  ;;  %v6750_v48 = vadd.f32 %v5091_v32, %v4584_v27  ;;  %v2169_v33 = vrot.slane %v2168_v17, 2 }
 0x427   :  { %v2141_v12 = vadd.f32 %v4584_v27, %v2084_v50  ;;  %v5092_v11 = vpop.f32.mrb[18].mxu0 }
 0x428   :  { %v2179_v57 = vadd.f32 %v2178_v39, %v2177_v43  ;;  %v2087_v6 = vpop.f32.mrb[19].mxu0  ;;  %v6753_v49 = vadd.f32 %v5092_v11, %v4584_v27  ;;  %v2184_v9 = vsel %vm2151_vm5, %v6750_v48, 0.0  ;;  %v2170_v42 = vadd.f32 %v2169_v33, %v2168_v17 }
 0x429   :  { %v2180_v47 = vsel %vm2151_vm5, %v2141_v12, 0.0  ;;  %v2142_v60 = vadd.f32 %v4584_v27, %v2087_v6  ;;  %v7680_v27 = vld [vmem:[#allocation7_spill] sm:$0xff] }
 0x42a   :  { %v2181_v59 = vadd.f32 %v2180_v47, %v2179_v57  ;;  %v2186_v21 = vsel %vm2151_vm5, %v6753_v49, 0.0  ;;  %v2171_v16 = vrot.slane %v2170_v42, 1 }
 0x42b   :  { %v2182_v54 = vsel %vm2151_vm5, %v2142_v60, 0.0 }
 0x42c   :  { %v2183_v37 = vadd.f32 %v2182_v54, %v2181_v59  ;;  %v2172_v15 = vadd.f32 %v2171_v16, %v2170_v42 }
 0x42e   :  { %v2185_v2 = vadd.f32 %v2184_v9, %v2183_v37 }
 0x430   :  { %v2187_v8 = vadd.f32 %v2186_v21, %v2185_v2 }
 0x432   :  { %v2188_v62 = vrot.slane %v2187_v8, 4 }
 0x434   :  { %v2189_v53 = vadd.f32 %v2188_v62, %v2187_v8 }
 0x436   :  { %v2190_v25 = vrot.slane %v2189_v53, 2 }
 0x438   :  { %v2191_v40 = vadd.f32 %v2190_v25, %v2189_v53 }
 0x43a   :  { %v2192_v20 = vrot.slane %v2191_v40, 1 }
 0x43c   :  { %v2193_v3 = vadd.f32 %v2192_v20, %v2191_v40 }
 0x43e   :  { %v2196_v5 = vsel %vm108_vm2, %v2193_v3, %v2172_v15 }
 0x43f   :  { %5102 = vmatmul.mubr.msk.f32.vlgmr.msra.gmra.mrb[2].mxu1 %vm2151_vm5, %v2196_v5 }
 0x440   :  { %5327 = vmatpush3.bf16.msra.mxu1 %v6697_v23  ;;  %5112 = vmatprep.mubr.msk.f32.mxu1 %vm5815_vm0, %v7678_v31  ;;  %v6953_v31 = vld [vmem:[%s7639_s6] ss:$0 sm:$0xff] }
 0x441   :  { %5328 = vmatprep.subr.bf16.mxu1 %v7679_v41 }
 0x444   :  { %5330 = vmatpush3.bf16.msra.mxu1 %v6703_v56 }
 0x512   :  { %v2265_v61 = vpop.f32.mrb[2].mxu1 }
 0x513   :  { %v2269_v10 = vmul.f32 0.00390625, %v2265_v61  ;;  %v5103_v14 = vpop.f32.mrb[3].mxu1 }
 0x515   :  { %v2277_v55 = vrot.slane %v2269_v10, %v7680_v27 }
 0x517   :  { %v2278_v38 = vcombine.high %v2277_v55, %v2277_v55  ;;  %v2285_v46 = vrot.slane %v2277_v55, %v7680_v27 }
 0x519   :  { %v2292_v34 = vrot.slane %v2278_v38, %v7680_v27  ;;  %v2296_v44 = vrot.slane %v2285_v46, %v7681_v22 }
 0x51b   :  { %v2300_v23 = vrot.slane %v2292_v34, %v7681_v22  ;;  %v6773_v0 = vsub.f32 %v6711_v51, %v2296_v44  ;;  %v6776_v41 = vsub.f32 %v6715_v1, %v2296_v44  ;;  %v6779_v56 = vsub.f32 %v6713_v58, %v2296_v44 }
 0x51c   :  { %v6786_v19 = vsub.f32 %v6719_v24, %v2296_v44  ;;  %v6795_v1 = vsub.f32 %v6727_v18, %v2296_v44  ;;  %v6817_v39 = vsub.f32 %v6733_v63, %v2296_v44  ;;  %v6829_v59 = vsub.f32 %v6742_v52, %v2296_v44 }
 0x51d   :  { %v6781_v29 = vsub.f32 %v2137_v35, %v2300_v23  ;;  %v6783_v36 = vsub.f32 %v2138_v4, %v2300_v23  ;;  %v6788_v26 = vsub.f32 %v2139_v28, %v2300_v23  ;;  %v2319_v45 = vmul.f32 %v6773_v0, %v6773_v0 }
 0x51e   :  { %v2320_v51 = vmul.f32 %v6776_v41, %v6776_v41  ;;  %v6797_v58 = vsub.f32 %v2140_v13, %v2300_v23  ;;  %v2321_v35 = vmul.f32 %v6779_v56, %v6779_v56  ;;  %v6806_v4 = vsub.f32 %v6731_v7, %v2296_v44 }
 0x51f   :  { %v2327_v24 = vmul.f32 %v6781_v29, %v6781_v29  ;;  %v2328_v28 = vmul.f32 %v6783_v36, %v6783_v36  ;;  %v6808_v32 = vsub.f32 %v2141_v12, %v2300_v23  ;;  %v2322_v18 = vmul.f32 %v6786_v19, %v6786_v19 }
 0x520   :  { %v2329_v13 = vmul.f32 %v6788_v26, %v6788_v26  ;;  %v2335_v43 = vsel %vm2151_vm5, %v2319_v45, 0.0  ;;  %v2336_v50 = vsel %vm2151_vm5, %v2320_v51, 0.0  ;;  %v6819_v11 = vsub.f32 %v2142_v60, %v2300_v23 }
 0x521   :  { %v2323_v7 = vmul.f32 %v6795_v1, %v6795_v1  ;;  %v2337_v12 = vadd.f32 %v2336_v50, %v2335_v43  ;;  %v2330_v30 = vmul.f32 %v6797_v58, %v6797_v58  ;;  %v2338_v57 = vsel %vm2151_vm5, %v2321_v35, 0.0 }
 0x522   :  { %v2356_v6 = vsel %vm2151_vm5, %v2327_v24, 0.0  ;;  %v2357_v47 = vsel %vm2151_vm5, %v2328_v28, 0.0  ;;  %v6832_v63 = vsub.f32 %v6750_v48, %v2300_v23  ;;  %v2324_v17 = vmul.f32 %v6806_v4, %v6806_v4 }
 0x523   :  { %v2339_v60 = vadd.f32 %v2338_v57, %v2337_v12  ;;  %v2358_v54 = vadd.f32 %v2357_v47, %v2356_v6  ;;  %v2331_v37 = vmul.f32 %v6808_v32, %v6808_v32  ;;  %v2340_v9 = vsel %vm2151_vm5, %v2322_v18, 0.0  ;;  %v5623_v47 = vld [vmem:[%s7642_s9] sm:$0xff]  }
 0x524   :  { %v2359_v2 = vsel %vm2151_vm5, %v2329_v13, 0.0  ;;  %v6841_v21 = vsub.f32 %v6753_v49, %v2300_v23  ;;  %v2325_v48 = vmul.f32 %v6817_v39, %v6817_v39  ;;  %v2332_v8 = vmul.f32 %v6819_v11, %v6819_v11  ;;  %5115 = vmatprep.subr.bf16.mxu0 %v5623_v47  ;;  %5331 = vmatprep.subr.bf16.mxu1 %v5623_v47 }
 0x525   :  { %v2341_v52 = vadd.f32 %v2340_v9, %v2339_v60  ;;  %v2360_v33 = vadd.f32 %v2359_v2, %v2358_v54  ;;  %v2342_v62 = vsel %vm2151_vm5, %v2323_v7, 0.0  ;;  %v2361_v42 = vsel %vm2151_vm5, %v2330_v30, 0.0  ;;  %v5624_v60 = vld [vmem:[%s7642_s9 + $0x8] sm:$0xff]   ;;  %5116 = vmatpush3.bf16.msra.mxu0 %v5623_v47  ;;  %v6937_v54 = vld [vmem:[%s7643_s10] sm:$0xff]  }
 0x526   :  { %v2326_v40 = vmul.f32 %v6829_v59, %v6829_v59  ;;  %v2333_v49 = vmul.f32 %v6832_v63, %v6832_v63  ;;  %v2344_v16 = vsel %vm2151_vm5, %v2324_v17, 0.0  ;;  %v2363_v20 = vsel %vm2151_vm5, %v2331_v37, 0.0  ;;  %5117 = vmatprep.subr.bf16.mxu0 %v5624_v60 }
 0x527   :  { %v2343_v53 = vadd.f32 %v2342_v62, %v2341_v52  ;;  %v2362_v25 = vadd.f32 %v2361_v42, %v2360_v33  ;;  %v2334_v5 = vmul.f32 %v6841_v21, %v6841_v21  ;;  %v2346_v61 = vsel %vm2151_vm5, %v2325_v48, 0.0 }
 0x528   :  { %v2365_v10 = vsel %vm2151_vm5, %v2332_v8, 0.0  ;;  %v2348_v38 = vsel %vm2151_vm5, %v2326_v40, 0.0  ;;  %v2367_v46 = vsel %vm2151_vm5, %v2333_v49, 0.0  ;;  %v6967_v49 = vld [vmem:[%s7640_s7] ss:$0 sm:$0xff] }
 0x529   :  { %v2345_v15 = vadd.f32 %v2344_v16, %v2343_v53  ;;  %v2364_v3 = vadd.f32 %v2363_v20, %v2362_v25  ;;  %v2369_v23 = vsel %vm2151_vm5, %v2334_v5, 0.0  ;;  %5118 = vmatpush3.bf16.msra.mxu0 %v5624_v60 }
 0x52b   :  { %v2347_v14 = vadd.f32 %v2346_v61, %v2345_v15  ;;  %v2366_v55 = vadd.f32 %v2365_v10, %v2364_v3 }
 0x52d   :  { %v2349_v34 = vadd.f32 %v2348_v38, %v2347_v14  ;;  %v2368_v44 = vadd.f32 %v2367_v46, %v2366_v55 }
 0x52f   :  { %v2350_v45 = vrot.slane %v2349_v34, 4  ;;  %v2370_v51 = vadd.f32 %v2369_v23, %v2368_v44 }
 0x531   :  { %v2351_v35 = vadd.f32 %v2350_v45, %v2349_v34  ;;  %v2371_v24 = vrot.slane %v2370_v51, 4 }
 0x533   :  { %v2352_v28 = vrot.slane %v2351_v35, 2  ;;  %v2372_v18 = vadd.f32 %v2371_v24, %v2370_v51 }
 0x535   :  { %v2353_v13 = vadd.f32 %v2352_v28, %v2351_v35  ;;  %v2373_v43 = vrot.slane %v2372_v18, 2 }
 0x537   :  { %v2354_v50 = vrot.slane %v2353_v13, 1  ;;  %v2374_v7 = vadd.f32 %v2373_v43, %v2372_v18 }
 0x539   :  { %v2375_v12 = vrot.slane %v2374_v7, 1  ;;  %v2355_v30 = vadd.f32 %v2354_v50, %v2353_v13 }
 0x53b   :  { %v2376_v57 = vadd.f32 %v2375_v12, %v2374_v7 }
 0x53d   :  { %v2379_v6 = vsel %vm108_vm2, %v2376_v57, %v2355_v30 }
 0x53e   :  { %5113 = vmatmul.mubr.msk.f32.vlgmr.msra.gmra.mrb[4].mxu1 %vm2151_vm5, %v2379_v6 }
 0x53f   :  { %5333 = vmatpush3.bf16.msra.mxu1 %v5623_v47 }
 0x540   :  { %5332 = vmatprep.subr.bf16.mxu1 %v5624_v60 }
 0x543   :  { %5334 = vmatpush3.bf16.msra.mxu1 %v5624_v60 }
 0x544   :  { %5135 = vmatprep.subr.bf16.mxu1 %v6937_v54 }
 0x611   :  { %v2448_v17 = vpop.f32.mrb[4].mxu1 }
 0x612   :  { %v2452_v37 = vmul.f32 0.00390625, %v2448_v17  ;;  %v5114_v9 = vpop.f32.mrb[5].mxu1 }
 0x614   :  { %v2453_v2 = vadd.f32 1e-05, %v2452_v37 }
 0x616   :  { %5708 = vrsqrt.f32 %v2453_v2 }
 0x620   :  { %v5709_v52 = vpop.eup %5708 }
 0x621   :  { %v2462_v33 = vrot.slane %v5709_v52, %v7680_v27 }
 0x623   :  { %v2463_v48 = vcombine.high %v2462_v33, %v2462_v33  ;;  %v2470_v8 = vrot.slane %v2462_v33, %v7680_v27 }
 0x625   :  { %v2477_v62 = vrot.slane %v2463_v48, %v7680_v27  ;;  %v6948_v42 = vrot.slane %v2470_v8, %v7681_v22 }
 0x627   :  { %v6956_v53 = vrot.slane %v2477_v62, %v7681_v22  ;;  %v2489_v25 = vmul.f32 %v6948_v42, %v6776_v41  ;;  %v2490_v40 = vmul.f32 %v6948_v42, %v6779_v56  ;;  %v2488_v27 = vmul.f32 %v6948_v42, %v6773_v0 }
 0x628   :  { %v2491_v16 = vmul.f32 %v6948_v42, %v6786_v19  ;;  %v2492_v22 = vmul.f32 %v6948_v42, %v6795_v1  ;;  %v2493_v41 = vmul.f32 %v6948_v42, %v6806_v4  ;;  %v2494_v56 = vmul.f32 %v6948_v42, %v6817_v39 }
 0x629   :  { %v2501_v0 = vmul.f32 %v6956_v53, %v6819_v11  ;;  %v2502_v20 = vmul.f32 %v6956_v53, %v6832_v63  ;;  %v2511_v15 = vmul.f32 %v6953_v31, %v2489_v25  ;;  %v2512_v3 = vmul.f32 %v6953_v31, %v2490_v40 }
 0x62a   :  { %v2510_v19 = vmul.f32 %v6953_v31, %v2488_v27  ;;  %v2513_v1 = vmul.f32 %v6953_v31, %v2491_v16  ;;  %v2514_v5 = vmul.f32 %v6953_v31, %v2492_v22  ;;  %v2499_v4 = vmul.f32 %v6956_v53, %v6797_v58 }
 0x62b   :  { %v6989_v39 = vadd.f32 %v6967_v49, %v2511_v15  ;;  %v6992_v11 = vadd.f32 %v6967_v49, %v2512_v3  ;;  %v2500_v63 = vmul.f32 %v6956_v53, %v6808_v32  ;;  %v2523_v61 = vmul.f32 %v6953_v31, %v2501_v0 }
 0x62c   :  { %v6998_v10 = vadd.f32 %v6967_v49, %v2510_v19  ;;  %v7001_v14 = vadd.f32 %v6967_v49, %v2513_v1  ;;  %v7004_v55 = vadd.f32 %v6967_v49, %v2514_v5  ;;  %v2521_v58 = vmul.f32 %v6953_v31, %v2499_v4 }
 0x62d   :  { %v2549_v38 = vsub.f32 0.0, %v6989_v39  ;;  %v2550_v46 = vsub.f32 0.0, %v6992_v11  ;;  %v2522_v34 = vmul.f32 %v6953_v31, %v2500_v63  ;;  %v2524_v32 = vmul.f32 %v6953_v31, %v2502_v20 }
 0x62e   :  { %v2548_v44 = vsub.f32 0.0, %v6998_v10  ;;  %v2551_v23 = vsub.f32 0.0, %v7001_v14  ;;  %v2552_v45 = vsub.f32 0.0, %v7004_v55  ;;  %v7015_v51 = vadd.f32 %v6967_v49, %v2521_v58 }
 0x62f   :  { %v2566_v35 = vmul.f32 1.442695, %v2549_v38  ;;  %v2568_v24 = vmul.f32 1.442695, %v2550_v46  ;;  %v7018_v28 = vadd.f32 %v6967_v49, %v2522_v34  ;;  %v7021_v18 = vadd.f32 %v6967_v49, %v2523_v61 }
 0x630   :  { %v2564_v13 = vmul.f32 1.442695, %v2548_v44  ;;  %v2570_v43 = vmul.f32 1.442695, %v2551_v23  ;;  %v2572_v50 = vmul.f32 1.442695, %v2552_v45  ;;  %v7024_v7 = vadd.f32 %v6967_v49, %v2524_v32 }
 0x631   :  { %5710 = vpow2.f32 %v2566_v35  ;;  %v2559_v12 = vsub.f32 0.0, %v7015_v51  ;;  %v2560_v30 = vsub.f32 0.0, %v7018_v28  ;;  %v2561_v57 = vsub.f32 0.0, %v7021_v18 }
 0x632   :  { %5712 = vpow2.f32 %v2568_v24  ;;  %v2562_v6 = vsub.f32 0.0, %v7024_v7  ;;  %v2515_v47 = vmul.f32 %v6953_v31, %v2493_v41  ;;  %v2516_v60 = vmul.f32 %v6953_v31, %v2494_v56 }
 0x633   :  { %5714 = vpow2.f32 %v2564_v13  ;;  %v2586_v17 = vmul.f32 1.442695, %v2559_v12  ;;  %v2588_v37 = vmul.f32 1.442695, %v2560_v30  ;;  %v2590_v9 = vmul.f32 1.442695, %v2561_v57 }
 0x634   :  { %5716 = vpow2.f32 %v2570_v43  ;;  %v7033_v2 = vadd.f32 %v6967_v49, %v2515_v47  ;;  %v7036_v52 = vadd.f32 %v6967_v49, %v2516_v60  ;;  %v2592_v33 = vmul.f32 1.442695, %v2562_v6 }
 0x635   :  { %5718 = vpow2.f32 %v2572_v50  ;;  %v2496_v48 = vmul.f32 %v6956_v53, %v6781_v29  ;;  %v2497_v25 = vmul.f32 %v6956_v53, %v6783_v36  ;;  %v2498_v40 = vmul.f32 %v6956_v53, %v6788_v26 }
 0x636   :  { %5720 = vpow2.f32 %v2586_v17  ;;  %v2553_v8 = vsub.f32 0.0, %v7033_v2  ;;  %v2554_v62 = vsub.f32 0.0, %v7036_v52  ;;  %v2495_v22 = vmul.f32 %v6948_v42, %v6829_v59 }
 0x637   :  { %5722 = vpow2.f32 %v2588_v37  ;;  %v2518_v29 = vmul.f32 %v6953_v31, %v2496_v48  ;;  %v2519_v41 = vmul.f32 %v6953_v31, %v2497_v25  ;;  %v2503_v56 = vmul.f32 %v6956_v53, %v6841_v21 }
 0x638   :  { %5724 = vpow2.f32 %v2590_v9  ;;  %v2574_v27 = vmul.f32 1.442695, %v2553_v8  ;;  %v2576_v16 = vmul.f32 1.442695, %v2554_v62  ;;  %v2520_v0 = vmul.f32 %v6953_v31, %v2498_v40 }
 0x639   :  { %5726 = vpow2.f32 %v2592_v33  ;;  %v2517_v15 = vmul.f32 %v6953_v31, %v2495_v22  ;;  %v7055_v59 = vadd.f32 %v6967_v49, %v2518_v29  ;;  %v2525_v42 = vmul.f32 %v6953_v31, %v2503_v56 }
 0x63a   :  { %5728 = vpow2.f32 %v2574_v27  ;;  %v7059_v21 = vadd.f32 %v6967_v49, %v2519_v41  ;;  %v7062_v63 = vadd.f32 %v6967_v49, %v2520_v0 }
 0x63b   :  { %v5711_v36 = vpop.eup %5710  ;;  %5730 = vpow2.f32 %v2576_v16  ;;  %v7065_v38 = vadd.f32 %v6967_v49, %v2517_v15  ;;  %v2556_v34 = vsub.f32 0.0, %v7055_v59  ;;  %v7069_v32 = vadd.f32 %v6967_v49, %v2525_v42 }
 0x63c   :  { %v5713_v26 = vpop.eup %5712  ;;  %v2597_v20 = vadd.f32 1.0, %v5711_v36  ;;  %v2557_v45 = vsub.f32 0.0, %v7059_v21  ;;  %v2558_v13 = vsub.f32 0.0, %v7062_v63 }
 0x63d   :  { %v5715_v3 = vpop.eup %5714  ;;  %v2598_v19 = vadd.f32 1.0, %v5713_v26  ;;  %v2555_v12 = vsub.f32 0.0, %v7065_v38  ;;  %v2580_v49 = vmul.f32 1.442695, %v2556_v34  ;;  %v2563_v6 = vsub.f32 0.0, %v7069_v32 }
 0x63e   :  { %v5717_v1 = vpop.eup %5716  ;;  %5732 = vrcp.f32 %v2597_v20  ;;  %v2596_v5 = vadd.f32 1.0, %v5715_v3  ;;  %v2582_v60 = vmul.f32 1.442695, %v2557_v45  ;;  %v2584_v17 = vmul.f32 1.442695, %v2558_v13  ;;  %v2714_v20 = vld [vmem:[#allocation3] sm:$0xff] }
 0x63f   :  { %v5719_v53 = vpop.eup %5718  ;;  %5734 = vrcp.f32 %v2598_v19  ;;  %v2599_v4 = vadd.f32 1.0, %v5717_v1  ;;  %v2578_v9 = vmul.f32 1.442695, %v2555_v12  ;;  %v2594_v8 = vmul.f32 1.442695, %v2563_v6 }
 0x640   :  { %v5721_v61 = vpop.eup %5720  ;;  %5736 = vrcp.f32 %v2596_v5  ;;  %v2600_v58 = vadd.f32 1.0, %v5719_v53 }
 0x641   :  { %v5723_v46 = vpop.eup %5722  ;;  %5738 = vrcp.f32 %v2599_v4  ;;  %v2607_v31 = vadd.f32 1.0, %v5721_v61 }
 0x642   :  { %v5725_v44 = vpop.eup %5724  ;;  %5740 = vrcp.f32 %v2600_v58  ;;  %v2608_v23 = vadd.f32 1.0, %v5723_v46 }
 0x643   :  { %v5727_v35 = vpop.eup %5726  ;;  %5742 = vrcp.f32 %v2607_v31  ;;  %v2609_v24 = vadd.f32 1.0, %v5725_v44 }
 0x644   :  { %v5729_v43 = vpop.eup %5728  ;;  %5744 = vrcp.f32 %v2608_v23  ;;  %v2610_v50 = vadd.f32 1.0, %v5727_v35 }
 0x645   :  { %v5731_v30 = vpop.eup %5730  ;;  %5746 = vrcp.f32 %v2609_v24  ;;  %v2601_v57 = vadd.f32 1.0, %v5729_v43 }
 0x646   :  { %5748 = vrcp.f32 %v2610_v50  ;;  %v2602_v47 = vadd.f32 1.0, %v5731_v30 }
 0x647   :  { %5750 = vrcp.f32 %v2601_v57 }
 0x648   :  { %v5733_v37 = vpop.eup %5732  ;;  %5752 = vrcp.f32 %v2602_v47 }
 0x649   :  { %v5735_v33 = vpop.eup %5734  ;;  %v2629_v48 = vmul.f32 %v5733_v37, %v6989_v39  ;;  %5754 = vpow2.f32 %v2580_v49 }
 0x64a   :  { %v5737_v62 = vpop.eup %5736  ;;  %v2630_v25 = vmul.f32 %v5735_v33, %v6992_v11  ;;  %5756 = vpow2.f32 %v2582_v60  ;;  %v5774_v33 = vld [vmem:[%s7633_s0] sm:$0xff] }
 0x64b   :  { %v5739_v40 = vpop.eup %5738  ;;  %v2628_v27 = vmul.f32 %v5737_v62, %v6998_v10  ;;  %2699 = vst.msk [vmem:[#allocation3 + $0x21] sm:$0xff] %vm2151_vm5, %v2629_v48  ;;  %5758 = vpow2.f32 %v2584_v17  ;;  %v5775_v48 = vld [vmem:[%s7633_s0 + $0x8] sm:$0xff]  ;;  %v5626_v62 = vld [vmem:[%s7642_s9 + $0x10] sm:$0xff]  }
 0x64c   :  { %v5741_v16 = vpop.eup %5740  ;;  %2700 = vst.msk [vmem:[#allocation3 + $0x31] sm:$0xff] %vm2151_vm5, %v2630_v25  ;;  %v2631_v22 = vmul.f32 %v5739_v40, %v7001_v14  ;;  %5760 = vpow2.f32 %v2578_v9 }
 0x64d   :  { %v5743_v29 = vpop.eup %5742  ;;  %2698 = vst.msk [vmem:[#allocation3 + $0x11] sm:$0xff] %vm2151_vm5, %v2628_v27  ;;  %v2632_v39 = vmul.f32 %v5741_v16, %v7004_v55  ;;  %5762 = vpow2.f32 %v2594_v8  ;;  %v2644_v8 = vpack.c.bf16 %v5775_v48, %v5774_v33  ;;  %v5627_v33 = vld [vmem:[%s7642_s9 + $0x18] sm:$0xff]  }
 0x64e   :  { %v5745_v11 = vpop.eup %5744  ;;  %2701 = vst.msk [vmem:[#allocation3 + $0x41] sm:$0xff] %vm2151_vm5, %v2631_v22  ;;  %v2639_v10 = vmul.f32 %v5743_v29, %v7015_v51  ;;  %v5631_v27 = vld [vmem:[%s7642_s9 + $0x38] sm:$0xff]  }
 0x64f   :  { %v5747_v41 = vpop.eup %5746  ;;  %2702 = vst.msk [vmem:[#allocation3 + $0x51] sm:$0xff] %vm2151_vm5, %v2632_v39  ;;  %v2640_v56 = vmul.f32 %v5745_v11, %v7018_v28  ;;  %v3002_v11 = vld [vmem:[#allocation3 + $0x1] sm:$0xff] }
 0x650   :  { %v5749_v36 = vpop.eup %5748  ;;  %2709 = vst.msk [vmem:[#allocation3 + $0xe1] sm:$0xff] %vm2151_vm5, %v2639_v10  ;;  %v2641_v14 = vmul.f32 %v5747_v41, %v7021_v18  ;;  %v5788_v10 = vld [vmem:[%s7633_s0 + $0x70] sm:$0xff]  ;;  %v3188_v39 = vld [vmem:[#allocation3 + $0xa2] sm:$0xff] }
 0x651   :  { %v5751_v0 = vpop.eup %5750  ;;  %2710 = vst.msk [vmem:[#allocation3 + $0xf1] sm:$0xff] %vm2151_vm5, %v2640_v56  ;;  %v2642_v55 = vmul.f32 %v5749_v36, %v7024_v7 }
 0x652   :  { %v5753_v26 = vpop.eup %5752  ;;  %v7091_v15 = vld [vmem:[#allocation3 + $0x20] sm:$0xff]  ;;  %2711 = vst.msk [vmem:[#allocation3 + $0x101] sm:$0xff] %vm2151_vm5, %v2641_v14  ;;  %v2633_v51 = vmul.f32 %v5751_v0, %v7033_v2 }
 0x653   :  { %v5755_v3 = vpop.eup %5754  ;;  %v7095_v28 = vld [vmem:[#allocation3 + $0x30] sm:$0xff]  ;;  %2712 = vst.msk [vmem:[#allocation3 + $0x111] sm:$0xff] %vm2151_vm5, %v2642_v55  ;;  %v2634_v18 = vmul.f32 %v5753_v26, %v7036_v52  ;;  %v7106_v5 = vld [vmem:[#allocation3 + $0x21] sm:$0xff] }
 0x654   :  { %v5757_v19 = vpop.eup %5756  ;;  %v7099_v42 = vld [vmem:[#allocation3 + $0x10] sm:$0xff]  ;;  %v7103_v7 = vpack.c.bf16 %v7095_v28, %v7091_v15  ;;  %2703 = vst.msk [vmem:[#allocation3 + $0x61] sm:$0xff] %vm2151_vm5, %v2633_v51  ;;  %v2604_v1 = vadd.f32 1.0, %v5755_v3  ;;  %v7114_v58 = vld [vmem:[#allocation3 + $0x22] sm:$0xff] }
 0x655   :  { %v5759_v2 = vpop.eup %5758  ;;  %v2730_v53 = vpack.c.bf16 %v7099_v42, %v2714_v20  ;;  %v7109_v4 = vld [vmem:[#allocation3 + $0x40] sm:$0xff]  ;;  %2704 = vst.msk [vmem:[#allocation3 + $0x71] sm:$0xff] %vm2151_vm5, %v2634_v18  ;;  %v2605_v52 = vadd.f32 1.0, %v5757_v19  ;;  %v7112_v61 = vld [vmem:[#allocation3 + $0x11] sm:$0xff]  ;;  %v3374_v45 = vpack.c.bf16 %v7091_v15, %v7099_v42  ;;  %v5787_v51 = vld [vmem:[%s7633_s0 + $0x68] sm:$0xff] }
 0x656   :  { %v5761_v46 = vpop.eup %5760  ;;  %v7116_v31 = vld [vmem:[#allocation3 + $0x50] sm:$0xff]  ;;  %5764 = vrcp.f32 %v2604_v1  ;;  %v2606_v34 = vadd.f32 1.0, %v5759_v2  ;;  %v7120_v23 = vld [vmem:[#allocation3 + $0x41] sm:$0xff]  ;;  %v3375_v35 = vpack.c.bf16 %v7109_v4, %v7095_v28  ;;  %v3018_v3 = vpack.c.bf16 %v7112_v61, %v3002_v11 }
 0x657   :  { %v7118_v44 = vld [vmem:[#allocation3 + $0x31] sm:$0xff]  ;;  %v5763_v24 = vpop.eup %5762  ;;  %5119 = vmatprep.mubr.msk.bf16.mxu0 %vm2151_vm5, %v2730_v53  ;;  %v7129_v13 = vpack.c.bf16 %v7116_v31, %v7109_v4  ;;  %v7131_v43 = vld [vmem:[#allocation3 + $0xe0] sm:$0xff]  ;;  %5766 = vrcp.f32 %v2605_v52  ;;  %v2603_v47 = vadd.f32 1.0, %v5761_v46 }
 0x658   :  { %v7133_v50 = vld [vmem:[#allocation3 + $0x12] sm:$0xff]  ;;  %v7137_v30 = vld [vmem:[#allocation3 + $0x42] sm:$0xff]  ;;  %5120 = vmatmul.mubr.msk.bf16.vlgmr.msra.gmra.mrb[20].mxu0 %vm2151_vm5, %v7103_v7  ;;  %5768 = vrcp.f32 %v2606_v34  ;;  %v2611_v60 = vadd.f32 1.0, %v5763_v24 }
 0x659   :  { %v7135_v12 = vld [vmem:[#allocation3 + $0x32] sm:$0xff]  ;;  %5123 = vmatprep.mubr.msk.bf16.mxu0 %vm2151_vm5, %v7129_v13  ;;  %v7155_v9 = vld [vmem:[#allocation3 + $0x100] sm:$0xff]  ;;  %5770 = vrcp.f32 %v2603_v47 }
 0x65a   :  { %v7141_v57 = vld [vmem:[#allocation3 + $0xf0] sm:$0xff]  ;;  %v7166_v25 = vld [vmem:[#allocation3 + $0x101] sm:$0xff]  ;;  %5772 = vrcp.f32 %v2611_v60  ;;  %v7379_v26 = vpack.c.bf16 %v7135_v12, %v7114_v58 }
 0x65b   :  { %v7143_v49 = vld [vmem:[#allocation3 + $0x51] sm:$0xff]  ;;  %v7153_v37 = vpack.c.bf16 %v7141_v57, %v7131_v43  ;;  %v7176_v29 = vld [vmem:[#allocation3 + $0x102] sm:$0xff] }
 0x65c   :  { %v7145_v6 = vld [vmem:[#allocation3 + $0xf1] sm:$0xff]  ;;  %v7190_v56 = vld [vmem:[#allocation3 + $0x60] sm:$0xff] }
 0x65d   :  { %v7168_v40 = vld [vmem:[#allocation3 + $0x52] sm:$0xff]  ;;  %5131 = vmatprep.mubr.msk.bf16.mxu1 %vm2151_vm5, %v7153_v37  ;;  %v7192_v36 = vld [vmem:[#allocation3 + $0x61] sm:$0xff] }
 0x65e   :  { %v7172_v16 = vld [vmem:[#allocation3 + $0x110] sm:$0xff]  ;;  %v7194_v14 = vld [vmem:[#allocation3 + $0x62] sm:$0xff]  ;;  %v7386_v17 = vpack.c.bf16 %v7168_v40, %v7137_v30 }
 0x65f   :  { %v7174_v22 = vld [vmem:[#allocation3 + $0xf2] sm:$0xff]  ;;  %v7188_v41 = vpack.c.bf16 %v7172_v16, %v7155_v9  ;;  %v5778_v24 = vld [vmem:[%s7633_s0 + $0x20] sm:$0xff] }
 0x660   :  { %v7196_v0 = vld [vmem:[#allocation3 + $0x70] sm:$0xff]  ;;  %v5765_v19 = vpop.eup %5764 }
 0x661   :  { %5132 = vmatmul.mubr.msk.bf16.vlgmr.msra.gmra.mrb[8].mxu1 %vm2151_vm5, %v7188_v41  ;;  %v7213_v18 = vpack.c.bf16 %v7196_v0, %v7190_v56  ;;  %v5767_v1 = vpop.eup %5766  ;;  %v2636_v2 = vmul.f32 %v5765_v19, %v7055_v59  ;;  %v5776_v53 = vld [vmem:[%s7633_s0 + $0x10] sm:$0xff]  ;;  %v5779_v59 = vld [vmem:[%s7633_s0 + $0x28] sm:$0xff] }
 0x662   :  { %5136 = vmatpush3.bf16.msra.mxu1 %v6937_v54  ;;  %5137 = vmatprep.mubr.msk.bf16.mxu1 %vm63_vm1, %v2644_v8  ;;  %v5777_v54 = vld [vmem:[%s7633_s0 + $0x18] sm:$0xff]  ;;  %v5769_v46 = vpop.eup %5768  ;;  %v2637_v34 = vmul.f32 %v5767_v1, %v7059_v21  ;;  %v2646_v47 = vpack.c.bf16 %v5779_v59, %v5778_v24  ;;  %v2722_v1 = vld [vmem:[#allocation3 + $0xa0] sm:$0xff]  ;;  %v5630_v11 = vld [vmem:[%s7642_s9 + $0x30] sm:$0xff]  }
 0x663   :  { %5153 = vmatprep.subr.bf16.mxu1 %v5626_v62  ;;  %5124 = vmatmul.mubr.msk.bf16.gmra.mrb[24].mxu0 %vm2151_vm5, %v7213_v18  ;;  %v2645_v52 = vpack.c.bf16 %v5777_v54, %v5776_v53  ;;  %2706 = vst.msk [vmem:[#allocation3 + $0xb1] sm:$0xff] %vm2151_vm5, %v2636_v2  ;;  %v2638_v60 = vmul.f32 %v5769_v46, %v7062_v63  ;;  %v5771_v48 = vpop.eup %5770  ;;  %v5628_v63 = vld [vmem:[%s7642_s9 + $0x20] sm:$0xff]   ;;  %v5780_v2 = vld [vmem:[%s7633_s0 + $0x30] sm:$0xff]  ;;  %v5783_v46 = vld [vmem:[%s7633_s0 + $0x48] sm:$0xff] }
 0x664   :  { %2707 = vst.msk [vmem:[#allocation3 + $0xc1] sm:$0xff] %vm2151_vm5, %v2637_v34  ;;  %v5773_v21 = vpop.eup %5772  ;;  %v2635_v8 = vmul.f32 %v5771_v48, %v7065_v38  ;;  %v5781_v38 = vld [vmem:[%s7633_s0 + $0x38] sm:$0xff]  ;;  %v7256_v53 = vld [vmem:[#allocation3 + $0xe2] sm:$0xff]  ;;  %v5634_v15 = vld [vmem:[%s7642_s9 + $0x50] sm:$0xff]  }
 0x665   :  { %2708 = vst.msk [vmem:[#allocation3 + $0xd1] sm:$0xff] %vm2151_vm5, %v2638_v60  ;;  %v2643_v19 = vmul.f32 %v5773_v21, %v7069_v32  ;;  %v7254_v32 = vld [vmem:[#allocation3 + $0xe1] sm:$0xff]  ;;  %v7411_v55 = vpack.c.bf16 %v7174_v22, %v7256_v53 }
 0x666   :  { %2705 = vst.msk [vmem:[#allocation3 + $0x81] sm:$0xff] %vm2151_vm5, %v2635_v8 }
 0x667   :  { %2713 = vst.msk [vmem:[#allocation3 + $0x121] sm:$0xff] %vm2151_vm5, %v2643_v19  ;;  %7682 = vst [vmem:[#allocation9_spill] sm:$0xff] %v7411_v55 }
 0x669   :  { %5138 = vmatmul.mubr.msk.bf16.vlgmr.msra.gmra.mrb[12].mxu1 %vm63_vm1, %v2645_v52  ;;  %v5782_v52 = vld [vmem:[%s7633_s0 + $0x40] sm:$0xff] }
 0x66a   :  { %5154 = vmatpush3.bf16.msra.mxu1 %v5626_v62  ;;  %5141 = vmatprep.mubr.msk.bf16.mxu1 %vm63_vm1, %v2646_v47  ;;  %v2647_v62 = vpack.c.bf16 %v5781_v38, %v5780_v2  ;;  %v7258_v54 = vld [vmem:[#allocation3 + $0xb0] sm:$0xff]  ;;  %v2648_v34 = vpack.c.bf16 %v5783_v46, %v5782_v52 }
 0x66b   :  { %5155 = vmatprep.subr.bf16.mxu1 %v5627_v33  ;;  %v7266_v24 = vld [vmem:[#allocation3 + $0xb1] sm:$0xff]  ;;  %v2734_v47 = vpack.c.bf16 %v7258_v54, %v2722_v1  ;;  %v7271_v60 = vld [vmem:[#allocation3 + $0xc0] sm:$0xff] }
 0x66c   :  { %v7268_v59 = vld [vmem:[#allocation3 + $0xb2] sm:$0xff]  ;;  %v7273_v48 = vld [vmem:[#allocation3 + $0xc1] sm:$0xff]  ;;  %v7684_v28 = vpack.c.bf16 %v7271_v60, %v7258_v54  ;;  %v7693_v54 = vpack.c.bf16 %v7114_v58, %v7133_v50 }
 0x66d   :  { %v7275_v21 = vld [vmem:[#allocation3 + $0xc2] sm:$0xff]  ;;  %v7277_v8 = vld [vmem:[#allocation3 + $0xd0] sm:$0xff]  ;;  %5127 = vmatprep.mubr.msk.bf16.mxu0 %vm2151_vm5, %v2734_v47 }
 0x66e   :  { %5156 = vmatpush3.bf16.msra.mxu1 %v5627_v33  ;;  %v7279_v19 = vld [vmem:[#allocation3 + $0xd1] sm:$0xff]  ;;  %v7292_v52 = vpack.c.bf16 %v7277_v8, %v7271_v60  ;;  %v5786_v1 = vld [vmem:[%s7633_s0 + $0x60] sm:$0xff]  ;;  %v3200_v33 = vpack.c.bf16 %v7268_v59, %v3188_v39  ;;  %v7685_v4 = vpack.c.bf16 %v7131_v43, %v7277_v8 }
 0x66f   :  { %5173 = vmatprep.subr.bf16.mxu1 %v5628_v63  ;;  %v7281_v2 = vld [vmem:[#allocation3 + $0xd2] sm:$0xff]  ;;  %v2650_v20 = vpack.c.bf16 %v5787_v51, %v5786_v1  ;;  %v7329_v51 = vpack.c.bf16 %v7118_v44, %v7106_v5  ;;  %v7336_v1 = vpack.c.bf16 %v7143_v49, %v7120_v23  ;;  %v3365_v42 = vld [vmem:[#allocation3 + $0x80] sm:$0xff] }
 0x670   :  { %5128 = vmatmul.mubr.msk.bf16.gmra.mrb[28].mxu0 %vm2151_vm5, %v7292_v52  ;;  %v5784_v47 = vld [vmem:[%s7633_s0 + $0x50] sm:$0xff]  ;;  %v5635_v43 = vld [vmem:[%s7642_s9 + $0x58] sm:$0xff]  }
 0x671   :  { %5142 = vmatmul.mubr.msk.bf16.gmra.mrb[16].mxu1 %vm63_vm1, %v2647_v62  ;;  %v5785_v62 = vld [vmem:[%s7633_s0 + $0x58] sm:$0xff]  ;;  %v5638_v58 = vld [vmem:[%s7642_s9 + $0x70] sm:$0xff]  }
 0x672   :  { %5145 = vmatprep.mubr.msk.bf16.mxu1 %vm63_vm1, %v2648_v34  ;;  %v2649_v34 = vpack.c.bf16 %v5785_v62, %v5784_v47  ;;  %v5789_v47 = vld [vmem:[%s7633_s0 + $0x78] sm:$0xff] }
 0x673   :  { %v2651_v62 = vpack.c.bf16 %v5789_v47, %v5788_v10  ;;  %v7345_v10 = vld [vmem:[#allocation3 + $0x71] sm:$0xff] }
 0x679   :  { %5146 = vmatmul.mubr.msk.bf16.gmra.mrb[20].mxu1 %vm63_vm1, %v2649_v34  ;;  %v7349_v34 = vpack.c.bf16 %v7345_v10, %v7192_v36 }
 0x67a   :  { %5149 = vmatprep.mubr.msk.bf16.mxu1 %vm63_vm1, %v2650_v20  ;;  %v5629_v20 = vld [vmem:[%s7642_s9 + $0x28] sm:$0xff]  }
 0x681   :  { %5150 = vmatmul.mubr.msk.bf16.gmra.mrb[8].mxu1 %vm63_vm1, %v2651_v62  ;;  %v7361_v62 = vpack.c.bf16 %v7145_v6, %v7254_v32 }
 0x682   :  { %5157 = vmatprep.mubr.msk.bf16.mxu1 %vm2151_vm5, %v3018_v3  ;;  %v3010_v3 = vld [vmem:[#allocation3 + $0xa1] sm:$0xff] }
 0x683   :  { %v3022_v47 = vpack.c.bf16 %v7266_v24, %v3010_v3  ;;  %v3180_v3 = vld [vmem:[#allocation3 + $0x2] sm:$0xff] }
 0x684   :  { %v3196_v38 = vpack.c.bf16 %v7133_v50, %v3180_v3  ;;  %v7395_v3 = vld [vmem:[#allocation3 + $0x72] sm:$0xff]  ;;  %v7517_v50 = vld [vmem:[#allocation3 + $0x82] sm:$0xff] }
 0x685   :  { %v7399_v46 = vpack.c.bf16 %v7395_v3, %v7194_v14 }
 0x689   :  { %5158 = vmatmul.mubr.msk.bf16.vlgmr.msra.gmra.mrb[12].mxu1 %vm2151_vm5, %v7329_v51 }
 0x68a   :  { %5174 = vmatpush3.bf16.msra.mxu1 %v5628_v63  ;;  %5161 = vmatprep.mubr.msk.bf16.mxu1 %vm2151_vm5, %v7336_v1  ;;  %v7357_v63 = vpack.c.bf16 %v7279_v19, %v7273_v48 }
 0x68b   :  { %5175 = vmatprep.subr.bf16.mxu1 %v5629_v20 }
 0x68e   :  { %5176 = vmatpush3.bf16.msra.mxu1 %v5629_v20  ;;  %v7367_v20 = vld [vmem:[#allocation3 + $0x111] sm:$0xff] }
 0x68f   :  { %5193 = vmatprep.subr.bf16.mxu1 %v5630_v11 }
 0x691   :  { %5162 = vmatmul.mubr.msk.bf16.gmra.mrb[16].mxu1 %vm2151_vm5, %v7349_v34 }
 0x692   :  { %5165 = vmatprep.mubr.msk.bf16.mxu1 %vm2151_vm5, %v3022_v47  ;;  %v7371_v47 = vpack.c.bf16 %v7367_v20, %v7166_v25 }
 0x699   :  { %5166 = vmatmul.mubr.msk.bf16.gmra.mrb[20].mxu1 %vm2151_vm5, %v7357_v63 }
 0x69a   :  { %5169 = vmatprep.mubr.msk.bf16.mxu1 %vm2151_vm5, %v7361_v62 }
 0x6a1   :  { %5170 = vmatmul.mubr.msk.bf16.gmra.mrb[8].mxu1 %vm2151_vm5, %v7371_v47 }
 0x6a2   :  { %5177 = vmatprep.mubr.msk.bf16.mxu1 %vm2151_vm5, %v3196_v38  ;;  %v5632_v38 = vld [vmem:[%s7642_s9 + $0x40] sm:$0xff]  }
 0x6a9   :  { %5178 = vmatmul.mubr.msk.bf16.vlgmr.msra.gmra.mrb[12].mxu1 %vm2151_vm5, %v7379_v26 }
 0x6aa   :  { %5194 = vmatpush3.bf16.msra.mxu1 %v5630_v11  ;;  %5181 = vmatprep.mubr.msk.bf16.mxu1 %vm2151_vm5, %v7386_v17  ;;  %v7407_v11 = vpack.c.bf16 %v7281_v2, %v7275_v21 }
 0x6ab   :  { %5195 = vmatprep.subr.bf16.mxu1 %v5631_v27 }
 0x6ae   :  { %5196 = vmatpush3.bf16.msra.mxu1 %v5631_v27  ;;  %v3195_v27 = vld [vmem:[#allocation3 + $0x112] sm:$0xff] }
 0x6af   :  { %5213 = vmatprep.subr.bf16.mxu1 %v5632_v38  ;;  %v7418_v39 = vpack.c.bf16 %v3195_v27, %v7176_v29 }
 0x6b1   :  { %5182 = vmatmul.mubr.msk.bf16.gmra.mrb[16].mxu1 %vm2151_vm5, %v7399_v46 }
 0x6b2   :  { %5185 = vmatprep.mubr.msk.bf16.mxu1 %vm2151_vm5, %v3200_v33  ;;  %v5633_v33 = vld [vmem:[%s7642_s9 + $0x48] sm:$0xff]  }
 0x6b9   :  { %5186 = vmatmul.mubr.msk.bf16.gmra.mrb[20].mxu1 %vm2151_vm5, %v7407_v11 }
 0x6ba   :  { %5189 = vmatprep.mubr.msk.bf16.mxu1 %vm2151_vm5, %v7411_v55  ;;  %v7683_v55 = vpack.c.bf16 %v7190_v56, %v7116_v31  ;;  %v7686_v31 = vpack.c.bf16 %v7155_v9, %v7141_v57  ;;  %v7688_v57 = vpack.c.bf16 %v7120_v23, %v7118_v44  ;;  %v7689_v9 = vpack.c.bf16 %v7192_v36, %v7143_v49  ;;  %v7494_v36 = vld [vmem:[#allocation3 + $0x121] sm:$0xff] }
 0x6bb   :  { %v7690_v44 = vpack.c.bf16 %v7273_v48, %v7266_v24  ;;  %v7691_v23 = vpack.c.bf16 %v7254_v32, %v7279_v19  ;;  %v7692_v49 = vpack.c.bf16 %v7166_v25, %v7145_v6  ;;  %v5637_v32 = vld [vmem:[%s7642_s9 + $0x68] sm:$0xff]   ;;  %v7694_v6 = vpack.c.bf16 %v7137_v30, %v7135_v12 }
 0x6bc   :  { %v7695_v25 = vpack.c.bf16 %v7194_v14, %v7168_v40  ;;  %v3733_v24 = vpack.c.bf16 %v7517_v50, %v7395_v3  ;;  %v7696_v12 = vpack.c.bf16 %v7275_v21, %v7268_v59  ;;  %v7697_v30 = vpack.c.bf16 %v7256_v53, %v7281_v2  ;;  %v3729_v14 = vld [vmem:[#allocation3 + $0x122] sm:$0xff]  ;;  %v5639_v59 = vld [vmem:[%s7642_s9 + $0x78] sm:$0xff]  }
 0x6bd   :  { %v7698_v40 = vpack.c.bf16 %v7176_v29, %v7174_v22  ;;  %v3737_v60 = vpack.c.bf16 %v3729_v14, %v3195_v27  ;;  %v5640_v22 = vld [vmem:[%s7642_s9 + $0x80] sm:$0xff]   ;;  %v3900_v29 = vld [vmem:[#allocation3 + $0x90] sm:$0xff] }
 0x6be   :  { %v3912_v53 = vpack.c.bf16 %v3900_v29, %v3365_v42 }
 0x6c1   :  { %5190 = vmatmul.mubr.msk.bf16.gmra.mrb[8].mxu1 %vm2151_vm5, %v7418_v39 }
 0x6c2   :  { %5197 = vmatprep.mubr.msk.bf16.mxu1 %vm2151_vm5, %v3374_v45  ;;  %v3377_v45 = vpack.c.bf16 %v3365_v42, %v7196_v0  ;;  %v7687_v0 = vpack.c.bf16 %v7106_v5, %v7112_v61  ;;  %v5636_v5 = vld [vmem:[%s7642_s9 + $0x60] sm:$0xff]  }
 0x6c3   :  { %v7477_v61 = vld [vmem:[#allocation3 + $0x81] sm:$0xff] }
 0x6c9   :  { %5198 = vmatmul.mubr.msk.bf16.vlgmr.msra.gmra.mrb[12].mxu1 %vm2151_vm5, %v3375_v35  ;;  %v7454_v35 = vld [vmem:[#allocation3 + $0x120] sm:$0xff] }
 0x6ca   :  { %5214 = vmatpush3.bf16.msra.mxu1 %v5632_v38  ;;  %5201 = vmatprep.mubr.msk.bf16.mxu1 %vm2151_vm5, %v7683_v55  ;;  %v3381_v56 = vpack.c.bf16 %v7454_v35, %v7172_v16  ;;  %v3555_v16 = vpack.c.bf16 %v7477_v61, %v7345_v10  ;;  %v3559_v55 = vpack.c.bf16 %v7494_v36, %v7367_v20  ;;  %v3908_v10 = vld [vmem:[#allocation3 + $0x130] sm:$0xff] }
 0x6cb   :  { %5215 = vmatprep.subr.bf16.mxu1 %v5633_v33  ;;  %v3916_v20 = vpack.c.bf16 %v3908_v10, %v7454_v35 }
 0x6ce   :  { %5216 = vmatpush3.bf16.msra.mxu1 %v5633_v33 }
 0x6cf   :  { %5233 = vmatprep.subr.bf16.mxu1 %v5634_v15 }
 0x6d1   :  { %5202 = vmatmul.mubr.msk.bf16.gmra.mrb[16].mxu1 %vm2151_vm5, %v3377_v45 }
 0x6d2   :  { %5205 = vmatprep.mubr.msk.bf16.mxu1 %vm2151_vm5, %v7684_v28 }
 0x6d9   :  { %5206 = vmatmul.mubr.msk.bf16.gmra.mrb[20].mxu1 %vm2151_vm5, %v7685_v4 }
 0x6da   :  { %5209 = vmatprep.mubr.msk.bf16.mxu1 %vm2151_vm5, %v7686_v31 }
 0x6e1   :  { %5210 = vmatmul.mubr.msk.bf16.gmra.mrb[8].mxu1 %vm2151_vm5, %v3381_v56 }
 0x6e2   :  { %5217 = vmatprep.mubr.msk.bf16.mxu1 %vm2151_vm5, %v7687_v0 }
 0x6e9   :  { %5218 = vmatmul.mubr.msk.bf16.vlgmr.msra.gmra.mrb[12].mxu1 %vm2151_vm5, %v7688_v57 }
 0x6ea   :  { %5234 = vmatpush3.bf16.msra.mxu1 %v5634_v15  ;;  %5221 = vmatprep.mubr.msk.bf16.mxu1 %vm2151_vm5, %v7689_v9 }
 0x6eb   :  { %5235 = vmatprep.subr.bf16.mxu1 %v5635_v43 }
 0x6ee   :  { %5236 = vmatpush3.bf16.msra.mxu1 %v5635_v43 }
 0x6ef   :  { %5253 = vmatprep.subr.bf16.mxu1 %v5636_v5 }
 0x6f1   :  { %5222 = vmatmul.mubr.msk.bf16.gmra.mrb[16].mxu1 %vm2151_vm5, %v3555_v16 }
 0x6f2   :  { %5225 = vmatprep.mubr.msk.bf16.mxu1 %vm2151_vm5, %v7690_v44 }
 0x6f9   :  { %5226 = vmatmul.mubr.msk.bf16.gmra.mrb[20].mxu1 %vm2151_vm5, %v7691_v23 }
 0x6fa   :  { %5229 = vmatprep.mubr.msk.bf16.mxu1 %vm2151_vm5, %v7692_v49 }
 0x701   :  { %5230 = vmatmul.mubr.msk.bf16.gmra.mrb[8].mxu1 %vm2151_vm5, %v3559_v55 }
 0x702   :  { %5237 = vmatprep.mubr.msk.bf16.mxu1 %vm2151_vm5, %v7693_v54 }
 0x709   :  { %5238 = vmatmul.mubr.msk.bf16.vlgmr.msra.gmra.mrb[12].mxu1 %vm2151_vm5, %v7694_v6 }
 0x70a   :  { %5254 = vmatpush3.bf16.msra.mxu1 %v5636_v5  ;;  %5241 = vmatprep.mubr.msk.bf16.mxu1 %vm2151_vm5, %v7695_v25 }
 0x70b   :  { %5255 = vmatprep.subr.bf16.mxu1 %v5637_v32 }
 0x70e   :  { %5256 = vmatpush3.bf16.msra.mxu1 %v5637_v32 }
 0x70f   :  { %5273 = vmatprep.subr.bf16.mxu1 %v5638_v58 }
 0x711   :  { %5242 = vmatmul.mubr.msk.bf16.gmra.mrb[16].mxu1 %vm2151_vm5, %v3733_v24 }
 0x712   :  { %5245 = vmatprep.mubr.msk.bf16.mxu1 %vm2151_vm5, %v7696_v12 }
 0x719   :  { %5246 = vmatmul.mubr.msk.bf16.gmra.mrb[20].mxu1 %vm2151_vm5, %v7697_v30 }
 0x71a   :  { %5249 = vmatprep.mubr.msk.bf16.mxu1 %vm2151_vm5, %v7698_v40 }
 0x721   :  { %5250 = vmatmul.mubr.msk.bf16.gmra.mrb[8].mxu1 %vm2151_vm5, %v3737_v60 }
 0x722   :  { %5257 = vmatprep.mubr.msk.bf16.mxu1 %vm2151_vm5, %v7103_v7 }
 0x729   :  { %5258 = vmatmul.mubr.msk.bf16.vlgmr.msra.gmra.mrb[12].mxu1 %vm2151_vm5, %v7129_v13 }
 0x72a   :  { %5274 = vmatpush3.bf16.msra.mxu1 %v5638_v58  ;;  %5261 = vmatprep.mubr.msk.bf16.mxu1 %vm2151_vm5, %v7213_v18 }
 0x72b   :  { %5275 = vmatprep.subr.bf16.mxu1 %v5639_v59  ;;  %v5121_v7 = vpop.f32.mrb[20].mxu0 }
 0x72c   :  { %v2812_v48 = vpop.f32.mrb[21].mxu0 }
 0x72d   :  { %v5122_v21 = vpop.f32.mrb[22].mxu0 }
 0x72e   :  { %5276 = vmatpush3.bf16.msra.mxu1 %v5639_v59  ;;  %v2815_v13 = vpop.f32.mrb[23].mxu0 }
 0x72f   :  { %5293 = vmatprep.subr.bf16.mxu1 %v5640_v22 }
 0x731   :  { %5262 = vmatmul.mubr.msk.bf16.gmra.mrb[16].mxu1 %vm2151_vm5, %v3912_v53 }
 0x732   :  { %5265 = vmatprep.mubr.msk.bf16.mxu1 %vm2151_vm5, %v7292_v52 }
 0x736   :  { %v5125_v8 = vpop.f32.mrb[24].mxu0 }
 0x737   :  { %v2828_v18 = vpop.f32.mrb[25].mxu0 }
 0x738   :  { %v5126_v19 = vpop.f32.mrb[26].mxu0 }
 0x739   :  { %5266 = vmatmul.mubr.msk.bf16.gmra.mrb[20].mxu1 %vm2151_vm5, %v7153_v37  ;;  %v2831_v2 = vpop.f32.mrb[27].mxu0  ;;  %v5641_v37 = vld [vmem:[%s7642_s9 + $0x88] sm:$0xff]  }
 0x73a   :  { %5269 = vmatprep.mubr.msk.bf16.mxu1 %vm2151_vm5, %v7188_v41 }
 0x741   :  { %5270 = vmatmul.mubr.msk.bf16.gmra.mrb[8].mxu1 %vm2151_vm5, %v3916_v20 }
 0x742   :  { %5277 = vmatprep.mubr.msk.bf16.mxu1 %vm2151_vm5, %v7329_v51  ;;  %v4078_v51 = vld [vmem:[#allocation3 + $0x91] sm:$0xff] }
 0x743   :  { %v7558_v52 = vpop.f32.mrb[28].mxu0  ;;  %v4090_v27 = vpack.c.bf16 %v4078_v51, %v7477_v61 }
 0x744   :  { %v7560_v38 = vpop.f32.mrb[29].mxu0 }
 0x745   :  { %v7565_v3 = vpop.f32.mrb[30].mxu0 }
 0x746   :  { %v7567_v41 = vpop.f32.mrb[31].mxu0 }
 0x749   :  { %5278 = vmatmul.mubr.msk.bf16.vlgmr.msra.gmra.mrb[12].mxu1 %vm2151_vm5, %v7336_v1  ;;  %v4086_v1 = vld [vmem:[#allocation3 + $0x131] sm:$0xff] }
 0x74a   :  { %5294 = vmatpush3.bf16.msra.mxu1 %v5640_v22  ;;  %5281 = vmatprep.mubr.msk.bf16.mxu1 %vm2151_vm5, %v7349_v34  ;;  %v4094_v33 = vpack.c.bf16 %v4086_v1, %v7494_v36  ;;  %v4256_v34 = vld [vmem:[#allocation3 + $0x92] sm:$0xff] }
 0x74b   :  { %5295 = vmatprep.subr.bf16.mxu1 %v5641_v37 }
 0x74e   :  { %5296 = vmatpush3.bf16.msra.mxu1 %v5641_v37 }
 0x751   :  { %5282 = vmatmul.mubr.msk.bf16.gmra.mrb[16].mxu1 %vm2151_vm5, %v4090_v27 }
 0x752   :  { %5285 = vmatprep.mubr.msk.bf16.mxu1 %vm2151_vm5, %v7357_v63  ;;  %v4268_v63 = vpack.c.bf16 %v4256_v34, %v7517_v50 }
 0x759   :  { %5286 = vmatmul.mubr.msk.bf16.gmra.mrb[20].mxu1 %vm2151_vm5, %v7361_v62  ;;  %v7699_v62 = vld [vmem:[#allocation9_spill] sm:$0xff] }
 0x75a   :  { %5289 = vmatprep.mubr.msk.bf16.mxu1 %vm2151_vm5, %v7371_v47 }
 0x761   :  { %5290 = vmatmul.mubr.msk.bf16.gmra.mrb[8].mxu1 %vm2151_vm5, %v4094_v33 }
 0x762   :  { %5297 = vmatprep.mubr.msk.bf16.mxu1 %vm2151_vm5, %v7379_v26  ;;  %v4264_v26 = vld [vmem:[#allocation3 + $0x132] sm:$0xff] }
 0x763   :  { %v4272_v47 = vpack.c.bf16 %v4264_v26, %v3729_v14 }
 0x769   :  { %5298 = vmatmul.mubr.msk.bf16.vlgmr.msra.gmra.mrb[12].mxu1 %vm2151_vm5, %v7386_v17 }
 0x76a   :  { %5301 = vmatprep.mubr.msk.bf16.mxu1 %vm2151_vm5, %v7399_v46  ;;  %v4720_v46 = vld [vmem:[%s7644_s11] ss:$0 sm:$0xff]  ;;  %s5818_s11 = smov [#allocation4]  }
 0x76b   :  { %s4471_s24 = sshll.u32 %s5818_s11, 4  ;;  %s4472_s24 = int_to_ptr.vmem [resolvable:$true] %s4471_s24 }
 0x76c   :  { %s5790_s25 = scalar_lea.vmem %s4472_s24, 2048  ;;  %p5795_p1 = scmp.lt.s32.totalorder %s4472_s24, %s4472_s24 }
 0x76d   :  { %p5791_p0 = scmp.ne.s32.totalorder %s4472_s24, %s5790_s25  ;;  %p5796_p2 = scmp.lt.s32.totalorder %s5790_s25, %s5790_s25 }
 0x76f   :  { %p5797_p3 = por %p5796_p2, %p5795_p1 }
 0x771   :  { %5302 = vmatmul.mubr.msk.bf16.gmra.mrb[16].mxu1 %vm2151_vm5, %v4268_v63  ;;  %p5798_p4 = pnand %p5797_p3, %p5791_p0 }
 0x772   :  { %5305 = vmatprep.mubr.msk.bf16.mxu1 %vm2151_vm5, %v7407_v11 }
 0x779   :  { %5306 = vmatmul.mubr.msk.bf16.gmra.mrb[20].mxu1 %vm2151_vm5, %v7699_v62 }
 0x77a   :  { %5309 = vmatprep.mubr.msk.bf16.mxu1 %vm2151_vm5, %v7418_v39 }
 0x781   :  { %5310 = vmatmul.mubr.msk.bf16.gmra.mrb[8].mxu1 %vm2151_vm5, %v4272_v47 }
 0x83c   :  { %v5299_v17 = vpop.f32.mrb[12].mxu1 }
 0x83d   :  { %v5335_v15 = vadd.f32 %v5299_v17, %v5121_v7  ;;  %v4348_v42 = vpop.f32.mrb[13].mxu1 }
 0x83e   :  { %v5336_v45 = vadd.f32 %v4348_v42, %v2812_v48  ;;  %v5300_v28 = vpop.f32.mrb[14].mxu1 }
 0x83f   :  { %v4436_v11 = vadd.f32 %v5335_v15, %v4720_v46  ;;  %v5337_v4 = vadd.f32 %v5300_v28, %v5122_v21  ;;  %v4351_v31 = vpop.f32.mrb[15].mxu1 }
 0x840   :  { %v4434_v35 = vadd.f32 %v5336_v45, %v4720_v46  ;;  %v5338_v56 = vadd.f32 %v4351_v31, %v2815_v13 }
 0x841   :  { %4452 = vst.msk [vmem:[#allocation4 + $0x10] sm:$0xff] %vm2151_vm5, %v4436_v11  ;;  %v4437_v39 = vadd.f32 %v5337_v4, %v4720_v46 }
 0x842   :  { %4450 = vst.msk [vmem:[#allocation4] sm:$0xff] %vm2151_vm5, %v4434_v35  ;;  %v4435_v0 = vadd.f32 %v5338_v56, %v4720_v46 }
 0x843   :  { %4453 = vst.msk [vmem:[#allocation4 + $0x18] sm:$0xff] %vm2151_vm5, %v4437_v39 }
 0x844   :  { %4451 = vst.msk [vmem:[#allocation4 + $0x8] sm:$0xff] %vm2151_vm5, %v4435_v0  ;;  %v5303_v43 = vpop.f32.mrb[16].mxu1 }
 0x845   :  { %v5339_v57 = vadd.f32 %v5303_v43, %v5125_v8  ;;  %v4364_v9 = vpop.f32.mrb[17].mxu1 }
 0x846   :  { %v5340_v5 = vadd.f32 %v4364_v9, %v2828_v18  ;;  %v5304_v61 = vpop.f32.mrb[18].mxu1 }
 0x847   :  { %v4440_v16 = vadd.f32 %v5339_v57, %v4720_v46  ;;  %v5341_v44 = vadd.f32 %v5304_v61, %v5126_v19  ;;  %v4367_v23 = vpop.f32.mrb[19].mxu1 }
 0x848   :  { %v4438_v49 = vadd.f32 %v5340_v5, %v4720_v46  ;;  %v5342_v36 = vadd.f32 %v4367_v23, %v2831_v2 }
 0x849   :  { %4456 = vst.msk [vmem:[#allocation4 + $0x30] sm:$0xff] %vm2151_vm5, %v4440_v16  ;;  %v4441_v55 = vadd.f32 %v5341_v44, %v4720_v46 }
 0x84a   :  { %4454 = vst.msk [vmem:[#allocation4 + $0x20] sm:$0xff] %vm2151_vm5, %v4438_v49  ;;  %v4439_v54 = vadd.f32 %v5342_v36, %v4720_v46 }
 0x84b   :  { %4457 = vst.msk [vmem:[#allocation4 + $0x38] sm:$0xff] %vm2151_vm5, %v4441_v55 }
 0x84c   :  { %4455 = vst.msk [vmem:[#allocation4 + $0x28] sm:$0xff] %vm2151_vm5, %v4439_v54  ;;  %v5307_v32 = vpop.f32.mrb[20].mxu1 }
 0x84d   :  { %v5343_v6 = vadd.f32 %v5307_v32, %v7558_v52  ;;  %v4380_v25 = vpop.f32.mrb[21].mxu1 }
 0x84e   :  { %v5344_v58 = vadd.f32 %v4380_v25, %v7560_v38  ;;  %v5308_v50 = vpop.f32.mrb[22].mxu1 }
 0x84f   :  { %v4444_v24 = vadd.f32 %v5343_v6, %v4720_v46  ;;  %v5345_v12 = vadd.f32 %v5308_v50, %v7565_v3  ;;  %v4383_v30 = vpop.f32.mrb[23].mxu1 }
 0x850   :  { %v4442_v40 = vadd.f32 %v5344_v58, %v4720_v46  ;;  %v5346_v14 = vadd.f32 %v4383_v30, %v7567_v41 }
 0x851   :  { %4460 = vst.msk [vmem:[#allocation4 + $0x50] sm:$0xff] %vm2151_vm5, %v4444_v24  ;;  %v4445_v60 = vadd.f32 %v5345_v12, %v4720_v46 }
 0x852   :  { %4458 = vst.msk [vmem:[#allocation4 + $0x40] sm:$0xff] %vm2151_vm5, %v4442_v40  ;;  %v4443_v59 = vadd.f32 %v5346_v14, %v4720_v46 }
 0x853   :  { %4461 = vst.msk [vmem:[#allocation4 + $0x58] sm:$0xff] %vm2151_vm5, %v4445_v60 }
 0x854   :  { %4459 = vst.msk [vmem:[#allocation4 + $0x48] sm:$0xff] %vm2151_vm5, %v4443_v59  ;;  %v5311_v22 = vpop.f32.mrb[8].mxu1 }
 0x855   :  { %v4448_v29 = vadd.f32 %v5311_v22, %v4720_v46  ;;  %v4396_v53 = vpop.f32.mrb[9].mxu1 }
 0x856   :  { %v4446_v7 = vadd.f32 %v4720_v46, %v4396_v53  ;;  %v5312_v48 = vpop.f32.mrb[10].mxu1 }
 0x857   :  { %4464 = vst.msk [vmem:[#allocation4 + $0x70] sm:$0xff] %vm2151_vm5, %v4448_v29  ;;  %v4449_v21 = vadd.f32 %v5312_v48, %v4720_v46  ;;  %v4399_v13 = vpop.f32.mrb[11].mxu1 }
 0x858   :  { %4462 = vst.msk [vmem:[#allocation4 + $0x60] sm:$0xff] %vm2151_vm5, %v4446_v7  ;;  %v4447_v8 = vadd.f32 %v4720_v46, %v4399_v13 }
 0x859   :  { %4465 = vst.msk [vmem:[#allocation4 + $0x78] sm:$0xff] %vm2151_vm5, %v4449_v21 }
 0x85a   :  { %4463 = vst.msk [vmem:[#allocation4 + $0x68] sm:$0xff] %vm2151_vm5, %v4447_v8 }
 0x85b   :  { %5801 = shalt.err (!%p5798_p4)
}
 0x85c   :  { %s5802_s2 = scalar_lea.hbm %s7645_s12, 2048 }
 0x85d   :  { %p5803_p5 = scmp.ne.s32.totalorder %s7645_s12, %s5802_s2  ;;  %p5806_p6 = scmp.lt.u32.totalorder %s5802_s2, %s7645_s12 }
 0x85f   :  { %p5808_p7 = pnand %p5806_p6, %p5803_p5 }
 0x861   :  { %5811 = shalt.err (!%p5808_p7)
}
 0x862   :  { %s5819_s28 = smov 128   ;;  %s5820_s4 = smov 8  }
 0x863   :  { %4477 = dma.vmem_to_hbm [thread:$0]  %s4472_s24, 2048, %s7645_s12, [#allocation5], %s5819_s28, %s5819_s28, %s5820_s4  }
 0x864   :  { %5812 = dma.done.wait [#allocation5], 2048  }
 0x865   :  { %5813 = vsyncadd [#allocation5], 4294965248 }
 0x866   :  { %4481 = vsyncpa [#allocation5], 1 }

</bundles_post_ra>
